<compile_context>
chip_gen: v7x
topology: tpu7x:2x2x1
jax: 0.10.0
libtpu: 0.0.40
codegen_flags: <defaults>
</compile_context>

<pallas_src>
import functools
import math

import jax
import jax.numpy as jnp
from jax.experimental import pallas as pl
from jax.experimental.pallas import tpu as pltpu


# ------------------------------- the kernel -------------------------------

def imha_kernel(
    q_ref, k_ref, v_ref,
    wq, bq, wk, bk, wv, bv, wo, bo,
    out_ref, attn_out_ref, attn_scr_ref,
    *, num_heads, d_model,
):
    TB, S, E = q_ref.shape
    H = num_heads
    scale = 1.0 / math.sqrt(d_model)

    # Flatten (batch, seq) for the lane-dense fused projections.
    q = q_ref[...].astype(jnp.float32).reshape(TB * S, E)
    k = k_ref[...].astype(jnp.float32).reshape(TB * S, E)
    v = v_ref[...].astype(jnp.float32).reshape(TB * S, E)

    qp = (jnp.dot(q, wq[...], preferred_element_type=jnp.float32) + bq[...]
          ).reshape(TB, S, H * E)                      # [TB, S, H*E]  (128 lanes)
    kp = (jnp.dot(k, wk[...], preferred_element_type=jnp.float32) + bk[...]
          ).reshape(TB, S, H * E)                      # [TB, S, H*E]
    vp = (jnp.dot(v, wv[...], preferred_element_type=jnp.float32) + bv[...]
          ).reshape(TB, S, E)                          # [TB, S, E]   shared by heads

    # Accumulate softmax(Q_h K_h^T / sqrt(E)) over heads.  Because V is shared
    # across heads, mean_h(P_h @ V) == (mean_h P_h) @ V, so only the head-mean
    # probability matrix needs a PV matmul.
    acc_p = jnp.zeros((TB, S, S), jnp.float32)
    for h in range(H):                                  # static unroll, H is small
        qh = qp[:, :, h * E:(h + 1) * E]                # [TB, S, E]
        kh = kp[:, :, h * E:(h + 1) * E]                # [TB, S, E]
        s = jnp.einsum('bqe,bke->bqk', qh, kh,
                       preferred_element_type=jnp.float32) * scale
        s = s - jnp.max(s, axis=-1, keepdims=True)
        e = jnp.exp(s)
        inv = pl.reciprocal(jnp.sum(e, axis=-1, keepdims=True), approx=True)
        acc_p = acc_p + e * inv

    inv_h = 1.0 / H
    attn_scr = acc_p * inv_h                            # [TB, S, S]  mean over heads
    attn_out = jnp.einsum('bqk,bke->bqe', attn_scr, vp,
                          preferred_element_type=jnp.float32)   # [TB, S, E]

    out = (jnp.dot(attn_out.reshape(TB * S, E), wo[...],
                   preferred_element_type=jnp.float32) + bo[...]
           ).reshape(TB, S, E)

    out_ref[...] = out.astype(out_ref.dtype)
    attn_out_ref[...] = attn_out.astype(attn_out_ref.dtype)
    attn_scr_ref[...] = attn_scr.astype(attn_scr_ref.dtype)


# ------------------------------- the wrapper -------------------------------

def interpretable_mha(q, k, v, params, *, num_heads, tb=None):
    B, S, E = q.shape
    H = num_heads
    if tb is None:
        tb = min(B, 512)          # large batch tiles; single grid step at toy sizes
    assert B % tb == 0, "batch must be divisible by the batch tile"
    assert S % 8 == 0, "seq len must be a multiple of 8 for in-kernel reshapes"

    weights = [params["wq"], params["bq"], params["wk"], params["bk"],
               params["wv"], params["bv"], params["wo"], params["bo"]]

    def row_spec(last):
        return pl.BlockSpec((tb, S, last), lambda b: (b, 0, 0))

    def const_spec(arr):
        nd = arr.ndim
        return pl.BlockSpec(arr.shape, lambda b, _nd=nd: (0,) * _nd)

    kernel = functools.partial(imha_kernel, num_heads=H, d_model=E)

    out, attn_out, attn_scr = pl.pallas_call(
        kernel,
        out_shape=(jax.ShapeDtypeStruct((B, S, E), jnp.float32),
                   jax.ShapeDtypeStruct((B, S, E), jnp.float32),
                   jax.ShapeDtypeStruct((B, S, S), jnp.float32)),
        grid_spec=pltpu.PrefetchScalarGridSpec(
            num_scalar_prefetch=0,
            grid=(B // tb,),
            in_specs=[row_spec(E), row_spec(E), row_spec(E)]
                     + [const_spec(w) for w in weights],
            out_specs=[row_spec(E), row_spec(E), row_spec(S)],
        ),
        compiler_params=pltpu.CompilerParams(dimension_semantics=("parallel",)),
    )(q, k, v, *weights)

    # matches PyTorch return order: (output, attention_outputs, attention_scores)
    return out, attn_out, attn_scr


# ------------------------- deterministic param init ------------------------

def _linear(key, fan_in, fan_out):
    kw, kb = jax.random.split(key)
    bound = 1.0 / math.sqrt(fan_in)
    w = jax.random.uniform(kw, (fan_in, fan_out), jnp.float32, -bound, bound)
    b = jax.random.uniform(kb, (1, fan_out), jnp.float32, -bound, bound)
    return w, b


def init_params(key, embed_dim, num_heads):
    E, H = embed_dim, num_heads
    k1, k2, k3, k4 = jax.random.split(key, 4)
    wq, bq = _linear(k1, E, E * H)
    wk, bk = _linear(k2, E, E * H)
    wv, bv = _linear(k3, E, E)
    wo, bo = _linear(k4, E, E)
    return dict(wq=wq, bq=bq, wk=wk, bk=bk, wv=wv, bv=bv, wo=wo, bo=bo)


# ------------------------------ JAX reference ------------------------------

def imha_ref(q, k, v, params, num_heads):
    B, S, E = q.shape
    H = num_heads
    qp = (q @ params["wq"] + params["bq"]).reshape(B, S, H, E).transpose(0, 2, 1, 3)
    kp = (k @ params["wk"] + params["bk"]).reshape(B, S, H, E).transpose(0, 2, 1, 3)
    vp = v @ params["wv"] + params["bv"]                       # shared across heads
    vp4 = jnp.broadcast_to(vp[:, None], (B, H, S, E))
    scores = jnp.einsum('bhqe,bhke->bhqk', qp, kp) / math.sqrt(E)
    p = jax.nn.softmax(scores, axis=-1)
    o = jnp.einsum('bhqk,bhke->bhqe', p, vp4)
    attn_scores = p.mean(axis=1)
    attn_out = o.mean(axis=1)
    out = attn_out @ params["wo"] + params["bo"]
    return out, attn_out, attn_scores


# ----------------------------------- main -----------------------------------

if __name__ == "__main__":
    B, S, E, H = 8, 16, 32, 4        # batch, seq, embed_dim, num_heads (H*E = 128)
    key = jax.random.PRNGKey(0)
    kq, kk, kv, kp = jax.random.split(key, 4)
    q = jax.random.normal(kq, (B, S, E), jnp.float32)
    k = jax.random.normal(kk, (B, S, E), jnp.float32)
    v = jax.random.normal(kv, (B, S, E), jnp.float32)
    params = init_params(kp, E, H)

    out, attn_out, attn_scr = interpretable_mha(q, k, v, params, num_heads=H)
    jax.block_until_ready(out)
    jax.block_until_ready(attn_out)
    jax.block_until_ready(attn_scr)

    ref_out, ref_attn_out, ref_attn_scr = imha_ref(q, k, v, params, H)
    assert out.shape == (B, S, E)
    assert attn_out.shape == (B, S, E)
    assert attn_scr.shape == (B, S, S)
    assert jnp.allclose(out, ref_out, atol=1e-3, rtol=1e-3)
    assert jnp.allclose(attn_out, ref_attn_out, atol=1e-3, rtol=1e-3)
    assert jnp.allclose(attn_scr, ref_attn_scr, atol=1e-3, rtol=1e-3)
    print("KERNEL_OK")
</pallas_src>

<mosaic_0001>
module attributes {stable_mosaic.version = 11 : i64} {
  func.func @imha_kernel(%arg0: i32, %arg1: memref<8x16x32xf32, #tpu.memory_space<vmem>>, %arg2: memref<8x16x32xf32, #tpu.memory_space<vmem>>, %arg3: memref<8x16x32xf32, #tpu.memory_space<vmem>>, %arg4: memref<32x128xf32, #tpu.memory_space<vmem>>, %arg5: memref<1x128xf32, #tpu.memory_space<vmem>>, %arg6: memref<32x128xf32, #tpu.memory_space<vmem>>, %arg7: memref<1x128xf32, #tpu.memory_space<vmem>>, %arg8: memref<32x32xf32, #tpu.memory_space<vmem>>, %arg9: memref<1x32xf32, #tpu.memory_space<vmem>>, %arg10: memref<32x32xf32, #tpu.memory_space<vmem>>, %arg11: memref<1x32xf32, #tpu.memory_space<vmem>>, %arg12: memref<8x16x32xf32, #tpu.memory_space<vmem>>, %arg13: memref<8x16x32xf32, #tpu.memory_space<vmem>>, %arg14: memref<8x16x16xf32, #tpu.memory_space<vmem>>) attributes {dimension_semantics = [#tpu.dimension_semantics<parallel>], iteration_bounds = array<i64: 1>, scalar_prefetch = 0 : i64, scratch_operands = 0 : i64, tpu.core_type = #tpu.core_type<tc>, window_params = [{transform_indices = @transform_0, window_bounds = array<i64: 8, 16, 32>}, {transform_indices = @transform_1, window_bounds = array<i64: 8, 16, 32>}, {transform_indices = @transform_2, window_bounds = array<i64: 8, 16, 32>}, {pipeline_mode = #tpu.pipeline_mode<synchronous>, transform_indices = @transform_3, window_bounds = array<i64: 32, 128>}, {pipeline_mode = #tpu.pipeline_mode<synchronous>, transform_indices = @transform_4, window_bounds = array<i64: 1, 128>}, {pipeline_mode = #tpu.pipeline_mode<synchronous>, transform_indices = @transform_5, window_bounds = array<i64: 32, 128>}, {pipeline_mode = #tpu.pipeline_mode<synchronous>, transform_indices = @transform_6, window_bounds = array<i64: 1, 128>}, {pipeline_mode = #tpu.pipeline_mode<synchronous>, transform_indices = @transform_7, window_bounds = array<i64: 32, 32>}, {pipeline_mode = #tpu.pipeline_mode<synchronous>, transform_indices = @transform_8, window_bounds = array<i64: 1, 32>}, {pipeline_mode = #tpu.pipeline_mode<synchronous>, transform_indices = @transform_9, window_bounds = array<i64: 32, 32>}, {pipeline_mode = #tpu.pipeline_mode<synchronous>, transform_indices = @transform_10, window_bounds = array<i64: 1, 32>}, {transform_indices = @transform_11, window_bounds = array<i64: 8, 16, 32>}, {transform_indices = @transform_12, window_bounds = array<i64: 8, 16, 32>}, {transform_indices = @transform_13, window_bounds = array<i64: 8, 16, 16>}]} {
    %c0 = arith.constant 0 : index
    %c0_0 = arith.constant 0 : index
    %c0_1 = arith.constant 0 : index
    %0 = vector.load %arg1[%c0, %c0_0, %c0_1] : memref<8x16x32xf32, #tpu.memory_space<vmem>>, vector<8x16x32xf32>
    %1 = vector.shape_cast %0 : vector<8x16x32xf32> to vector<128x32xf32>
    %c0_2 = arith.constant 0 : index
    %c0_3 = arith.constant 0 : index
    %c0_4 = arith.constant 0 : index
    %2 = vector.load %arg2[%c0_2, %c0_3, %c0_4] : memref<8x16x32xf32, #tpu.memory_space<vmem>>, vector<8x16x32xf32>
    %3 = vector.shape_cast %2 : vector<8x16x32xf32> to vector<128x32xf32>
    %c0_5 = arith.constant 0 : index
    %c0_6 = arith.constant 0 : index
    %c0_7 = arith.constant 0 : index
    %4 = vector.load %arg3[%c0_5, %c0_6, %c0_7] : memref<8x16x32xf32, #tpu.memory_space<vmem>>, vector<8x16x32xf32>
    %5 = vector.shape_cast %4 : vector<8x16x32xf32> to vector<128x32xf32>
    %c0_8 = arith.constant 0 : index
    %c0_9 = arith.constant 0 : index
    %6 = vector.load %arg4[%c0_8, %c0_9] : memref<32x128xf32, #tpu.memory_space<vmem>>, vector<32x128xf32>
    %cst = arith.constant dense<0.000000e+00> : vector<128x128xf32>
    %7 = tpu.matmul %1, %6, %cst {dimension_numbers = #tpu.dot_dimension_numbers<[1], [0], [0], [1], [0, 0, 1, 1], [], []>} : vector<128x32xf32>, vector<32x128xf32>, vector<128x128xf32> -> vector<128x128xf32>
    %c0_10 = arith.constant 0 : index
    %c0_11 = arith.constant 0 : index
    %8 = vector.load %arg5[%c0_10, %c0_11] : memref<1x128xf32, #tpu.memory_space<vmem>>, vector<1x128xf32>
    %9 = vector.broadcast %8 : vector<1x128xf32> to vector<128x128xf32>
    %10 = arith.addf %7, %9 : vector<128x128xf32>
    %11 = vector.shape_cast %10 : vector<128x128xf32> to vector<8x16x128xf32>
    %c0_12 = arith.constant 0 : index
    %c0_13 = arith.constant 0 : index
    %12 = vector.load %arg6[%c0_12, %c0_13] : memref<32x128xf32, #tpu.memory_space<vmem>>, vector<32x128xf32>
    %cst_14 = arith.constant dense<0.000000e+00> : vector<128x128xf32>
    %13 = tpu.matmul %3, %12, %cst_14 {dimension_numbers = #tpu.dot_dimension_numbers<[1], [0], [0], [1], [0, 0, 1, 1], [], []>} : vector<128x32xf32>, vector<32x128xf32>, vector<128x128xf32> -> vector<128x128xf32>
    %c0_15 = arith.constant 0 : index
    %c0_16 = arith.constant 0 : index
    %14 = vector.load %arg7[%c0_15, %c0_16] : memref<1x128xf32, #tpu.memory_space<vmem>>, vector<1x128xf32>
    %15 = vector.broadcast %14 : vector<1x128xf32> to vector<128x128xf32>
    %16 = arith.addf %13, %15 : vector<128x128xf32>
    %17 = vector.shape_cast %16 : vector<128x128xf32> to vector<8x16x128xf32>
    %c0_17 = arith.constant 0 : index
    %c0_18 = arith.constant 0 : index
    %18 = vector.load %arg8[%c0_17, %c0_18] : memref<32x32xf32, #tpu.memory_space<vmem>>, vector<32x32xf32>
    %cst_19 = arith.constant dense<0.000000e+00> : vector<128x32xf32>
    %19 = tpu.matmul %5, %18, %cst_19 {dimension_numbers = #tpu.dot_dimension_numbers<[1], [0], [0], [1], [0, 0, 1, 1], [], []>} : vector<128x32xf32>, vector<32x32xf32>, vector<128x32xf32> -> vector<128x32xf32>
    %c0_20 = arith.constant 0 : index
    %c0_21 = arith.constant 0 : index
    %20 = vector.load %arg9[%c0_20, %c0_21] : memref<1x32xf32, #tpu.memory_space<vmem>>, vector<1x32xf32>
    %21 = vector.broadcast %20 : vector<1x32xf32> to vector<128x32xf32>
    %22 = arith.addf %19, %21 : vector<128x32xf32>
    %23 = vector.shape_cast %22 : vector<128x32xf32> to vector<8x16x32xf32>
    %cst_22 = arith.constant 0.000000e+00 : f32
    %24 = vector.broadcast %cst_22 : f32 to vector<8x16x16xf32>
    %25 = vector.extract_strided_slice %11 {offsets = [0, 0, 0], sizes = [8, 16, 32], strides = [1, 1, 1]} : vector<8x16x128xf32> to vector<8x16x32xf32>
    %26 = vector.extract_strided_slice %17 {offsets = [0, 0, 0], sizes = [8, 16, 32], strides = [1, 1, 1]} : vector<8x16x128xf32> to vector<8x16x32xf32>
    "tpu.trace_start"() <{level = 10 : i32, message = "bqe,bke->bqk"}> : () -> ()
    %cst_23 = arith.constant dense<0.000000e+00> : vector<8x16x16xf32>
    %27 = tpu.matmul %25, %26, %cst_23 {dimension_numbers = #tpu.dot_dimension_numbers<[2], [2], [1], [1], [0, 0, 0, 1, 1, 1], [0], [0]>} : vector<8x16x32xf32>, vector<8x16x32xf32>, vector<8x16x16xf32> -> vector<8x16x16xf32>
    "tpu.trace_stop"() : () -> ()
    %cst_24 = arith.constant 0.176776692 : f32
    %28 = vector.broadcast %cst_24 : f32 to vector<8x16x16xf32>
    %29 = arith.mulf %27, %28 : vector<8x16x16xf32>
    %cst_25 = arith.constant dense<0xFF800000> : vector<8x16xf32>
    %30 = vector.multi_reduction <maximumf>, %29, %cst_25 [2] : vector<8x16x16xf32> to vector<8x16xf32>
    %31 = vector.shape_cast %30 : vector<8x16xf32> to vector<8x16x1xf32>
    %32 = vector.broadcast %31 : vector<8x16x1xf32> to vector<8x16x16xf32>
    %33 = arith.subf %29, %32 : vector<8x16x16xf32>
    %34 = math.exp %33 : vector<8x16x16xf32>
    %cst_26 = arith.constant dense<0.000000e+00> : vector<8x16xf32>
    %35 = vector.multi_reduction <add>, %34, %cst_26 [2] : vector<8x16x16xf32> to vector<8x16xf32>
    %36 = vector.shape_cast %35 : vector<8x16xf32> to vector<8x16x1xf32>
    %37 = tpu.reciprocal %36 {approx = true} : vector<8x16x1xf32> -> vector<8x16x1xf32>
    %38 = vector.broadcast %37 : vector<8x16x1xf32> to vector<8x16x16xf32>
    %39 = arith.mulf %34, %38 : vector<8x16x16xf32>
    %40 = arith.addf %24, %39 : vector<8x16x16xf32>
    %41 = vector.extract_strided_slice %11 {offsets = [0, 0, 32], sizes = [8, 16, 32], strides = [1, 1, 1]} : vector<8x16x128xf32> to vector<8x16x32xf32>
    %42 = vector.extract_strided_slice %17 {offsets = [0, 0, 32], sizes = [8, 16, 32], strides = [1, 1, 1]} : vector<8x16x128xf32> to vector<8x16x32xf32>
    "tpu.trace_start"() <{level = 10 : i32, message = "bqe,bke->bqk"}> : () -> ()
    %cst_27 = arith.constant dense<0.000000e+00> : vector<8x16x16xf32>
    %43 = tpu.matmul %41, %42, %cst_27 {dimension_numbers = #tpu.dot_dimension_numbers<[2], [2], [1], [1], [0, 0, 0, 1, 1, 1], [0], [0]>} : vector<8x16x32xf32>, vector<8x16x32xf32>, vector<8x16x16xf32> -> vector<8x16x16xf32>
    "tpu.trace_stop"() : () -> ()
    %cst_28 = arith.constant 0.176776692 : f32
    %44 = vector.broadcast %cst_28 : f32 to vector<8x16x16xf32>
    %45 = arith.mulf %43, %44 : vector<8x16x16xf32>
    %cst_29 = arith.constant dense<0xFF800000> : vector<8x16xf32>
    %46 = vector.multi_reduction <maximumf>, %45, %cst_29 [2] : vector<8x16x16xf32> to vector<8x16xf32>
    %47 = vector.shape_cast %46 : vector<8x16xf32> to vector<8x16x1xf32>
    %48 = vector.broadcast %47 : vector<8x16x1xf32> to vector<8x16x16xf32>
    %49 = arith.subf %45, %48 : vector<8x16x16xf32>
    %50 = math.exp %49 : vector<8x16x16xf32>
    %cst_30 = arith.constant dense<0.000000e+00> : vector<8x16xf32>
    %51 = vector.multi_reduction <add>, %50, %cst_30 [2] : vector<8x16x16xf32> to vector<8x16xf32>
    %52 = vector.shape_cast %51 : vector<8x16xf32> to vector<8x16x1xf32>
    %53 = tpu.reciprocal %52 {approx = true} : vector<8x16x1xf32> -> vector<8x16x1xf32>
    %54 = vector.broadcast %53 : vector<8x16x1xf32> to vector<8x16x16xf32>
    %55 = arith.mulf %50, %54 : vector<8x16x16xf32>
    %56 = arith.addf %40, %55 : vector<8x16x16xf32>
    %57 = vector.extract_strided_slice %11 {offsets = [0, 0, 64], sizes = [8, 16, 32], strides = [1, 1, 1]} : vector<8x16x128xf32> to vector<8x16x32xf32>
    %58 = vector.extract_strided_slice %17 {offsets = [0, 0, 64], sizes = [8, 16, 32], strides = [1, 1, 1]} : vector<8x16x128xf32> to vector<8x16x32xf32>
    "tpu.trace_start"() <{level = 10 : i32, message = "bqe,bke->bqk"}> : () -> ()
    %cst_31 = arith.constant dense<0.000000e+00> : vector<8x16x16xf32>
    %59 = tpu.matmul %57, %58, %cst_31 {dimension_numbers = #tpu.dot_dimension_numbers<[2], [2], [1], [1], [0, 0, 0, 1, 1, 1], [0], [0]>} : vector<8x16x32xf32>, vector<8x16x32xf32>, vector<8x16x16xf32> -> vector<8x16x16xf32>
    "tpu.trace_stop"() : () -> ()
    %cst_32 = arith.constant 0.176776692 : f32
    %60 = vector.broadcast %cst_32 : f32 to vector<8x16x16xf32>
    %61 = arith.mulf %59, %60 : vector<8x16x16xf32>
    %cst_33 = arith.constant dense<0xFF800000> : vector<8x16xf32>
    %62 = vector.multi_reduction <maximumf>, %61, %cst_33 [2] : vector<8x16x16xf32> to vector<8x16xf32>
    %63 = vector.shape_cast %62 : vector<8x16xf32> to vector<8x16x1xf32>
    %64 = vector.broadcast %63 : vector<8x16x1xf32> to vector<8x16x16xf32>
    %65 = arith.subf %61, %64 : vector<8x16x16xf32>
    %66 = math.exp %65 : vector<8x16x16xf32>
    %cst_34 = arith.constant dense<0.000000e+00> : vector<8x16xf32>
    %67 = vector.multi_reduction <add>, %66, %cst_34 [2] : vector<8x16x16xf32> to vector<8x16xf32>
    %68 = vector.shape_cast %67 : vector<8x16xf32> to vector<8x16x1xf32>
    %69 = tpu.reciprocal %68 {approx = true} : vector<8x16x1xf32> -> vector<8x16x1xf32>
    %70 = vector.broadcast %69 : vector<8x16x1xf32> to vector<8x16x16xf32>
    %71 = arith.mulf %66, %70 : vector<8x16x16xf32>
    %72 = arith.addf %56, %71 : vector<8x16x16xf32>
    %73 = vector.extract_strided_slice %11 {offsets = [0, 0, 96], sizes = [8, 16, 32], strides = [1, 1, 1]} : vector<8x16x128xf32> to vector<8x16x32xf32>
    %74 = vector.extract_strided_slice %17 {offsets = [0, 0, 96], sizes = [8, 16, 32], strides = [1, 1, 1]} : vector<8x16x128xf32> to vector<8x16x32xf32>
    "tpu.trace_start"() <{level = 10 : i32, message = "bqe,bke->bqk"}> : () -> ()
    %cst_35 = arith.constant dense<0.000000e+00> : vector<8x16x16xf32>
    %75 = tpu.matmul %73, %74, %cst_35 {dimension_numbers = #tpu.dot_dimension_numbers<[2], [2], [1], [1], [0, 0, 0, 1, 1, 1], [0], [0]>} : vector<8x16x32xf32>, vector<8x16x32xf32>, vector<8x16x16xf32> -> vector<8x16x16xf32>
    "tpu.trace_stop"() : () -> ()
    %cst_36 = arith.constant 0.176776692 : f32
    %76 = vector.broadcast %cst_36 : f32 to vector<8x16x16xf32>
    %77 = arith.mulf %75, %76 : vector<8x16x16xf32>
    %cst_37 = arith.constant dense<0xFF800000> : vector<8x16xf32>
    %78 = vector.multi_reduction <maximumf>, %77, %cst_37 [2] : vector<8x16x16xf32> to vector<8x16xf32>
    %79 = vector.shape_cast %78 : vector<8x16xf32> to vector<8x16x1xf32>
    %80 = vector.broadcast %79 : vector<8x16x1xf32> to vector<8x16x16xf32>
    %81 = arith.subf %77, %80 : vector<8x16x16xf32>
    %82 = math.exp %81 : vector<8x16x16xf32>
    %cst_38 = arith.constant dense<0.000000e+00> : vector<8x16xf32>
    %83 = vector.multi_reduction <add>, %82, %cst_38 [2] : vector<8x16x16xf32> to vector<8x16xf32>
    %84 = vector.shape_cast %83 : vector<8x16xf32> to vector<8x16x1xf32>
    %85 = tpu.reciprocal %84 {approx = true} : vector<8x16x1xf32> -> vector<8x16x1xf32>
    %86 = vector.broadcast %85 : vector<8x16x1xf32> to vector<8x16x16xf32>
    %87 = arith.mulf %82, %86 : vector<8x16x16xf32>
    %88 = arith.addf %72, %87 : vector<8x16x16xf32>
    %cst_39 = arith.constant 2.500000e-01 : f32
    %89 = vector.broadcast %cst_39 : f32 to vector<8x16x16xf32>
    %90 = arith.mulf %88, %89 : vector<8x16x16xf32>
    "tpu.trace_start"() <{level = 10 : i32, message = "bqk,bke->bqe"}> : () -> ()
    %cst_40 = arith.constant dense<0.000000e+00> : vector<8x16x32xf32>
    %91 = tpu.matmul %90, %23, %cst_40 {dimension_numbers = #tpu.dot_dimension_numbers<[2], [1], [1], [2], [0, 0, 0, 1, 1, 2], [0], [0]>} : vector<8x16x16xf32>, vector<8x16x32xf32>, vector<8x16x32xf32> -> vector<8x16x32xf32>
    "tpu.trace_stop"() : () -> ()
    %92 = vector.shape_cast %91 : vector<8x16x32xf32> to vector<128x32xf32>
    %c0_41 = arith.constant 0 : index
    %c0_42 = arith.constant 0 : index
    %93 = vector.load %arg10[%c0_41, %c0_42] : memref<32x32xf32, #tpu.memory_space<vmem>>, vector<32x32xf32>
    %cst_43 = arith.constant dense<0.000000e+00> : vector<128x32xf32>
    %94 = tpu.matmul %92, %93, %cst_43 {dimension_numbers = #tpu.dot_dimension_numbers<[1], [0], [0], [1], [0, 0, 1, 1], [], []>} : vector<128x32xf32>, vector<32x32xf32>, vector<128x32xf32> -> vector<128x32xf32>
    %c0_44 = arith.constant 0 : index
    %c0_45 = arith.constant 0 : index
    %95 = vector.load %arg11[%c0_44, %c0_45] : memref<1x32xf32, #tpu.memory_space<vmem>>, vector<1x32xf32>
    %96 = vector.broadcast %95 : vector<1x32xf32> to vector<128x32xf32>
    %97 = arith.addf %94, %96 : vector<128x32xf32>
    %98 = vector.shape_cast %97 : vector<128x32xf32> to vector<8x16x32xf32>
    %c0_46 = arith.constant 0 : index
    %c0_47 = arith.constant 0 : index
    %c0_48 = arith.constant 0 : index
    %99 = vector.load %arg12[%c0_46, %c0_47, %c0_48] : memref<8x16x32xf32, #tpu.memory_space<vmem>>, vector<8x16x32xf32>
    tpu.vector_store %arg12[%c0_46, %c0_47, %c0_48], %98 {strides = array<i32>} : memref<8x16x32xf32, #tpu.memory_space<vmem>>, vector<8x16x32xf32>,
    %c0_49 = arith.constant 0 : index
    %c0_50 = arith.constant 0 : index
    %c0_51 = arith.constant 0 : index
    %100 = vector.load %arg13[%c0_49, %c0_50, %c0_51] : memref<8x16x32xf32, #tpu.memory_space<vmem>>, vector<8x16x32xf32>
    tpu.vector_store %arg13[%c0_49, %c0_50, %c0_51], %91 {strides = array<i32>} : memref<8x16x32xf32, #tpu.memory_space<vmem>>, vector<8x16x32xf32>,
    %c0_52 = arith.constant 0 : index
    %c0_53 = arith.constant 0 : index
    %c0_54 = arith.constant 0 : index
    %101 = vector.load %arg14[%c0_52, %c0_53, %c0_54] : memref<8x16x16xf32, #tpu.memory_space<vmem>>, vector<8x16x16xf32>
    tpu.vector_store %arg14[%c0_52, %c0_53, %c0_54], %90 {strides = array<i32>} : memref<8x16x16xf32, #tpu.memory_space<vmem>>, vector<8x16x16xf32>,
    return
  }
  func.func @transform_0(%arg0: i32) -> (i32, i32, i32) {
    %c0_i32 = arith.constant 0 : i32
    %c0_i32_0 = arith.constant 0 : i32
    %c0_i32_1 = arith.constant 0 : i32
    return %arg0, %c0_i32, %c0_i32_0 : i32, i32, i32
  }
  func.func @transform_1(%arg0: i32) -> (i32, i32, i32) {
    %c0_i32 = arith.constant 0 : i32
    %c0_i32_0 = arith.constant 0 : i32
    %c0_i32_1 = arith.constant 0 : i32
    return %arg0, %c0_i32, %c0_i32_0 : i32, i32, i32
  }
  func.func @transform_2(%arg0: i32) -> (i32, i32, i32) {
    %c0_i32 = arith.constant 0 : i32
    %c0_i32_0 = arith.constant 0 : i32
    %c0_i32_1 = arith.constant 0 : i32
    return %arg0, %c0_i32, %c0_i32_0 : i32, i32, i32
  }
  func.func @transform_3(%arg0: i32) -> (i32, i32) {
    %c0_i32 = arith.constant 0 : i32
    %c0_i32_0 = arith.constant 0 : i32
    %c0_i32_1 = arith.constant 0 : i32
    return %c0_i32, %c0_i32_0 : i32, i32
  }
  func.func @transform_4(%arg0: i32) -> (i32, i32) {
    %c0_i32 = arith.constant 0 : i32
    %c0_i32_0 = arith.constant 0 : i32
    %c0_i32_1 = arith.constant 0 : i32
    return %c0_i32, %c0_i32_0 : i32, i32
  }
  func.func @transform_5(%arg0: i32) -> (i32, i32) {
    %c0_i32 = arith.constant 0 : i32
    %c0_i32_0 = arith.constant 0 : i32
    %c0_i32_1 = arith.constant 0 : i32
    return %c0_i32, %c0_i32_0 : i32, i32
  }
  func.func @transform_6(%arg0: i32) -> (i32, i32) {
    %c0_i32 = arith.constant 0 : i32
    %c0_i32_0 = arith.constant 0 : i32
    %c0_i32_1 = arith.constant 0 : i32
    return %c0_i32, %c0_i32_0 : i32, i32
  }
  func.func @transform_7(%arg0: i32) -> (i32, i32) {
    %c0_i32 = arith.constant 0 : i32
    %c0_i32_0 = arith.constant 0 : i32
    %c0_i32_1 = arith.constant 0 : i32
    return %c0_i32, %c0_i32_0 : i32, i32
  }
  func.func @transform_8(%arg0: i32) -> (i32, i32) {
    %c0_i32 = arith.constant 0 : i32
    %c0_i32_0 = arith.constant 0 : i32
    %c0_i32_1 = arith.constant 0 : i32
    return %c0_i32, %c0_i32_0 : i32, i32
  }
  func.func @transform_9(%arg0: i32) -> (i32, i32) {
    %c0_i32 = arith.constant 0 : i32
    %c0_i32_0 = arith.constant 0 : i32
    %c0_i32_1 = arith.constant 0 : i32
    return %c0_i32, %c0_i32_0 : i32, i32
  }
  func.func @transform_10(%arg0: i32) -> (i32, i32) {
    %c0_i32 = arith.constant 0 : i32
    %c0_i32_0 = arith.constant 0 : i32
    %c0_i32_1 = arith.constant 0 : i32
    return %c0_i32, %c0_i32_0 : i32, i32
  }
  func.func @transform_11(%arg0: i32) -> (i32, i32, i32) {
    %c0_i32 = arith.constant 0 : i32
    %c0_i32_0 = arith.constant 0 : i32
    %c0_i32_1 = arith.constant 0 : i32
    return %arg0, %c0_i32, %c0_i32_0 : i32, i32, i32
  }
  func.func @transform_12(%arg0: i32) -> (i32, i32, i32) {
    %c0_i32 = arith.constant 0 : i32
    %c0_i32_0 = arith.constant 0 : i32
    %c0_i32_1 = arith.constant 0 : i32
    return %arg0, %c0_i32, %c0_i32_0 : i32, i32, i32
  }
  func.func @transform_13(%arg0: i32) -> (i32, i32, i32) {
    %c0_i32 = arith.constant 0 : i32
    %c0_i32_0 = arith.constant 0 : i32
    %c0_i32_1 = arith.constant 0 : i32
    return %arg0, %c0_i32, %c0_i32_0 : i32, i32, i32
  }
}

</mosaic_0001>

<bundles_post_ra>
// kernel: tpu_custom_call.1
= control target key start
LH: loop header
LB: loop body
LE: loop exit
PB: predicated region body
PF: predicated region fallthrough
CT: control target
= control target key end

     0   :  { %19 = vsyncpa [#allocation3], 0  ;;  %s8915_s0 = inlined_call_operand.hbm [shape: f32[8,16,32], index: 0, kind: input, shape index: {}]   ;;  %s8916_s1 = inlined_call_operand.hbm [shape: f32[8,16,32], index: 1, kind: input, shape index: {}]   ;;  %s8917_s2 = inlined_call_operand.hbm [shape: f32[8,16,32], index: 2, kind: input, shape index: {}]   ;;  %s8918_s3 = inlined_call_operand.hbm [shape: f32[32,128], index: 3, kind: input, shape index: {}]   ;;  %s8919_s4 = inlined_call_operand.vmem [shape: f32[1,128], index: 4, kind: input, shape index: {}]   ;;  %s8920_s5 = inlined_call_operand.hbm [shape: f32[32,128], index: 5, kind: input, shape index: {}]   ;;  %s8921_s6 = inlined_call_operand.vmem [shape: f32[1,128], index: 6, kind: input, shape index: {}]   ;;  %s8922_s7 = inlined_call_operand.hbm [shape: f32[32,32], index: 7, kind: input, shape index: {}]   ;;  %s8923_s8 = inlined_call_operand.hbm [shape: f32[1,32], index: 8, kind: input, shape index: {}]   ;;  %s8924_s9 = inlined_call_operand.vmem [shape: f32[32,32], index: 9, kind: input, shape index: {}]   ;;  %s8925_s10 = inlined_call_operand.vmem [shape: f32[1,32], index: 10, kind: input, shape index: {}]   ;;  %s8926_s11 = inlined_call_operand.hbm [shape: f32[8,16,32], index: 11, kind: output, shape index: {0}]   ;;  %s8927_s12 = inlined_call_operand.hbm [shape: f32[8,16,32], index: 12, kind: output, shape index: {1}]   ;;  %s8928_s13 = inlined_call_operand.hbm [shape: f32[8,16,16], index: 13, kind: output, shape index: {2}]  }
   0x1   :  { %20 = vsyncpa [#allocation6], 0 }
   0x2   :  { %21 = vsyncpa [#allocation9], 0 }
   0x3   :  { %22 = vsyncpa [#allocation12], 0 }
   0x4   :  { %23 = vsyncpa [#allocation4], 0 }
   0x5   :  { %24 = vsyncpa [#allocation16], 0  ;;  %s7220_s25 = smov [#allocation5]   ;;  %s7221_s27 = smov [#allocation8]  }
   0x6   :  { %s42_s26 = sshll.u32 %s7220_s25, 4  ;;  %s66_s28 = sshll.u32 %s7221_s27, 4  ;;  %s43_s26 = int_to_ptr.vmem [resolvable:$true] %s42_s26  ;;  %s7305_s28 = int_to_ptr.vmem [resolvable:$true] %s66_s28 }
   0x7   :  { %s6988_s14 = scalar_lea.hbm %s8916_s1, 2048 }
   0x8   :  { %p6989_p0 = scmp.ne.s32.totalorder %s8916_s1, %s6988_s14  ;;  %p6992_p1 = scmp.lt.u32.totalorder %s6988_s14, %s8916_s1 }
   0xa   :  { %p6994_p2 = pnand %p6992_p1, %p6989_p0 }
   0xc   :  { %6997 = shalt.err (!%p6994_p2)
}
   0xd   :  { %s6998_s19 = scalar_lea.vmem %s43_s26, 2048  ;;  %p7003_p4 = scmp.lt.s32.totalorder %s43_s26, %s43_s26 }
   0xe   :  { %p6999_p3 = scmp.ne.s32.totalorder %s43_s26, %s6998_s19  ;;  %p7004_p5 = scmp.lt.s32.totalorder %s6998_s19, %s6998_s19 }
  0x10   :  { %p7005_p6 = por %p7004_p5, %p7003_p4 }
  0x12   :  { %p7006_p7 = pnand %p7005_p6, %p6999_p3 }
  0x14   :  { %7009 = shalt.err (!%p7006_p7)
}
  0x15   :  { %s7222_s20 = smov 128   ;;  %s7223_s21 = smov 8  }
  0x16   :  { %48 = dma.hbm_to_vmem [thread:$0]  %s8916_s1, 2048, %s43_s26, [#allocation6], %s7222_s20, %s7222_s20, %s7223_s21  }
  0x17   :  { %s7010_s27 = scalar_lea.hbm %s8918_s3, 512 }
  0x18   :  { %p7011_p8 = scmp.ne.s32.totalorder %s8918_s3, %s7010_s27  ;;  %p7014_p9 = scmp.lt.u32.totalorder %s7010_s27, %s8918_s3 }
  0x1a   :  { %p7016_p10 = pnand %p7014_p9, %p7011_p8 }
  0x1c   :  { %7019 = shalt.err (!%p7016_p10)
}
  0x1d   :  { %s7020_s16 = scalar_lea.vmem %s7305_s28, 512  ;;  %p7025_p12 = scmp.lt.s32.totalorder %s7305_s28, %s7305_s28 }
  0x1e   :  { %p7021_p11 = scmp.ne.s32.totalorder %s7305_s28, %s7020_s16  ;;  %p7026_p13 = scmp.lt.s32.totalorder %s7020_s16, %s7020_s16 }
  0x20   :  { %p7027_p0 = por %p7026_p13, %p7025_p12 }
  0x22   :  { %p7028_p1 = pnand %p7027_p0, %p7021_p11 }
  0x24   :  { %7031 = shalt.err (!%p7028_p1)
}
  0x25   :  { %72 = dma.hbm_to_vmem [thread:$0]  %s8918_s3, 512, %s7305_s28, [#allocation9], %s7222_s20, %s7222_s20, %s7223_s21  }
  0x26   :  { %s7224_s17 = smov [#allocation11]   ;;  %s7225_s19 = smov [#allocation2]  }
  0x27   :  { %s94_s18 = sshll.u32 %s7224_s17, 4  ;;  %s30_s22 = sshll.u32 %s7225_s19, 4  ;;  %s95_s18 = int_to_ptr.vmem [resolvable:$true] %s94_s18  ;;  %s7342_s22 = int_to_ptr.vmem [resolvable:$true] %s30_s22 }
  0x28   :  { %s7032_s25 = scalar_lea.hbm %s8922_s7, 512 }
  0x29   :  { %p7033_p2 = scmp.ne.s32.totalorder %s8922_s7, %s7032_s25  ;;  %p7036_p3 = scmp.lt.u32.totalorder %s7032_s25, %s8922_s7 }
  0x2b   :  { %p7038_p4 = pnand %p7036_p3, %p7033_p2 }
  0x2d   :  { %7041 = shalt.err (!%p7038_p4)
}
  0x2e   :  { %s7042_s3 = scalar_lea.vmem %s95_s18, 512  ;;  %p7047_p6 = scmp.lt.s32.totalorder %s95_s18, %s95_s18 }
  0x2f   :  { %p7043_p5 = scmp.ne.s32.totalorder %s95_s18, %s7042_s3  ;;  %p7048_p7 = scmp.lt.s32.totalorder %s7042_s3, %s7042_s3 }
  0x31   :  { %p7049_p8 = por %p7048_p7, %p7047_p6 }
  0x33   :  { %p7050_p9 = pnand %p7049_p8, %p7043_p5 }
  0x35   :  { %7053 = shalt.err (!%p7050_p9)
}
  0x36   :  { %100 = dma.hbm_to_vmem [thread:$0]  %s8922_s7, 512, %s95_s18, [#allocation12], %s7222_s20, %s7222_s20, %s7223_s21  }
  0x37   :  { %s7054_s26 = scalar_lea.hbm %s8915_s0, 2048 }
  0x38   :  { %p7055_p10 = scmp.ne.s32.totalorder %s8915_s0, %s7054_s26  ;;  %p7058_p11 = scmp.lt.u32.totalorder %s7054_s26, %s8915_s0 }
  0x3a   :  { %p7060_p12 = pnand %p7058_p11, %p7055_p10 }
  0x3c   :  { %7063 = shalt.err (!%p7060_p12)
}
  0x3d   :  { %s7064_s25 = scalar_lea.vmem %s7342_s22, 2048  ;;  %p7069_p0 = scmp.lt.s32.totalorder %s7342_s22, %s7342_s22 }
  0x3e   :  { %p7065_p13 = scmp.ne.s32.totalorder %s7342_s22, %s7064_s25  ;;  %p7070_p1 = scmp.lt.s32.totalorder %s7064_s25, %s7064_s25 }
  0x40   :  { %p7071_p2 = por %p7070_p1, %p7069_p0 }
  0x42   :  { %p7072_p3 = pnand %p7071_p2, %p7065_p13 }
  0x44   :  { %7075 = shalt.err (!%p7072_p3)
}
  0x45   :  { %36 = dma.hbm_to_vmem [thread:$0]  %s8915_s0, 2048, %s7342_s22, [#allocation3], %s7222_s20, %s7222_s20, %s7223_s21  }
  0x46   :  { %s7226_s27 = smov [#allocation7]   ;;  %s7227_s30 = smov [#allocation10]  }
  0x47   :  { %s54_s29 = sshll.u32 %s7226_s27, 4  ;;  %s80_s14 = sshll.u32 %s7227_s30, 4  ;;  %s55_s29 = int_to_ptr.vmem [resolvable:$true] %s54_s29  ;;  %s7379_s14 = int_to_ptr.vmem [resolvable:$true] %s80_s14 }
  0x48   :  { %s7076_s15 = scalar_lea.hbm %s8917_s2, 2048 }
  0x49   :  { %p7077_p4 = scmp.ne.s32.totalorder %s8917_s2, %s7076_s15  ;;  %p7080_p5 = scmp.lt.u32.totalorder %s7076_s15, %s8917_s2 }
  0x4b   :  { %p7082_p6 = pnand %p7080_p5, %p7077_p4 }
  0x4d   :  { %7085 = shalt.err (!%p7082_p6)
}
  0x4e   :  { %s7086_s0 = scalar_lea.vmem %s55_s29, 2048  ;;  %p7091_p8 = scmp.lt.s32.totalorder %s55_s29, %s55_s29 }
  0x4f   :  { %p7087_p7 = scmp.ne.s32.totalorder %s55_s29, %s7086_s0  ;;  %p7092_p9 = scmp.lt.s32.totalorder %s7086_s0, %s7086_s0 }
  0x51   :  { %p7093_p10 = por %p7092_p9, %p7091_p8 }
  0x53   :  { %p7094_p11 = pnand %p7093_p10, %p7087_p7 }
  0x55   :  { %7097 = shalt.err (!%p7094_p11)
}
  0x56   :  { %60 = dma.hbm_to_vmem [thread:$0]  %s8917_s2, 2048, %s55_s29, [#allocation6], %s7222_s20, %s7222_s20, %s7223_s21  }
  0x57   :  { %s7098_s25 = scalar_lea.hbm %s8920_s5, 512 }
  0x58   :  { %p7099_p12 = scmp.ne.s32.totalorder %s8920_s5, %s7098_s25  ;;  %p7102_p13 = scmp.lt.u32.totalorder %s7098_s25, %s8920_s5 }
  0x5a   :  { %p7104_p0 = pnand %p7102_p13, %p7099_p12 }
  0x5c   :  { %7107 = shalt.err (!%p7104_p0)
}
  0x5d   :  { %s7108_s3 = scalar_lea.vmem %s7379_s14, 512  ;;  %p7113_p2 = scmp.lt.s32.totalorder %s7379_s14, %s7379_s14 }
  0x5e   :  { %p7109_p1 = scmp.ne.s32.totalorder %s7379_s14, %s7108_s3  ;;  %p7114_p3 = scmp.lt.s32.totalorder %s7108_s3, %s7108_s3 }
  0x60   :  { %p7115_p4 = por %p7114_p3, %p7113_p2 }
  0x62   :  { %p7116_p5 = pnand %p7115_p4, %p7109_p1 }
  0x64   :  { %7119 = shalt.err (!%p7116_p5)
}
  0x65   :  { %86 = dma.hbm_to_vmem [thread:$0]  %s8920_s5, 512, %s7379_s14, [#allocation9], %s7222_s20, %s7222_s20, %s7223_s21  }
  0x66   :  { %s7228_s28 = smov [#allocation13]   ;;  %s7120_s26 = scalar_lea.hbm %s8923_s8, 16 }
  0x67   :  { %s107_s15 = sshll.u32 %s7228_s28, 4  ;;  %p7121_p6 = scmp.ne.s32.totalorder %s8923_s8, %s7120_s26  ;;  %s108_s15 = int_to_ptr.vmem [resolvable:$true] %s107_s15 }
  0x68   :  { %p7124_p7 = scmp.lt.u32.totalorder %s7120_s26, %s8923_s8 }
  0x6a   :  { %p7126_p8 = pnand %p7124_p7, %p7121_p6 }
  0x6c   :  { %7129 = shalt.err (!%p7126_p8)
}
  0x6d   :  { %s7130_s23 = scalar_lea.vmem %s108_s15, 16  ;;  %s7134_s5 = scalar_lea.vmem %s108_s15, 32 }
  0x6e   :  { %p7131_p9 = scmp.ne.s32.totalorder %s108_s15, %s7130_s23  ;;  %p7135_p10 = scmp.lt.s32.totalorder %s108_s15, %s108_s15 }
  0x6f   :  { %p7136_p11 = scmp.lt.s32.totalorder %s7134_s5, %s7130_s23 }
  0x71   :  { %p7137_p12 = por %p7136_p11, %p7135_p10 }
  0x73   :  { %p7138_p13 = pnand %p7137_p12, %p7131_p9 }
  0x75   :  { %7141 = shalt.err (!%p7138_p13)
}
  0x76   :  { %110 = dma.hbm_to_vmem [thread:$0]  %s8923_s8, 16, %s108_s15, [#allocation12]  }
  0x77   :  { %7208 = dma.done.wait [#allocation3], 2048  }
  0x78   :  { %7209 = vsyncadd [#allocation3], 4294965248 }
  0x79   :  { %7210 = dma.done.wait [#allocation6], 4096  }
  0x7a   :  { %7211 = vsyncadd [#allocation6], 4294963200 }
  0x7b   :  { %7212 = dma.done.wait [#allocation9], 1024  }
  0x7c   :  { %7213 = vsyncadd [#allocation9], 4294966272 }
  0x7d   :  { %7214 = dma.done.wait [#allocation12], 528  }
  0x7e   :  { %7215 = vsyncadd [#allocation12], 4294966768  ;;  %vm195_vm0 = vcmask 261120   ;;  %v184_v0 = vld [vmem:[#allocation8] sm:$0xff]  ;;  %v185_v1 = vld [vmem:[#allocation8 + $0x8] sm:$0xff]  ;;  %s7229_s7 = smov 96  }
  0x7f   :  { %v186_v2 = vld [vmem:[#allocation8 + $0x10] sm:$0xff]  ;;  %v6337_v3 = vpack.c.bf16 %v185_v1, %v184_v0  ;;  %v187_v4 = vld [vmem:[#allocation8 + $0x18] sm:$0xff]  ;;  %v136_v5 = vld [vmem:[#allocation2] sm:$0xff]  ;;  %vm1509_vm2 = vcmask 130048  }
  0x80   :  { %v144_v6 = vld [vmem:[#allocation2 + $0x40] sm:$0xff]  ;;  %v6341_v7 = vpack.c.bf16 %v187_v4, %v186_v2  ;;  %5937 = vmatprep.mubr.msk.f32.mxu0 %vm195_vm0, %v136_v5  ;;  %v390_v9 = vld [vmem:[#allocation10 + $0x8] sm:$0xff]  ;;  %v391_v11 = vld [vmem:[#allocation10 + $0x10] sm:$0xff] }
  0x81   :  { %5949 = vmatprep.mubr.msk.f32.mxu1 %vm195_vm0, %v144_v6  ;;  %6338 = vmatprep.subr.bf16.mxu0 %v6337_v3  ;;  %v389_v8 = vld [vmem:[#allocation10] sm:$0xff]  ;;  %v392_v12 = vld [vmem:[#allocation10 + $0x18] sm:$0xff]  ;;  %v137_v13 = vld [vmem:[#allocation2 + $0x8] sm:$0xff] }
  0x82   :  { %6593 = vmatprep.subr.bf16.mxu1 %v6337_v3  ;;  %6340 = vmatpush3.bf16.msra.mxu0 %v6337_v3  ;;  %v6345_v10 = vpack.c.bf16 %v390_v9, %v389_v8  ;;  %v145_v14 = vld [vmem:[#allocation2 + $0x48] sm:$0xff]  ;;  %v146_v15 = vld [vmem:[#allocation2 + $0x50] sm:$0xff]  ;;  %v6349_v17 = vpack.c.bf16 %v392_v12, %v391_v11  ;;  %v147_v18 = vld [vmem:[#allocation2 + $0x58] sm:$0xff] }
  0x83   :  { %6595 = vmatpush3.bf16.msra.mxu1 %v6337_v3  ;;  %6342 = vmatprep.subr.bf16.mxu0 %v6341_v7  ;;  %v138_v16 = vld [vmem:[#allocation2 + $0x10] sm:$0xff]  ;;  %v139_v19 = vld [vmem:[#allocation2 + $0x18] sm:$0xff]  ;;  %v148_v20 = vld [vmem:[#allocation2 + $0x60] sm:$0xff] }
  0x84   :  { %6594 = vmatprep.subr.bf16.mxu1 %v6341_v7  ;;  %v140_v21 = vld [vmem:[#allocation2 + $0x20] sm:$0xff]  ;;  %v594_v23 = vld [vmem:[#allocation11 + $0x8] sm:$0xff]  ;;  %v595_v25 = vld [vmem:[#allocation11 + $0x10] sm:$0xff] }
  0x85   :  { %v593_v22 = vld [vmem:[#allocation11] sm:$0xff]  ;;  %v596_v26 = vld [vmem:[#allocation11 + $0x18] sm:$0xff]  ;;  %v149_v27 = vld [vmem:[#allocation2 + $0x68] sm:$0xff] }
  0x86   :  { %6344 = vmatpush3.bf16.msra.mxu0 %v6341_v7  ;;  %v6353_v24 = vpack.c.bf16 %v594_v23, %v593_v22  ;;  %v141_v28 = vld [vmem:[#allocation2 + $0x28] sm:$0xff]  ;;  %v150_v29 = vld [vmem:[#allocation2 + $0x70] sm:$0xff]  ;;  %v6357_v31 = vpack.c.bf16 %v596_v26, %v595_v25  ;;  %v151_v32 = vld [vmem:[#allocation2 + $0x78] sm:$0xff] }
  0x87   :  { %6596 = vmatpush3.bf16.msra.mxu1 %v6341_v7  ;;  %v142_v30 = vld [vmem:[#allocation2 + $0x30] sm:$0xff]  ;;  %v143_v33 = vld [vmem:[#allocation2 + $0x38] sm:$0xff]  ;;  %v152_v34 = vld [vmem:[#allocation5] sm:$0xff] }
  0x88   :  { %6346 = vmatprep.subr.bf16.mxu1 %v6345_v10  ;;  %6354 = vmatprep.subr.bf16.mxu0 %v6353_v24  ;;  %v168_v35 = vld [vmem:[#allocation7] sm:$0xff]  ;;  %v153_v36 = vld [vmem:[#allocation5 + $0x8] sm:$0xff]  ;;  %v154_v38 = vld [vmem:[#allocation5 + $0x10] sm:$0xff] }
  0x89   :  { %5938 = vmatmul.mubr.msk.f32.vlgmr.msra.gmra.mrb[0].mxu0 %vm195_vm0, %v137_v13  ;;  %v169_v37 = vld [vmem:[#allocation7 + $0x8] sm:$0xff]  ;;  %v170_v39 = vld [vmem:[#allocation7 + $0x10] sm:$0xff]  ;;  %v155_v40 = vld [vmem:[#allocation5 + $0x18] sm:$0xff] }
  0x8a   :  { %5950 = vmatmul.mubr.msk.f32.vlgmr.msra.gmra.mrb[0].mxu1 %vm195_vm0, %v145_v14  ;;  %5940 = vmatprep.mubr.msk.f32.mxu0 %vm195_vm0, %v138_v16  ;;  %v171_v41 = vld [vmem:[#allocation7 + $0x18] sm:$0xff]  ;;  %v156_v42 = vld [vmem:[#allocation5 + $0x20] sm:$0xff]  ;;  %v157_v44 = vld [vmem:[#allocation5 + $0x28] sm:$0xff] }
  0x8b   :  { %5952 = vmatprep.mubr.msk.f32.mxu1 %vm195_vm0, %v146_v15  ;;  %6348 = vmatpush3.bf16.msra.mxu1 %v6345_v10  ;;  %v172_v43 = vld [vmem:[#allocation7 + $0x20] sm:$0xff]  ;;  %v173_v45 = vld [vmem:[#allocation7 + $0x28] sm:$0xff]  ;;  %v158_v46 = vld [vmem:[#allocation5 + $0x30] sm:$0xff] }
  0x8c   :  { %6350 = vmatprep.subr.bf16.mxu1 %v6349_v17  ;;  %6356 = vmatpush3.bf16.msra.mxu0 %v6353_v24  ;;  %v174_v47 = vld [vmem:[#allocation7 + $0x30] sm:$0xff]  ;;  %v159_v48 = vld [vmem:[#allocation5 + $0x38] sm:$0xff]  ;;  %v160_v50 = vld [vmem:[#allocation5 + $0x40] sm:$0xff] }
  0x8d   :  { %5941 = vmatmul.mubr.msk.f32.gmra.mrb[2].mxu0 %vm195_vm0, %v139_v19  ;;  %6358 = vmatprep.subr.bf16.mxu0 %v6357_v31  ;;  %v175_v49 = vld [vmem:[#allocation7 + $0x38] sm:$0xff]  ;;  %v176_v51 = vld [vmem:[#allocation7 + $0x40] sm:$0xff]  ;;  %v161_v52 = vld [vmem:[#allocation5 + $0x48] sm:$0xff] }
  0x8e   :  { %5953 = vmatmul.mubr.msk.f32.gmra.mrb[2].mxu1 %vm195_vm0, %v147_v18  ;;  %5943 = vmatprep.mubr.msk.f32.mxu0 %vm195_vm0, %v140_v21  ;;  %v177_v53 = vld [vmem:[#allocation7 + $0x48] sm:$0xff]  ;;  %v162_v54 = vld [vmem:[#allocation5 + $0x50] sm:$0xff]  ;;  %v163_v56 = vld [vmem:[#allocation5 + $0x58] sm:$0xff] }
  0x8f   :  { %5955 = vmatprep.mubr.msk.f32.mxu1 %vm195_vm0, %v148_v20  ;;  %6352 = vmatpush3.bf16.msra.mxu1 %v6349_v17  ;;  %v178_v55 = vld [vmem:[#allocation7 + $0x50] sm:$0xff]  ;;  %v179_v57 = vld [vmem:[#allocation7 + $0x58] sm:$0xff]  ;;  %v164_v58 = vld [vmem:[#allocation5 + $0x60] sm:$0xff] }
  0x90   :  { %6360 = vmatpush3.bf16.msra.mxu0 %v6357_v31  ;;  %v180_v59 = vld [vmem:[#allocation7 + $0x60] sm:$0xff]  ;;  %v165_v60 = vld [vmem:[#allocation5 + $0x68] sm:$0xff]  ;;  %v166_v62 = vld [vmem:[#allocation5 + $0x70] sm:$0xff] }
  0x91   :  { %5944 = vmatmul.mubr.msk.f32.gmra.mrb[4].mxu0 %vm195_vm0, %v141_v28  ;;  %v181_v61 = vld [vmem:[#allocation7 + $0x68] sm:$0xff]  ;;  %v167_v63 = vld [vmem:[#allocation5 + $0x78] sm:$0xff]  ;;  %v182_v0 = vld [vmem:[#allocation7 + $0x70] sm:$0xff] }
  0x92   :  { %5956 = vmatmul.mubr.msk.f32.gmra.mrb[4].mxu1 %vm195_vm0, %v149_v27  ;;  %5946 = vmatprep.mubr.msk.f32.mxu0 %vm195_vm0, %v142_v30  ;;  %v183_v1 = vld [vmem:[#allocation7 + $0x78] sm:$0xff]  ;;  %v7479_v2 = vld [vmem:[%s8919_s4] ss:$0 sm:$0xff]  ;;  %s7230_s4 = smov 64   ;;  %vm7542_vm1 = vmpackc.low %vm195_vm0, %vm195_vm0 }
  0x93   :  { %5958 = vmatprep.mubr.msk.f32.mxu1 %vm195_vm0, %v150_v29  ;;  %v7521_v26 = vld [vmem:[%s8921_s6] ss:$0 sm:$0xff]  ;;  %s7231_s6 = smov 32  }
  0x95   :  { %5947 = vmatmul.mubr.msk.f32.gmra.mrb[6].mxu0 %vm195_vm0, %v143_v33 }
  0x96   :  { %5959 = vmatmul.mubr.msk.f32.gmra.mrb[6].mxu1 %vm195_vm0, %v151_v32  ;;  %6001 = vmatprep.mubr.msk.f32.mxu0 %vm195_vm0, %v168_v35 }
  0x97   :  { %5969 = vmatprep.mubr.msk.f32.mxu1 %vm195_vm0, %v152_v34 }
  0x99   :  { %6002 = vmatmul.mubr.msk.f32.vlgmr.msra.gmra.mrb[8].mxu0 %vm195_vm0, %v169_v37 }
  0x9a   :  { %5970 = vmatmul.mubr.msk.f32.vlgmr.msra.gmra.mrb[8].mxu1 %vm195_vm0, %v153_v36  ;;  %6004 = vmatprep.mubr.msk.f32.mxu0 %vm195_vm0, %v170_v39 }
  0x9b   :  { %5972 = vmatprep.mubr.msk.f32.mxu1 %vm195_vm0, %v154_v38 }
  0x9d   :  { %6005 = vmatmul.mubr.msk.f32.gmra.mrb[10].mxu0 %vm195_vm0, %v171_v41 }
  0x9e   :  { %5973 = vmatmul.mubr.msk.f32.gmra.mrb[10].mxu1 %vm195_vm0, %v155_v40  ;;  %6007 = vmatprep.mubr.msk.f32.mxu0 %vm195_vm0, %v172_v43 }
  0x9f   :  { %5975 = vmatprep.mubr.msk.f32.mxu1 %vm195_vm0, %v156_v42 }
  0xa1   :  { %6008 = vmatmul.mubr.msk.f32.gmra.mrb[12].mxu0 %vm195_vm0, %v173_v45 }
  0xa2   :  { %5976 = vmatmul.mubr.msk.f32.gmra.mrb[12].mxu1 %vm195_vm0, %v157_v44  ;;  %6010 = vmatprep.mubr.msk.f32.mxu0 %vm195_vm0, %v174_v47 }
  0xa3   :  { %5978 = vmatprep.mubr.msk.f32.mxu1 %vm195_vm0, %v158_v46 }
  0xa5   :  { %6011 = vmatmul.mubr.msk.f32.gmra.mrb[14].mxu0 %vm195_vm0, %v175_v49 }
  0xa6   :  { %5979 = vmatmul.mubr.msk.f32.gmra.mrb[14].mxu1 %vm195_vm0, %v159_v48  ;;  %6013 = vmatprep.mubr.msk.f32.mxu0 %vm195_vm0, %v176_v51 }
  0xa7   :  { %5981 = vmatprep.mubr.msk.f32.mxu1 %vm195_vm0, %v160_v50 }
  0xa9   :  { %6014 = vmatmul.mubr.msk.f32.gmra.mrb[16].mxu0 %vm195_vm0, %v177_v53 }
  0xaa   :  { %5982 = vmatmul.mubr.msk.f32.gmra.mrb[16].mxu1 %vm195_vm0, %v161_v52  ;;  %6016 = vmatprep.mubr.msk.f32.mxu0 %vm195_vm0, %v178_v55 }
  0xab   :  { %5984 = vmatprep.mubr.msk.f32.mxu1 %vm195_vm0, %v162_v54 }
  0xad   :  { %6017 = vmatmul.mubr.msk.f32.gmra.mrb[18].mxu0 %vm195_vm0, %v179_v57 }
  0xae   :  { %5985 = vmatmul.mubr.msk.f32.gmra.mrb[18].mxu1 %vm195_vm0, %v163_v56  ;;  %6019 = vmatprep.mubr.msk.f32.mxu0 %vm195_vm0, %v180_v59 }
  0xaf   :  { %5987 = vmatprep.mubr.msk.f32.mxu1 %vm195_vm0, %v164_v58 }
  0xb1   :  { %6020 = vmatmul.mubr.msk.f32.gmra.mrb[20].mxu0 %vm195_vm0, %v181_v61 }
  0xb2   :  { %5988 = vmatmul.mubr.msk.f32.gmra.mrb[20].mxu1 %vm195_vm0, %v165_v60  ;;  %6022 = vmatprep.mubr.msk.f32.mxu0 %vm195_vm0, %v182_v0 }
  0xb3   :  { %5990 = vmatprep.mubr.msk.f32.mxu1 %vm195_vm0, %v166_v62 }
  0xb5   :  { %6023 = vmatmul.mubr.msk.f32.gmra.mrb[22].mxu0 %vm195_vm0, %v183_v1 }
  0xb6   :  { %5991 = vmatmul.mubr.msk.f32.gmra.mrb[22].mxu1 %vm195_vm0, %v167_v63 }
 0x15c   :  { %v5939_v3 = vpop.f32.mrb[0].mxu0 }
 0x15d   :  { %v5951_v4 = vpop.f32.mrb[0].mxu1  ;;  %v7482_v5 = vadd.f32 %v5939_v3, %v7479_v2  ;;  %v310_v6 = vpop.f32.mrb[1].mxu0 }
 0x15e   :  { %v350_v7 = vpop.f32.mrb[1].mxu1  ;;  %v7485_v8 = vadd.f32 %v7479_v2, %v310_v6  ;;  %v7491_v10 = vadd.f32 %v5951_v4, %v7479_v2 }
 0x15f   :  { %v7488_v9 = vadd.f32 %v7479_v2, %v350_v7  ;;  %1704 = vrot.lane.b32.xlu0 %v7482_v5, %s7229_s7 }
 0x160   :  { %1702 = vrot.lane.b32.xlu1 %v7485_v8, %s7229_s7  ;;  %v5942_v12 = vpop.f32.mrb[2].mxu0  ;;  %6029 = vmatprep.mubr.msk.f32.mxu1 %vm195_vm0, %v7485_v8 }
 0x161   :  { %v5954_v11 = vpop.f32.mrb[2].mxu1  ;;  %6057 = vmatprep.mubr.msk.f32.mxu0 %vm195_vm0, %v7488_v9  ;;  %v320_v14 = vpop.f32.mrb[3].mxu0  ;;  %v7516_v25 = vadd.f32 %v5942_v12, %v7479_v2 }
 0x162   :  { %v360_v13 = vpop.f32.mrb[3].mxu1  ;;  %v7504_v15 = vadd.f32 %v7479_v2, %v320_v14  ;;  %v7532_v31 = vadd.f32 %v5954_v11, %v7479_v2 }
 0x163   :  { %2068 = vrot.lane.b32.xlu0 %v7491_v10, %s7229_s7  ;;  %v7509_v20 = vadd.f32 %v7479_v2, %v360_v13 }
 0x164   :  { %2066 = vrot.lane.b32.xlu1 %v7488_v9, %s7229_s7  ;;  %v5945_v17 = vpop.f32.mrb[4].mxu0 }
 0x165   :  { %v5957_v16 = vpop.f32.mrb[4].mxu1  ;;  %v330_v19 = vpop.f32.mrb[5].mxu0  ;;  %v7526_v27 = vadd.f32 %v5945_v17, %v7479_v2 }
 0x166   :  { %v370_v18 = vpop.f32.mrb[5].mxu1  ;;  %v7536_v33 = vadd.f32 %v5957_v16, %v7479_v2  ;;  %v7552_v40 = vadd.f32 %v7479_v2, %v330_v19 }
 0x167   :  { %1793 = vrot.lane.b32.xlu0 %v7504_v15, %s7229_s7  ;;  %v7570_v48 = vadd.f32 %v7479_v2, %v370_v18 }
 0x168   :  { %2638 = vrot.lane.b32.xlu1 %v7485_v8, %s7230_s4  ;;  %v5948_v22 = vpop.f32.mrb[6].mxu0 }
 0x169   :  { %v5960_v21 = vpop.f32.mrb[6].mxu1  ;;  %v340_v24 = vpop.f32.mrb[7].mxu0  ;;  %v7586_v56 = vadd.f32 %v5948_v22, %v7479_v2 }
 0x16a   :  { %v380_v23 = vpop.f32.mrb[7].mxu1  ;;  %v7562_v42 = vadd.f32 %v7479_v2, %v340_v24  ;;  %v7605_v63 = vadd.f32 %v5960_v21, %v7479_v2 }
 0x16b   :  { %2157 = vrot.lane.b32.xlu0 %v7509_v20, %s7229_s7  ;;  %v7582_v53 = vadd.f32 %v7479_v2, %v380_v23 }
 0x16c   :  { %1795 = vrot.lane.b32.xlu1 %v7516_v25, %s7229_s7 }
 0x16d   :  { %v5971_v28 = vpop.f32.mrb[8].mxu1 }
 0x16e   :  { %v520_v29 = vadd.f32 %v5971_v28, %v7521_v26  ;;  %v514_v30 = vpop.f32.mrb[9].mxu1 }
 0x16f   :  { %v515_v32 = vadd.f32 %v7521_v26, %v514_v30  ;;  %1886 = vrot.lane.b32.xlu0 %v7526_v27, %s7229_s7  ;;  %v5511_v30 = vld [vmem:[#allocation13] ss:$0 sm:$0xff] }
 0x170   :  { %2159 = vrot.lane.b32.xlu1 %v7532_v31, %s7229_s7 }
 0x171   :  { %v6361_v35 = vpack.c.bf16 %v520_v29, %v515_v32  ;;  %v5974_v36 = vpop.f32.mrb[10].mxu1  ;;  %v7548_v37 = vpack.i.bf16 %v520_v29, %v515_v32 }
 0x172   :  { %v530_v38 = vadd.f32 %v5974_v36, %v7521_v26  ;;  %v524_v39 = vpop.f32.mrb[11].mxu1 }
 0x173   :  { %6363 = vmatprep.subr.msk.bf16.mxu1 %vm7542_vm1, %v6361_v35  ;;  %v525_v41 = vadd.f32 %v7521_v26, %v524_v39  ;;  %2250 = vrot.lane.b32.xlu0 %v7536_v33, %s7229_s7 }
 0x174   :  { %6366 = vmatpush3.bf16.xpose.msk.msra.mxu1 %vm7542_vm1, %v6361_v35  ;;  %1884 = vrot.lane.b32.xlu1 %v7552_v40, %s7229_s7 }
 0x175   :  { %v5977_v43 = vpop.f32.mrb[12].mxu1  ;;  %v6367_v44 = vpack.c.bf16 %v530_v38, %v525_v41  ;;  %v7566_v45 = vpack.i.bf16 %v530_v38, %v525_v41 }
 0x176   :  { %v540_v46 = vadd.f32 %v5977_v43, %v7521_v26  ;;  %v534_v47 = vpop.f32.mrb[13].mxu1 }
 0x177   :  { %v535_v49 = vadd.f32 %v7521_v26, %v534_v47  ;;  %6369 = vmatprep.subr.msk.bf16.mxu1 %vm7542_vm1, %v6367_v44  ;;  %1975 = vrot.lane.b32.xlu0 %v7562_v42, %s7229_s7 }
 0x178   :  { %2248 = vrot.lane.b32.xlu1 %v7570_v48, %s7229_s7 }
 0x179   :  { %v5980_v50 = vpop.f32.mrb[14].mxu1  ;;  %v6373_v51 = vpack.c.bf16 %v540_v46, %v535_v49  ;;  %v7579_v52 = vpack.i.bf16 %v540_v46, %v535_v49 }
 0x17a   :  { %v550_v54 = vadd.f32 %v5980_v50, %v7521_v26  ;;  %v544_v55 = vpop.f32.mrb[15].mxu1 }
 0x17b   :  { %6030 = vmatmul.mubr.msk.f32.vlgmr.msra.gmra.mrb[24].mxu1 %vm195_vm0, %v7482_v5  ;;  %v545_v57 = vadd.f32 %v7521_v26, %v544_v55  ;;  %2339 = vrot.lane.b32.xlu0 %v7582_v53, %s7229_s7 }
 0x17c   :  { %6372 = vmatpush3.bf16.xpose.msk.msra.mxu1 %vm7542_vm1, %v6367_v44  ;;  %6036 = vmatprep.mubr.msk.f32.mxu1 %vm195_vm0, %v7504_v15 }
 0x17d   :  { %v5983_v58 = vpop.f32.mrb[16].mxu1  ;;  %1977 = vrot.lane.b32.xlu1 %v7586_v56, %s7229_s7  ;;  %v6379_v59 = vpack.c.bf16 %v550_v54, %v545_v57  ;;  %v7599_v60 = vpack.i.bf16 %v550_v54, %v545_v57  ;;  %6375 = vmatprep.subr.msk.bf16.mxu1 %vm7542_vm1, %v6373_v51 }
 0x17e   :  { %v560_v61 = vadd.f32 %v5983_v58, %v7521_v26  ;;  %v554_v62 = vpop.f32.mrb[17].mxu1 }
 0x17f   :  { %v555_v0 = vadd.f32 %v7521_v26, %v554_v62  ;;  %6613 = vrot.lane.b32.xlu0 %v7548_v37, %s7229_s7 }
 0x181   :  { %2341 = vrot.lane.b32.xlu1 %v7605_v63, %s7229_s7  ;;  %v5986_v1 = vpop.f32.mrb[18].mxu1  ;;  %v6385_v3 = vpack.c.bf16 %v560_v61, %v555_v0  ;;  %v7612_v4 = vpack.i.bf16 %v560_v61, %v555_v0 }
 0x182   :  { %v570_v6 = vadd.f32 %v5986_v1, %v7521_v26  ;;  %v564_v7 = vpop.f32.mrb[19].mxu1 }
 0x183   :  { %6037 = vmatmul.mubr.msk.f32.vlgmr.msra.gmra.mrb[26].mxu1 %vm195_vm0, %v7516_v25  ;;  %6387 = vmatprep.subr.msk.bf16.mxu0 %vm7542_vm1, %v6385_v3  ;;  %v565_v2 = vadd.f32 %v7521_v26, %v564_v7 }
 0x184   :  { %6390 = vmatpush3.bf16.xpose.msk.msra.mxu0 %vm7542_vm1, %v6385_v3  ;;  %6618 = vrot.lane.b32.xlu0 %v7548_v37, %s7230_s4 }
 0x185   :  { %6378 = vmatpush3.bf16.xpose.msk.msra.mxu1 %vm7542_vm1, %v6373_v51  ;;  %6043 = vmatprep.mubr.msk.f32.mxu1 %vm195_vm0, %v7552_v40  ;;  %v5989_v11 = vpop.f32.mrb[20].mxu1  ;;  %v6391_v12 = vpack.c.bf16 %v570_v6, %v565_v2  ;;  %v7628_v13 = vpack.i.bf16 %v570_v6, %v565_v2 }
 0x186   :  { %v580_v14 = vadd.f32 %v5989_v11, %v7521_v26  ;;  %6628 = vrot.lane.b32.xlu1 %v7566_v45, %s7230_s4  ;;  %v574_v16 = vpop.f32.mrb[21].mxu1  ;;  %6381 = vmatprep.subr.msk.bf16.mxu1 %vm7542_vm1, %v6379_v59 }
 0x187   :  { %v575_v17 = vadd.f32 %v7521_v26, %v574_v16 }
 0x188   :  { %6623 = vrot.lane.b32.xlu0 %v7566_v45, %s7229_s7 }
 0x189   :  { %v6397_v18 = vpack.c.bf16 %v580_v14, %v575_v17  ;;  %v5992_v19 = vpop.f32.mrb[22].mxu1  ;;  %v7638_v21 = vpack.i.bf16 %v580_v14, %v575_v17 }
 0x18a   :  { %6633 = vrot.lane.b32.xlu1 %v7579_v52, %s7229_s7  ;;  %v590_v22 = vadd.f32 %v5992_v19, %v7521_v26  ;;  %v584_v23 = vpop.f32.mrb[23].mxu1 }
 0x18b   :  { %6058 = vmatmul.mubr.msk.f32.vlgmr.msra.gmra.mrb[24].mxu0 %vm195_vm0, %v7491_v10  ;;  %6399 = vmatprep.subr.msk.bf16.mxu0 %vm7542_vm1, %v6397_v18  ;;  %v585_v24 = vadd.f32 %v7521_v26, %v584_v23  ;;  %v6003_v26 = vpop.f32.mrb[8].mxu0 }
 0x18c   :  { %6044 = vmatmul.mubr.msk.f32.vlgmr.msra.gmra.mrb[28].mxu1 %vm195_vm0, %v7526_v27  ;;  %6402 = vmatpush3.bf16.xpose.msk.msra.mxu0 %vm7542_vm1, %v6397_v18  ;;  %v724_v32 = vadd.f32 %v6003_v26, %v5511_v30  ;;  %v718_v35 = vpop.f32.mrb[9].mxu0 }
 0x18d   :  { %6071 = vmatprep.mubr.msk.f32.mxu0 %vm195_vm0, %v7570_v48  ;;  %2640 = vrot.lane.b32.xlu0 %v7482_v5, %s7230_s4  ;;  %v6403_v28 = vpack.c.bf16 %v590_v22, %v585_v24  ;;  %v7656_v29 = vpack.i.bf16 %v590_v22, %v585_v24  ;;  %v719_v36 = vadd.f32 %v5511_v30, %v718_v35 }
 0x18e   :  { %6384 = vmatpush3.bf16.xpose.msk.msra.mxu1 %vm7542_vm1, %v6379_v59  ;;  %6050 = vmatprep.mubr.msk.f32.mxu1 %vm195_vm0, %v7562_v42 }
 0x18f   :  { %6643 = vrot.lane.b32.xlu1 %v7599_v60, %s7229_s7  ;;  %6393 = vmatprep.subr.msk.bf16.mxu1 %vm7542_vm1, %v6391_v12  ;;  %v7755_v39 = vpack.c.bf16 %v724_v32, %v719_v36 }
 0x191   :  { %6638 = vrot.lane.b32.xlu0 %v7579_v52, %s7230_s4 }
 0x193   :  { %6648 = vrot.lane.b32.xlu1 %v7599_v60, %s7230_s4  ;;  %6072 = vmatmul.mubr.msk.f32.vlgmr.msra.gmra.mrb[26].mxu0 %vm195_vm0, %v7536_v33 }
 0x195   :  { %6051 = vmatmul.mubr.msk.f32.vlgmr.msra.gmra.mrb[30].mxu1 %vm195_vm0, %v7586_v56  ;;  %6653 = vrot.lane.b32.xlu0 %v7612_v4, %s7229_s7 }
 0x196   :  { %6396 = vmatpush3.bf16.xpose.msk.msra.mxu1 %vm7542_vm1, %v6391_v12  ;;  %6064 = vmatprep.mubr.msk.f32.mxu1 %vm195_vm0, %v7509_v20 }
 0x197   :  { %2731 = vrot.lane.b32.xlu1 %v7516_v25, %s7230_s4  ;;  %6405 = vmatprep.subr.msk.bf16.mxu1 %vm7542_vm1, %v6403_v28 }
 0x199   :  { %2729 = vrot.lane.b32.xlu0 %v7504_v15, %s7230_s4 }
 0x19b   :  { %6658 = vrot.lane.b32.xlu1 %v7628_v13, %s7229_s7 }
 0x19d   :  { %6065 = vmatmul.mubr.msk.f32.vlgmr.msra.gmra.mrb[32].mxu1 %vm195_vm0, %v7532_v31  ;;  %6663 = vrot.lane.b32.xlu0 %v7638_v21, %s7229_s7 }
 0x19e   :  { %6408 = vmatpush3.bf16.xpose.msk.msra.mxu1 %vm7542_vm1, %v6403_v28  ;;  %6078 = vmatprep.mubr.msk.f32.mxu1 %vm195_vm0, %v7582_v53 }
 0x19f   :  { %2820 = vrot.lane.b32.xlu1 %v7552_v40, %s7230_s4 }
 0x1a1   :  { %6668 = vrot.lane.b32.xlu0 %v7612_v4, %s7230_s4 }
 0x1a3   :  { %6673 = vrot.lane.b32.xlu1 %v7656_v29, %s7229_s7 }
 0x1a5   :  { %6079 = vmatmul.mubr.msk.f32.vlgmr.msra.gmra.mrb[34].mxu1 %vm195_vm0, %v7605_v63  ;;  %2822 = vrot.lane.b32.xlu0 %v7526_v27, %s7230_s4 }
 0x1a7   :  { %6678 = vrot.lane.b32.xlu1 %v7628_v13, %s7230_s4 }
 0x1a9   :  { %2911 = vrot.lane.b32.xlu0 %v7562_v42, %s7230_s4 }
 0x1ab   :  { %2913 = vrot.lane.b32.xlu1 %v7586_v56, %s7230_s4 }
 0x1ad   :  { %6683 = vrot.lane.b32.xlu0 %v7638_v21, %s7230_s4 }
 0x1af   :  { %3002 = vrot.lane.b32.xlu1 %v7488_v9, %s7230_s4 }
 0x1b1   :  { %3004 = vrot.lane.b32.xlu0 %v7491_v10, %s7230_s4 }
 0x1b3   :  { %3095 = vrot.lane.b32.xlu1 %v7532_v31, %s7230_s4 }
 0x1b5   :  { %3093 = vrot.lane.b32.xlu0 %v7509_v20, %s7230_s4 }
 0x1b7   :  { %3184 = vrot.lane.b32.xlu1 %v7570_v48, %s7230_s4 }
 0x1b9   :  { %6688 = vrot.lane.b32.xlu0 %v7548_v37, %s7231_s6 }
 0x1bb   :  { %6693 = vrot.lane.b32.xlu1 %v7566_v45, %s7231_s6 }
 0x1bd   :  { %3186 = vrot.lane.b32.xlu0 %v7536_v33, %s7230_s4 }
 0x1bf   :  { %3277 = vrot.lane.b32.xlu1 %v7605_v63, %s7230_s4 }
 0x1c1   :  { %3275 = vrot.lane.b32.xlu0 %v7582_v53, %s7230_s4 }
 0x1c3   :  { %6703 = vrot.lane.b32.xlu1 %v7656_v29, %s7230_s4 }
 0x1c5   :  { %6698 = vrot.lane.b32.xlu0 %v7579_v52, %s7231_s6 }
 0x1c7   :  { %3574 = vrot.lane.b32.xlu1 %v7485_v8, %s7231_s6 }
 0x1c9   :  { %3576 = vrot.lane.b32.xlu0 %v7482_v5, %s7231_s6  ;;  %v6006_v5 = vpop.f32.mrb[10].mxu0 }
 0x1ca   :  { %v734_v38 = vadd.f32 %v6006_v5, %v5511_v30 }
 0x1cb   :  { %6708 = vrot.lane.b32.xlu1 %v7599_v60, %s7231_s6 }
 0x1cd   :  { %3665 = vrot.lane.b32.xlu0 %v7504_v15, %s7231_s6  ;;  %v728_v15 = vpop.f32.mrb[11].mxu0 }
 0x1ce   :  { %v6009_v41 = vpop.f32.mrb[12].mxu0 }
 0x1cf   :  { %3667 = vrot.lane.b32.xlu1 %v7516_v25, %s7231_s6  ;;  %v729_v25 = vadd.f32 %v5511_v30, %v728_v15  ;;  %v744_v43 = vadd.f32 %v6009_v41, %v5511_v30  ;;  %v738_v44 = vpop.f32.mrb[13].mxu0 }
 0x1d0   :  { %v739_v47 = vadd.f32 %v5511_v30, %v738_v44 }
 0x1d1   :  { %6713 = vrot.lane.b32.xlu0 %v7612_v4, %s7231_s6  ;;  %v7750_v8 = vpop.permute.xlu0 %1704  ;;  %v7761_v46 = vpack.c.bf16 %v734_v38, %v729_v25 }
 0x1d2   :  { %v1703_v37 = vpop.permute.xlu1 %1702  ;;  %v7767_v51 = vpack.c.bf16 %v744_v43, %v739_v47 }
 0x1d3   :  { %3756 = vrot.lane.b32.xlu1 %v7552_v40, %s7231_s6  ;;  %6085 = vmatprep.mubr.msk.f32.mxu0 %vm195_vm0, %v1703_v37  ;;  %v6012_v40 = vpop.f32.mrb[14].mxu0 }
 0x1d4   :  { %v748_v50 = vpop.f32.mrb[15].mxu0  ;;  %8962 = vst [vmem:[#allocation24_spill] sm:$0xff] %v7767_v51  ;;  %v754_v52 = vadd.f32 %v6012_v40, %v5511_v30 }
 0x1d5   :  { %3758 = vrot.lane.b32.xlu0 %v7526_v27, %s7231_s6  ;;  %v7759_v45 = vpop.permute.xlu0 %2068  ;;  %v749_v54 = vadd.f32 %v5511_v30, %v748_v50  ;;  %v6015_v55 = vpop.f32.mrb[16].mxu0 }
 0x1d6   :  { %v7765_v49 = vpop.permute.xlu1 %2066  ;;  %v764_v27 = vadd.f32 %v6015_v55, %v5511_v30  ;;  %v758_v57 = vpop.f32.mrb[17].mxu0 }
 0x1d7   :  { %6718 = vrot.lane.b32.xlu1 %v7628_v13, %s7231_s6  ;;  %v7771_v59 = vpack.c.bf16 %v754_v52, %v749_v54  ;;  %v759_v60 = vadd.f32 %v5511_v30, %v758_v57  ;;  %v6018_v61 = vpop.f32.mrb[18].mxu0 }
 0x1d8   :  { %v774_v0 = vadd.f32 %v6018_v61, %v5511_v30  ;;  %v768_v1 = vpop.f32.mrb[19].mxu0 }
 0x1d9   :  { %3847 = vrot.lane.b32.xlu0 %v7562_v42, %s7231_s6  ;;  %v1794_v58 = vpop.permute.xlu0 %1793  ;;  %8963 = vst [vmem:[#allocation25_spill] sm:$0xff] %v7771_v59  ;;  %v7778_v3 = vpack.c.bf16 %v764_v27, %v759_v60  ;;  %v769_v4 = vadd.f32 %v5511_v30, %v768_v1  ;;  %v6021_v42 = vpop.f32.mrb[20].mxu0 }
 0x1da   :  { %v7775_v62 = vpop.permute.xlu1 %2638  ;;  %6092 = vmatprep.mubr.msk.f32.mxu1 %vm195_vm0, %v1794_v58  ;;  %v784_v6 = vadd.f32 %v6021_v42, %v5511_v30  ;;  %v778_v7 = vpop.f32.mrb[21].mxu0 }
 0x1db   :  { %3849 = vrot.lane.b32.xlu1 %v7586_v56, %s7231_s6  ;;  %8964 = vst [vmem:[#allocation26_spill] sm:$0xff] %v7778_v3  ;;  %v7784_v11 = vpack.c.bf16 %v774_v0, %v769_v4  ;;  %v779_v56 = vadd.f32 %v5511_v30, %v778_v7  ;;  %v6024_v12 = vpop.f32.mrb[22].mxu0 }
 0x1dc   :  { %v794_v14 = vadd.f32 %v6024_v12, %v5511_v30  ;;  %v788_v16 = vpop.f32.mrb[23].mxu0 }
 0x1dd   :  { %6723 = vrot.lane.b32.xlu0 %v7638_v21, %s7231_s6  ;;  %v7782_v2 = vpop.permute.xlu0 %2157  ;;  %8965 = vst [vmem:[#allocation27_spill] sm:$0xff] %v7784_v11  ;;  %v7788_v17 = vpack.c.bf16 %v784_v6, %v779_v56  ;;  %v789_v18 = vadd.f32 %v5511_v30, %v788_v16 }
 0x1de   :  { %v1796_v13 = vpop.permute.xlu1 %1795 }
 0x1df   :  { %3938 = vrot.lane.b32.xlu1 %v7488_v9, %s7231_s6  ;;  %8966 = vst [vmem:[#allocation28_spill] sm:$0xff] %v7788_v17  ;;  %v7792_v21 = vpack.c.bf16 %v794_v14, %v789_v18 }
 0x1e1   :  { %3940 = vrot.lane.b32.xlu0 %v7491_v10, %s7231_s6  ;;  %v1887_v19 = vpop.permute.xlu0 %1886  ;;  %8967 = vst [vmem:[#allocation29_spill] sm:$0xff] %v7792_v21 }
 0x1e2   :  { %v7796_v22 = vpop.permute.xlu1 %2159 }
 0x1e3   :  { %6728 = vrot.lane.b32.xlu1 %v7656_v29, %s7231_s6 }
 0x1e5   :  { %4029 = vrot.lane.b32.xlu0 %v7509_v20, %s7231_s6  ;;  %v7800_v9 = vpop.permute.xlu0 %2250 }
 0x1e6   :  { %v1885_v23 = vpop.permute.xlu1 %1884 }
 0x1e7   :  { %4031 = vrot.lane.b32.xlu1 %v7532_v31, %s7231_s6 }
 0x1e9   :  { %4120 = vrot.lane.b32.xlu0 %v7570_v48, %s7231_s6  ;;  %v1976_v10 = vpop.permute.xlu0 %1975 }
 0x1ea   :  { %v7808_v24 = vpop.permute.xlu1 %2248 }
 0x1eb   :  { %4122 = vrot.lane.b32.xlu1 %v7536_v33, %s7231_s6 }
 0x1ed   :  { %4211 = vrot.lane.b32.xlu0 %v7582_v53, %s7231_s6  ;;  %v7812_v28 = vpop.permute.xlu0 %2339 }
 0x1ef   :  { %4213 = vrot.lane.b32.xlu1 %v7605_v63, %s7231_s6  ;;  %v1978_v20 = vpop.permute.xlu1 %1977 }
 0x1f1   :  { %v6614_v31 = vpop.permute.xlu0 %6613 }
 0x1f2   :  { %v6616_v29 = vunpack.i.h.bf16 %v6614_v31  ;;  %v6615_v26 = vunpack.i.l.bf16 %v6614_v31 }
 0x1f3   :  { %v7816_v30 = vpop.permute.xlu1 %2341 }
 0x1f4   :  { %v6409_v48 = vpack.c.bf16 %v6616_v29, %v6615_v26 }
 0x1f6   :  { %v6619_v32 = vpop.permute.xlu0 %6618  ;;  %6411 = vmatprep.subr.msk.bf16.mxu0 %vm7542_vm1, %v6409_v48 }
 0x1f7   :  { %6414 = vmatpush3.bf16.xpose.msk.msra.mxu0 %vm7542_vm1, %v6409_v48  ;;  %v6621_v0 = vunpack.i.h.bf16 %v6619_v32  ;;  %v6620_v4 = vunpack.i.l.bf16 %v6619_v32 }
 0x1f8   :  { %v7820_v33 = vpop.permute.xlu1 %6628 }
 0x1f9   :  { %v6630_v16 = vunpack.i.l.bf16 %v7820_v33 }
 0x1fa   :  { %v6624_v53 = vpop.permute.xlu0 %6623 }
 0x1fb   :  { %v6626_v35 = vunpack.i.h.bf16 %v6624_v53  ;;  %v6625_v36 = vunpack.i.l.bf16 %v6624_v53 }
 0x1fc   :  { %v6634_v63 = vpop.permute.xlu1 %6633 }
 0x1fd   :  { %v6415_v5 = vpack.c.bf16 %v6626_v35, %v6625_v36  ;;  %v6636_v37 = vunpack.i.h.bf16 %v6634_v63  ;;  %v6635_v38 = vunpack.i.l.bf16 %v6634_v63 }
 0x1fe   :  { %6086 = vmatmul.mubr.msk.f32.vlgmr.msra.gmra.mrb[28].mxu0 %vm195_vm0, %v7750_v8 }
 0x1ff   :  { %v6421_v15 = vpack.c.bf16 %v6636_v37, %v6635_v38  ;;  %v7824_v25 = vpop.permute.xlu0 %2640  ;;  %6417 = vmatprep.subr.msk.bf16.mxu1 %vm7542_vm1, %v6415_v5  ;;  %6099 = vmatprep.mubr.msk.f32.mxu0 %vm195_vm0, %v1885_v23 }
 0x200   :  { %6420 = vmatpush3.bf16.xpose.msk.msra.mxu1 %vm7542_vm1, %v6415_v5 }
 0x201   :  { %v6644_v41 = vpop.permute.xlu1 %6643  ;;  %6423 = vmatprep.subr.msk.bf16.mxu0 %vm7542_vm1, %v6421_v15 }
 0x202   :  { %v6646_v43 = vunpack.i.h.bf16 %v6644_v41  ;;  %v6645_v44 = vunpack.i.l.bf16 %v6644_v41  ;;  %6426 = vmatpush3.bf16.xpose.msk.msra.mxu0 %vm7542_vm1, %v6421_v15 }
 0x203   :  { %v6639_v47 = vpop.permute.xlu0 %6638 }
 0x204   :  { %v6427_v40 = vpack.c.bf16 %v6646_v43, %v6645_v44  ;;  %v6641_v23 = vunpack.i.h.bf16 %v6639_v47 }
 0x205   :  { %v7837_v8 = vpop.permute.xlu1 %6648 }
 0x206   :  { %6429 = vmatprep.subr.msk.bf16.mxu1 %vm7542_vm1, %v6427_v40  ;;  %v6650_v32 = vunpack.i.l.bf16 %v7837_v8 }
 0x207   :  { %v6654_v50 = vpop.permute.xlu0 %6653  ;;  %6093 = vmatmul.mubr.msk.f32.vlgmr.msra.gmra.mrb[36].mxu1 %vm195_vm0, %v1796_v13  ;;  %v6457_v13 = vpack.c.bf16 %v6621_v0, %v6620_v4 }
 0x208   :  { %v6656_v52 = vunpack.i.h.bf16 %v6654_v50  ;;  %v6655_v54 = vunpack.i.l.bf16 %v6654_v50  ;;  %6432 = vmatpush3.bf16.xpose.msk.msra.mxu1 %vm7542_vm1, %v6427_v40  ;;  %6106 = vmatprep.mubr.msk.f32.mxu1 %vm195_vm0, %v1976_v10  ;;  %v6640_v10 = vunpack.i.l.bf16 %v6639_v47 }
 0x209   :  { %v7845_v55 = vpop.permute.xlu1 %2731  ;;  %6100 = vmatmul.mubr.msk.f32.vlgmr.msra.gmra.mrb[30].mxu0 %vm195_vm0, %v1887_v19 }
 0x20a   :  { %v6433_v27 = vpack.c.bf16 %v6656_v52, %v6655_v54  ;;  %6113 = vmatprep.mubr.msk.f32.mxu0 %vm195_vm0, %v7765_v49  ;;  %v6469_v26 = vpack.c.bf16 %v6641_v23, %v6640_v10 }
 0x20b   :  { %v2730_v57 = vpop.permute.xlu0 %2729 }
 0x20c   :  { %6435 = vmatprep.subr.msk.bf16.mxu0 %vm7542_vm1, %v6433_v27 }
 0x20d   :  { %v6659_v58 = vpop.permute.xlu1 %6658  ;;  %6438 = vmatpush3.bf16.xpose.msk.msra.mxu0 %vm7542_vm1, %v6433_v27 }
 0x20e   :  { %v6661_v60 = vunpack.i.h.bf16 %v6659_v58  ;;  %v6660_v61 = vunpack.i.l.bf16 %v6659_v58 }
 0x20f   :  { %v6664_v1 = vpop.permute.xlu0 %6663  ;;  %6107 = vmatmul.mubr.msk.f32.vlgmr.msra.gmra.mrb[38].mxu1 %vm195_vm0, %v1978_v20 }
 0x210   :  { %v6439_v42 = vpack.c.bf16 %v6661_v60, %v6660_v61  ;;  %v6666_v6 = vunpack.i.h.bf16 %v6664_v1  ;;  %v6665_v7 = vunpack.i.l.bf16 %v6664_v1  ;;  %6120 = vmatprep.mubr.msk.f32.mxu1 %vm195_vm0, %v7782_v2  ;;  %v6631_v2 = vunpack.i.h.bf16 %v7820_v33 }
 0x211   :  { %v2821_v49 = vpop.permute.xlu1 %2820 }
 0x212   :  { %v6445_v56 = vpack.c.bf16 %v6666_v6, %v6665_v7  ;;  %6441 = vmatprep.subr.msk.bf16.mxu1 %vm7542_vm1, %v6439_v42  ;;  %v6463_v29 = vpack.c.bf16 %v6631_v2, %v6630_v16 }
 0x213   :  { %6444 = vmatpush3.bf16.xpose.msk.msra.mxu1 %vm7542_vm1, %v6439_v42  ;;  %v6669_v12 = vpop.permute.xlu0 %6668 }
 0x214   :  { %6114 = vmatmul.mubr.msk.f32.vlgmr.msra.gmra.mrb[32].mxu0 %vm195_vm0, %v7759_v45  ;;  %6447 = vmatprep.subr.msk.bf16.mxu0 %vm7542_vm1, %v6445_v56  ;;  %v6671_v33 = vunpack.i.h.bf16 %v6669_v12  ;;  %v6670_v53 = vunpack.i.l.bf16 %v6669_v12 }
 0x215   :  { %v6674_v14 = vpop.permute.xlu1 %6673  ;;  %6450 = vmatpush3.bf16.xpose.msk.msra.mxu0 %vm7542_vm1, %v6445_v56  ;;  %6127 = vmatprep.mubr.msk.f32.mxu0 %vm195_vm0, %v7808_v24 }
 0x216   :  { %v6676_v18 = vunpack.i.h.bf16 %v6674_v14  ;;  %v6675_v19 = vunpack.i.l.bf16 %v6674_v14  ;;  %6459 = vmatprep.subr.msk.bf16.mxu0 %vm7542_vm1, %v6457_v13 }
 0x217   :  { %v2823_v45 = vpop.permute.xlu0 %2822 }
 0x218   :  { %v6451_v20 = vpack.c.bf16 %v6676_v18, %v6675_v19 }
 0x219   :  { %v6679_v31 = vpop.permute.xlu1 %6678 }
 0x21a   :  { %6121 = vmatmul.mubr.msk.f32.vlgmr.msra.gmra.mrb[40].mxu1 %vm195_vm0, %v7796_v22  ;;  %6453 = vmatprep.subr.msk.bf16.mxu1 %vm7542_vm1, %v6451_v20  ;;  %v6651_v22 = vunpack.i.h.bf16 %v7837_v8  ;;  %v6680_v5 = vunpack.i.l.bf16 %v6679_v31 }
 0x21b   :  { %6456 = vmatpush3.bf16.xpose.msk.msra.mxu1 %vm7542_vm1, %v6451_v20  ;;  %6134 = vmatprep.mubr.msk.f32.mxu1 %vm195_vm0, %v7812_v28  ;;  %v2912_v24 = vpop.permute.xlu0 %2911 }
 0x21c   :  { %6465 = vmatprep.subr.msk.bf16.mxu1 %vm7542_vm1, %v6463_v29  ;;  %6128 = vmatmul.mubr.msk.f32.vlgmr.msra.gmra.mrb[34].mxu0 %vm195_vm0, %v7800_v9  ;;  %v6475_v36 = vpack.c.bf16 %v6651_v22, %v6650_v32  ;;  %v6481_v9 = vpack.c.bf16 %v6671_v33, %v6670_v53 }
 0x21d   :  { %v2914_v48 = vpop.permute.xlu1 %2913  ;;  %6462 = vmatpush3.bf16.xpose.msk.msra.mxu0 %vm7542_vm1, %v6457_v13  ;;  %6141 = vmatprep.mubr.msk.f32.mxu0 %vm195_vm0, %v7775_v62 }
 0x21e   :  { %6471 = vmatprep.subr.msk.bf16.mxu0 %vm7542_vm1, %v6469_v26 }
 0x21f   :  { %v6684_v28 = vpop.permute.xlu0 %6683 }
 0x220   :  { %v6686_v38 = vunpack.i.h.bf16 %v6684_v28  ;;  %v6685_v15 = vunpack.i.l.bf16 %v6684_v28 }
 0x221   :  { %v3003_v35 = vpop.permute.xlu1 %3002 }
 0x222   :  { %6135 = vmatmul.mubr.msk.f32.vlgmr.msra.gmra.mrb[42].mxu1 %vm195_vm0, %v7816_v30  ;;  %v6681_v30 = vunpack.i.h.bf16 %v6679_v31  ;;  %v6493_v44 = vpack.c.bf16 %v6686_v38, %v6685_v15 }
 0x223   :  { %6468 = vmatpush3.bf16.xpose.msk.msra.mxu1 %vm7542_vm1, %v6463_v29  ;;  %6148 = vmatprep.mubr.msk.f32.mxu1 %vm195_vm0, %v2730_v57  ;;  %v3005_v62 = vpop.permute.xlu0 %3004 }
 0x224   :  { %6477 = vmatprep.subr.msk.bf16.mxu1 %vm7542_vm1, %v6475_v36  ;;  %6142 = vmatmul.mubr.msk.f32.vlgmr.msra.gmra.mrb[36].mxu0 %vm195_vm0, %v7824_v25  ;;  %v6487_v43 = vpack.c.bf16 %v6681_v30, %v6680_v5 }
 0x225   :  { %v3096_v63 = vpop.permute.xlu1 %3095  ;;  %6474 = vmatpush3.bf16.xpose.msk.msra.mxu0 %vm7542_vm1, %v6469_v26  ;;  %6155 = vmatprep.mubr.msk.f32.mxu0 %vm195_vm0, %v2821_v49 }
 0x226   :  { %6483 = vmatprep.subr.msk.bf16.mxu0 %vm7542_vm1, %v6481_v9 }
 0x227   :  { %v3094_v37 = vpop.permute.xlu0 %3093 }
 0x229   :  { %v3185_v41 = vpop.permute.xlu1 %3184 }
 0x22a   :  { %6149 = vmatmul.mubr.msk.f32.vlgmr.msra.gmra.mrb[44].mxu1 %vm195_vm0, %v7845_v55 }
 0x22b   :  { %6480 = vmatpush3.bf16.xpose.msk.msra.mxu1 %vm7542_vm1, %v6475_v36  ;;  %6162 = vmatprep.mubr.msk.f32.mxu1 %vm195_vm0, %v2912_v24  ;;  %v6689_v25 = vpop.permute.xlu0 %6688 }
 0x22c   :  { %6489 = vmatprep.subr.msk.bf16.mxu1 %vm7542_vm1, %v6487_v43  ;;  %6156 = vmatmul.mubr.msk.f32.vlgmr.msra.gmra.mrb[38].mxu0 %vm195_vm0, %v2823_v45  ;;  %v6691_v8 = vunpack.i.h.bf16 %v6689_v25  ;;  %v6690_v50 = vunpack.i.l.bf16 %v6689_v25 }
 0x22d   :  { %v6694_v47 = vpop.permute.xlu1 %6693  ;;  %6486 = vmatpush3.bf16.xpose.msk.msra.mxu0 %vm7542_vm1, %v6481_v9  ;;  %6169 = vmatprep.mubr.msk.f32.mxu0 %vm195_vm0, %v3003_v35 }
 0x22e   :  { %6495 = vmatprep.subr.msk.bf16.mxu0 %vm7542_vm1, %v6493_v44  ;;  %v6505_v55 = vpack.c.bf16 %v6691_v8, %v6690_v50  ;;  %v6696_v57 = vunpack.i.h.bf16 %v6694_v47  ;;  %v6695_v58 = vunpack.i.l.bf16 %v6694_v47 }
 0x22f   :  { %v3187_v40 = vpop.permute.xlu0 %3186 }
 0x230   :  { %v6511_v7 = vpack.c.bf16 %v6696_v57, %v6695_v58 }
 0x231   :  { %v3278_v52 = vpop.permute.xlu1 %3277 }
 0x232   :  { %6163 = vmatmul.mubr.msk.f32.vlgmr.msra.gmra.mrb[46].mxu1 %vm195_vm0, %v2914_v48 }
 0x233   :  { %6492 = vmatpush3.bf16.xpose.msk.msra.mxu1 %vm7542_vm1, %v6487_v43  ;;  %6176 = vmatprep.mubr.msk.f32.mxu1 %vm195_vm0, %v3094_v37  ;;  %v3276_v54 = vpop.permute.xlu0 %3275 }
 0x234   :  { %6170 = vmatmul.mubr.msk.f32.vlgmr.msra.gmra.mrb[40].mxu0 %vm195_vm0, %v3005_v62 }
 0x235   :  { %v6704_v27 = vpop.permute.xlu1 %6703  ;;  %6498 = vmatpush3.bf16.xpose.msk.msra.mxu0 %vm7542_vm1, %v6493_v44  ;;  %6183 = vmatprep.mubr.msk.f32.mxu0 %vm195_vm0, %v3185_v41 }
 0x236   :  { %v6706_v60 = vunpack.i.h.bf16 %v6704_v27  ;;  %v6705_v61 = vunpack.i.l.bf16 %v6704_v27  ;;  %6507 = vmatprep.subr.msk.bf16.mxu0 %vm7542_vm1, %v6505_v55 }
 0x237   :  { %v6699_v0 = vpop.permute.xlu0 %6698 }
 0x238   :  { %v6499_v1 = vpack.c.bf16 %v6706_v60, %v6705_v61  ;;  %v6701_v4 = vunpack.i.h.bf16 %v6699_v0  ;;  %v6700_v42 = vunpack.i.l.bf16 %v6699_v0 }
 0x239   :  { %v3575_v6 = vpop.permute.xlu1 %3574 }
 0x23a   :  { %6177 = vmatmul.mubr.msk.f32.vlgmr.msra.gmra.mrb[48].mxu1 %vm195_vm0, %v3096_v63  ;;  %6501 = vmatprep.subr.msk.bf16.mxu1 %vm7542_vm1, %v6499_v1  ;;  %v6517_v56 = vpack.c.bf16 %v6701_v4, %v6700_v42 }
 0x23b   :  { %6504 = vmatpush3.bf16.xpose.msk.msra.mxu1 %vm7542_vm1, %v6499_v1  ;;  %6190 = vmatprep.mubr.msk.f32.mxu1 %vm195_vm0, %v3276_v54  ;;  %v3577_v49 = vpop.permute.xlu0 %3576 }
 0x23c   :  { %6513 = vmatprep.subr.msk.bf16.mxu1 %vm7542_vm1, %v6511_v7  ;;  %6184 = vmatmul.mubr.msk.f32.vlgmr.msra.gmra.mrb[42].mxu0 %vm195_vm0, %v3187_v40 }
 0x23d   :  { %v6709_v12 = vpop.permute.xlu1 %6708  ;;  %6510 = vmatpush3.bf16.xpose.msk.msra.mxu0 %vm7542_vm1, %v6505_v55  ;;  %6197 = vmatprep.mubr.msk.f32.mxu0 %vm195_vm0, %v3575_v6 }
 0x23e   :  { %v6711_v13 = vunpack.i.h.bf16 %v6709_v12  ;;  %v6710_v14 = vunpack.i.l.bf16 %v6709_v12  ;;  %6519 = vmatprep.subr.msk.bf16.mxu0 %vm7542_vm1, %v6517_v56 }
 0x23f   :  { %v3666_v2 = vpop.permute.xlu0 %3665 }
 0x240   :  { %v6523_v18 = vpack.c.bf16 %v6711_v13, %v6710_v14 }
 0x241   :  { %v3668_v16 = vpop.permute.xlu1 %3667 }
 0x242   :  { %6191 = vmatmul.mubr.msk.f32.vlgmr.msra.gmra.mrb[50].mxu1 %vm195_vm0, %v3278_v52 }
 0x243   :  { %6516 = vmatpush3.bf16.xpose.msk.msra.mxu1 %vm7542_vm1, %v6511_v7  ;;  %6204 = vmatprep.mubr.msk.f32.mxu1 %vm195_vm0, %v3666_v2  ;;  %v6714_v19 = vpop.permute.xlu0 %6713 }
 0x244   :  { %v6716_v45 = vunpack.i.h.bf16 %v6714_v19  ;;  %v6715_v23 = vunpack.i.l.bf16 %v6714_v19  ;;  %6525 = vmatprep.subr.msk.bf16.mxu1 %vm7542_vm1, %v6523_v18  ;;  %6198 = vmatmul.mubr.msk.f32.vlgmr.msra.gmra.mrb[44].mxu0 %vm195_vm0, %v3577_v49 }
 0x245   :  { %v3757_v10 = vpop.permute.xlu1 %3756  ;;  %6522 = vmatpush3.bf16.xpose.msk.msra.mxu0 %vm7542_vm1, %v6517_v56 }
 0x246   :  { %v6529_v20 = vpack.c.bf16 %v6716_v45, %v6715_v23  ;;  %6211 = vmatprep.mubr.msk.f32.mxu0 %vm195_vm0, %v3757_v10 }
 0x247   :  { %v3759_v31 = vpop.permute.xlu0 %3758 }
 0x248   :  { %6531 = vmatprep.subr.msk.bf16.mxu0 %vm7542_vm1, %v6529_v20 }
 0x249   :  { %v6719_v29 = vpop.permute.xlu1 %6718 }
 0x24a   :  { %v6721_v24 = vunpack.i.h.bf16 %v6719_v29  ;;  %v6720_v26 = vunpack.i.l.bf16 %v6719_v29  ;;  %6205 = vmatmul.mubr.msk.f32.vlgmr.msra.gmra.mrb[52].mxu1 %vm195_vm0, %v3668_v16 }
 0x24b   :  { %6528 = vmatpush3.bf16.xpose.msk.msra.mxu1 %vm7542_vm1, %v6523_v18  ;;  %v3848_v48 = vpop.permute.xlu0 %3847 }
 0x24c   :  { %v6535_v22 = vpack.c.bf16 %v6721_v24, %v6720_v26  ;;  %6212 = vmatmul.mubr.msk.f32.vlgmr.msra.gmra.mrb[46].mxu0 %vm195_vm0, %v3759_v31  ;;  %6218 = vmatprep.mubr.msk.f32.mxu1 %vm195_vm0, %v3848_v48 }
 0x24d   :  { %v3850_v32 = vpop.permute.xlu1 %3849  ;;  %6534 = vmatpush3.bf16.xpose.msk.msra.mxu0 %vm7542_vm1, %v6529_v20 }
 0x24e   :  { %6537 = vmatprep.subr.msk.bf16.mxu1 %vm7542_vm1, %v6535_v22  ;;  %v6031_v28 = vpop.f32.mrb[24].mxu1 }
 0x24f   :  { %v6724_v33 = vpop.permute.xlu0 %6723  ;;  %v7965_v53 = vmul.f32 0.17677669, %v6031_v28  ;;  %v875_v35 = vpop.f32.mrb[25].mxu1 }
 0x250   :  { %v6726_v36 = vunpack.i.h.bf16 %v6724_v33  ;;  %v6725_v62 = vunpack.i.l.bf16 %v6724_v33  ;;  %v7969_v5 = vmul.f32 0.17677669, %v875_v35 }
 0x251   :  { %v3939_v9 = vpop.permute.xlu1 %3938  ;;  %v1513_v63 = vsel %vm1509_vm2, %v7965_v53, -inf }
 0x252   :  { %v6541_v30 = vpack.c.bf16 %v6726_v36, %v6725_v62  ;;  %6219 = vmatmul.mubr.msk.f32.vlgmr.msra.gmra.mrb[54].mxu1 %vm195_vm0, %v3850_v32  ;;  %6225 = vmatprep.mubr.msk.f32.mxu0 %vm195_vm0, %v3939_v9  ;;  %v1510_v43 = vsel %vm1509_vm2, %v7969_v5, -inf }
 0x253   :  { %6540 = vmatpush3.bf16.xpose.msk.msra.mxu1 %vm7542_vm1, %v6535_v22  ;;  %v3941_v37 = vpop.permute.xlu0 %3940  ;;  %1514 = vmax.xlane.f32.xlu0 %v1513_v63 }
 0x254   :  { %6226 = vmatmul.mubr.msk.f32.vlgmr.msra.gmra.mrb[48].mxu0 %vm195_vm0, %v3941_v37  ;;  %6543 = vmatprep.subr.msk.bf16.mxu0 %vm7542_vm1, %v6541_v30 }
 0x255   :  { %v6729_v38 = vpop.permute.xlu1 %6728  ;;  %6546 = vmatpush3.bf16.xpose.msk.msra.mxu0 %vm7542_vm1, %v6541_v30 }
 0x256   :  { %v6731_v15 = vunpack.i.h.bf16 %v6729_v38  ;;  %v6730_v41 = vunpack.i.l.bf16 %v6729_v38  ;;  %v6038_v25 = vpop.f32.mrb[26].mxu1  ;;  %6554 = vmatprep.subr.bf16.mxu0 %v7755_v39 }
 0x257   :  { %v4030_v44 = vpop.permute.xlu0 %4029  ;;  %1511 = vmax.xlane.f32.xlu0 %v1510_v43  ;;  %v7983_v47 = vmul.f32 0.17677669, %v6038_v25  ;;  %v962_v40 = vpop.f32.mrb[27].mxu1 }
 0x258   :  { %v6547_v8 = vpack.c.bf16 %v6731_v15, %v6730_v41  ;;  %v7985_v50 = vmul.f32 0.17677669, %v962_v40  ;;  %6232 = vmatprep.mubr.msk.f32.mxu1 %vm195_vm0, %v4030_v44 }
 0x259   :  { %v4032_v52 = vpop.permute.xlu1 %4031  ;;  %v1519_v54 = vsel %vm1509_vm2, %v7983_v47, -inf }
 0x25a   :  { %6233 = vmatmul.mubr.msk.f32.vlgmr.msra.gmra.mrb[56].mxu1 %vm195_vm0, %v4032_v52  ;;  %6549 = vmatprep.subr.msk.bf16.mxu1 %vm7542_vm1, %v6547_v8  ;;  %v1516_v55 = vsel %vm1509_vm2, %v7985_v50, -inf }
 0x25b   :  { %6552 = vmatpush3.bf16.xpose.msk.msra.mxu1 %vm7542_vm1, %v6547_v8  ;;  %v4121_v27 = vpop.permute.xlu0 %4120  ;;  %1520 = vmax.xlane.f32.xlu0 %v1519_v54 }
 0x25c   :  { %6239 = vmatprep.mubr.msk.f32.mxu0 %vm195_vm0, %v4121_v27  ;;  %1517 = vmax.xlane.f32.xlu1 %v1516_v55 }
 0x25d   :  { %v4123_v57 = vpop.permute.xlu1 %4122  ;;  %6558 = vmatprep.subr.bf16.mxu1 %v7761_v46 }
 0x25e   :  { %6240 = vmatmul.mubr.msk.f32.vlgmr.msra.gmra.mrb[50].mxu0 %vm195_vm0, %v4123_v57  ;;  %v6059_v58 = vpop.f32.mrb[24].mxu0 }
 0x25f   :  { %v4212_v60 = vpop.permute.xlu0 %4211  ;;  %v6045_v61 = vpop.f32.mrb[28].mxu1  ;;  %6556 = vmatpush3.bf16.msra.mxu0 %v7755_v39  ;;  %v8007_v6 = vmul.f32 0.17677669, %v6059_v58 }
 0x260   :  { %v8001_v0 = vmul.f32 0.17677669, %v6045_v61  ;;  %v1223_v1 = vpop.f32.mrb[25].mxu0  ;;  %v1049_v34 = vpop.f32.mrb[29].mxu1  ;;  %6246 = vmatprep.mubr.msk.f32.mxu1 %vm195_vm0, %v4212_v60  ;;  %6562 = vmatprep.subr.bf16.mxu0 %v7767_v51 }
 0x261   :  { %v4214_v4 = vpop.permute.xlu1 %4213  ;;  %v8005_v42 = vmul.f32 0.17677669, %v1049_v34  ;;  %v8012_v49 = vmul.f32 0.17677669, %v1223_v1  ;;  %v1537_v12 = vsel %vm1509_vm2, %v8007_v6, -inf }
 0x262   :  { %6247 = vmatmul.mubr.msk.f32.vlgmr.msra.gmra.mrb[58].mxu1 %vm195_vm0, %v4214_v4  ;;  %v1525_v7 = vsel %vm1509_vm2, %v8001_v0, -inf }
 0x263   :  { %1526 = vmax.xlane.f32.xlu0 %v1525_v7  ;;  %v1522_v39 = vsel %vm1509_vm2, %v8005_v42, -inf  ;;  %6560 = vmatpush3.bf16.msra.mxu1 %v7761_v46  ;;  %v1534_v14 = vsel %vm1509_vm2, %v8012_v49, -inf }
 0x264   :  { %1523 = vmax.xlane.f32.xlu1 %v1522_v39  ;;  %6566 = vmatprep.subr.bf16.mxu1 %v7771_v59 }
 0x266   :  { %v6073_v56 = vpop.f32.mrb[26].mxu0 }
 0x267   :  { %1538 = vmax.xlane.f32.xlu0 %v1537_v12  ;;  %v1397_v13 = vpop.f32.mrb[27].mxu0  ;;  %v8026_v46 = vmul.f32 0.17677669, %v6073_v56 }
 0x268   :  { %v6052_v2 = vpop.f32.mrb[30].mxu1  ;;  %1535 = vmax.xlane.f32.xlu1 %v1534_v14  ;;  %v8030_v23 = vmul.f32 0.17677669, %v1397_v13 }
 0x269   :  { %v8022_v16 = vmul.f32 0.17677669, %v6052_v2  ;;  %v1136_v18 = vpop.f32.mrb[31].mxu1  ;;  %v1549_v20 = vsel %vm1509_vm2, %v8026_v46, -inf }
 0x26a   :  { %v8024_v19 = vmul.f32 0.17677669, %v1136_v18  ;;  %v1546_v29 = vsel %vm1509_vm2, %v8030_v23, -inf }
 0x26b   :  { %v1531_v45 = vsel %vm1509_vm2, %v8022_v16, -inf }
 0x26c   :  { %1532 = vmax.xlane.f32.xlu0 %v1531_v45  ;;  %v1528_v10 = vsel %vm1509_vm2, %v8024_v19, -inf }
 0x26d   :  { %1529 = vmax.xlane.f32.xlu1 %v1528_v10 }
 0x270   :  { %1550 = vmax.xlane.f32.xlu0 %v1549_v20  ;;  %v6066_v31 = vpop.f32.mrb[32].mxu1 }
 0x271   :  { %v8038_v24 = vmul.f32 0.17677669, %v6066_v31  ;;  %1547 = vmax.xlane.f32.xlu1 %v1546_v29  ;;  %v1310_v26 = vpop.f32.mrb[33].mxu1 }
 0x272   :  { %v8040_v48 = vmul.f32 0.17677669, %v1310_v26 }
 0x273   :  { %v1543_v22 = vsel %vm1509_vm2, %v8038_v24, -inf }
 0x274   :  { %1544 = vmax.xlane.f32.xlu0 %v1543_v22  ;;  %v1540_v32 = vsel %vm1509_vm2, %v8040_v48, -inf }
 0x275   :  { %1541 = vmax.xlane.f32.xlu1 %v1540_v32 }
 0x278   :  { %v6080_v28 = vpop.f32.mrb[34].mxu1 }
 0x279   :  { %v8046_v33 = vmul.f32 0.17677669, %v6080_v28  ;;  %v1484_v35 = vpop.f32.mrb[35].mxu1 }
 0x27a   :  { %v8048_v36 = vmul.f32 0.17677669, %v1484_v35 }
 0x27b   :  { %v1555_v62 = vsel %vm1509_vm2, %v8046_v33, -inf }
 0x27c   :  { %1556 = vmax.xlane.f32.xlu0 %v1555_v62  ;;  %v1552_v9 = vsel %vm1509_vm2, %v8048_v36, -inf }
 0x27d   :  { %1553 = vmax.xlane.f32.xlu1 %v1552_v9 }
 0x2d1   :  { %v6087_v63 = vpop.f32.mrb[28].mxu0 }
 0x2d2   :  { %v8054_v30 = vmul.f32 0.17677669, %v6087_v63  ;;  %v1784_v37 = vpop.f32.mrb[29].mxu0 }
 0x2d3   :  { %v8056_v38 = vmul.f32 0.17677669, %v1784_v37 }
 0x2d4   :  { %v2449_v15 = vsel %vm1509_vm2, %v8054_v30, -inf }
 0x2d5   :  { %2450 = vmax.xlane.f32.xlu0 %v2449_v15  ;;  %v2446_v41 = vsel %vm1509_vm2, %v8056_v38, -inf }
 0x2d6   :  { %2447 = vmax.xlane.f32.xlu1 %v2446_v41 }
 0x2da   :  { %v6094_v43 = vpop.f32.mrb[36].mxu1 }
 0x2db   :  { %v8062_v25 = vmul.f32 0.17677669, %v6094_v43  ;;  %v1875_v44 = vpop.f32.mrb[37].mxu1 }
 0x2dc   :  { %v8064_v40 = vmul.f32 0.17677669, %v1875_v44  ;;  %v6101_v8 = vpop.f32.mrb[30].mxu0 }
 0x2dd   :  { %v8066_v52 = vmul.f32 0.17677669, %v6101_v8  ;;  %v1966_v54 = vpop.f32.mrb[31].mxu0  ;;  %v2455_v55 = vsel %vm1509_vm2, %v8062_v25, -inf }
 0x2de   :  { %v8070_v27 = vmul.f32 0.17677669, %v1966_v54  ;;  %2456 = vmax.xlane.f32.xlu1 %v2455_v55  ;;  %v2452_v57 = vsel %vm1509_vm2, %v8064_v40, -inf }
 0x2df   :  { %2453 = vmax.xlane.f32.xlu0 %v2452_v57  ;;  %v2461_v58 = vsel %vm1509_vm2, %v8066_v52, -inf }
 0x2e0   :  { %v2458_v61 = vsel %vm1509_vm2, %v8070_v27, -inf  ;;  %v1515_v45 = vpop.xlane.xlu0 %1514 }
 0x2e1   :  { %v1559_v15 = vsub.f32 %v7965_v53, %v1515_v45 }
 0x2e2   :  { %v6108_v60 = vpop.f32.mrb[38].mxu1  ;;  %2462 = vmax.xlane.f32.xlu1 %v2461_v58 }
 0x2e3   :  { %v8078_v1 = vmul.f32 0.17677669, %v6108_v60  ;;  %2459 = vmax.xlane.f32.xlu0 %v2458_v61  ;;  %v2057_v34 = vpop.f32.mrb[39].mxu1  ;;  %v1576_v55 = vmul.f32 1.442695, %v1559_v15 }
 0x2e4   :  { %v8080_v4 = vmul.f32 0.17677669, %v2057_v34  ;;  %v1512_v63 = vpop.xlane.xlu0 %1511 }
 0x2e5   :  { %v2467_v7 = vsel %vm1509_vm2, %v8078_v1, -inf  ;;  %v1558_v57 = vsub.f32 %v7969_v5, %v1512_v63  ;;  %6732 = vpow2.f32 %v1576_v55 }
 0x2e6   :  { %2468 = vmax.xlane.f32.xlu1 %v2467_v7  ;;  %v2464_v39 = vsel %vm1509_vm2, %v8080_v4, -inf }
 0x2e7   :  { %v6115_v56 = vpop.f32.mrb[32].mxu0  ;;  %2465 = vmax.xlane.f32.xlu0 %v2464_v39 }
 0x2e8   :  { %v8086_v12 = vmul.f32 0.17677669, %v6115_v56  ;;  %v2148_v13 = vpop.f32.mrb[33].mxu0  ;;  %v1521_v61 = vpop.xlane.xlu0 %1520  ;;  %v1574_v56 = vmul.f32 1.442695, %v1558_v57 }
 0x2e9   :  { %v8088_v14 = vmul.f32 0.17677669, %v2148_v13  ;;  %v1561_v5 = vsub.f32 %v7983_v47, %v1521_v61 }
 0x2ea   :  { %v2473_v2 = vsel %vm1509_vm2, %v8086_v12, -inf  ;;  %6734 = vpow2.f32 %v1574_v56 }
 0x2eb   :  { %2474 = vmax.xlane.f32.xlu1 %v2473_v2  ;;  %v2470_v18 = vsel %vm1509_vm2, %v8088_v14, -inf }
 0x2ec   :  { %2471 = vmax.xlane.f32.xlu0 %v2470_v18 }
 0x2ed   :  { %v6122_v10 = vpop.f32.mrb[40].mxu1 }
 0x2ee   :  { %v8094_v20 = vmul.f32 0.17677669, %v6122_v10  ;;  %v2239_v31 = vpop.f32.mrb[41].mxu1 }
 0x2ef   :  { %v8096_v29 = vmul.f32 0.17677669, %v2239_v31  ;;  %v6129_v26 = vpop.f32.mrb[34].mxu0  ;;  %v8146_v55 = vpop.eup %6732 }
 0x2f0   :  { %v8098_v22 = vmul.f32 0.17677669, %v6129_v26  ;;  %v2330_v32 = vpop.f32.mrb[35].mxu0  ;;  %v2479_v28 = vsel %vm1509_vm2, %v8094_v20, -inf  ;;  %v1580_v26 = vmul.f32 1.442695, %v1561_v5 }
 0x2f1   :  { %v8102_v35 = vmul.f32 0.17677669, %v2330_v32  ;;  %2480 = vmax.xlane.f32.xlu1 %v2479_v28  ;;  %v2476_v62 = vsel %vm1509_vm2, %v8096_v29, -inf }
 0x2f2   :  { %2477 = vmax.xlane.f32.xlu0 %v2476_v62  ;;  %v2485_v9 = vsel %vm1509_vm2, %v8098_v22, -inf  ;;  %v1518_v62 = vpop.xlane.xlu1 %1517  ;;  %6736 = vpow2.f32 %v1580_v26 }
 0x2f3   :  { %v2482_v37 = vsel %vm1509_vm2, %v8102_v35, -inf }
 0x2f5   :  { %v6136_v41 = vpop.f32.mrb[42].mxu1  ;;  %2486 = vmax.xlane.f32.xlu1 %v2485_v9 }
 0x2f6   :  { %v8111_v43 = vmul.f32 0.17677669, %v6136_v41  ;;  %2483 = vmax.xlane.f32.xlu0 %v2482_v37  ;;  %v2421_v44 = vpop.f32.mrb[43].mxu1  ;;  %v1527_v37 = vpop.xlane.xlu0 %1526  ;;  %v1560_v41 = vsub.f32 %v7985_v50, %v1518_v62 }
 0x2f7   :  { %v8113_v8 = vmul.f32 0.17677669, %v2421_v44  ;;  %v6143_v54 = vpop.f32.mrb[36].mxu0 }
 0x2f8   :  { %v2720_v58 = vpop.f32.mrb[37].mxu0  ;;  %v2491_v60 = vsel %vm1509_vm2, %v8111_v43, -inf  ;;  %v8118_v34 = vmul.f32 0.17677669, %v6143_v54  ;;  %v1578_v61 = vmul.f32 1.442695, %v1560_v41 }
 0x2f9   :  { %v8120_v53 = vmul.f32 0.17677669, %v2720_v58  ;;  %2492 = vmax.xlane.f32.xlu1 %v2491_v60  ;;  %v2488_v7 = vsel %vm1509_vm2, %v8113_v8, -inf }
 0x2fa   :  { %2489 = vmax.xlane.f32.xlu0 %v2488_v7  ;;  %v3385_v2 = vsel %vm1509_vm2, %v8118_v34, -inf  ;;  %v1563_v7 = vsub.f32 %v8001_v0, %v1527_v37  ;;  %v1539_v50 = vpop.xlane.xlu0 %1538  ;;  %6738 = vpow2.f32 %v1578_v61 }
 0x2fb   :  { %v3382_v39 = vsel %vm1509_vm2, %v8120_v53, -inf  ;;  %v1567_v26 = vsub.f32 %v8007_v6, %v1539_v50 }
 0x2fd   :  { %v6150_v13 = vpop.f32.mrb[44].mxu1  ;;  %3383 = vmax.xlane.f32.xlu1 %v3382_v39 }
 0x2fe   :  { %v8129_v18 = vmul.f32 0.17677669, %v6150_v13  ;;  %v2811_v45 = vpop.f32.mrb[45].mxu1  ;;  %3386 = vmax.xlane.f32.xlu0 %v3385_v2  ;;  %v1609_v13 = vsel %vm1509_vm2, %v8146_v55, 0.0  ;;  %v8157_v2 = vpop.eup %6734 }
 0x2ff   :  { %v8131_v10 = vmul.f32 0.17677669, %v2811_v45  ;;  %v6157_v31 = vpop.f32.mrb[38].mxu0  ;;  %v1524_v45 = vpop.xlane.xlu1 %1523  ;;  %v1606_v62 = vsel %vm1509_vm2, %v8157_v2, 0.0 }
 0x300   :  { %v2902_v32 = vpop.f32.mrb[39].mxu0  ;;  %v3391_v28 = vsel %vm1509_vm2, %v8129_v18, -inf  ;;  %v8135_v47 = vmul.f32 0.17677669, %v6157_v31  ;;  %v1584_v31 = vmul.f32 1.442695, %v1563_v7  ;;  %v1562_v41 = vsub.f32 %v8005_v42, %v1524_v45 }
 0x301   :  { %v8137_v9 = vmul.f32 0.17677669, %v2902_v32  ;;  %v3388_v63 = vsel %vm1509_vm2, %v8131_v10, -inf }
 0x302   :  { %3392 = vmax.xlane.f32.xlu0 %v3391_v28  ;;  %3389 = vmax.xlane.f32.xlu1 %v3388_v63  ;;  %v3397_v54 = vsel %vm1509_vm2, %v8135_v47, -inf  ;;  %v8166_v63 = vpop.eup %6736  ;;  %6740 = vpow2.f32 %v1584_v31  ;;  %v1582_v50 = vmul.f32 1.442695, %v1562_v41 }
 0x303   :  { %v3394_v15 = vsel %vm1509_vm2, %v8137_v9, -inf  ;;  %8968 = vst [vmem:[#allocation30_spill] sm:$0xff] %v8166_v63  ;;  %v1615_v61 = vsel %vm1509_vm2, %v8166_v63, 0.0 }
 0x305   :  { %v6164_v44 = vpop.f32.mrb[46].mxu1 }
 0x306   :  { %v8148_v57 = vmul.f32 0.17677669, %v6164_v44  ;;  %v2993_v58 = vpop.f32.mrb[47].mxu1  ;;  %3398 = vmax.xlane.f32.xlu0 %v3397_v54  ;;  %3395 = vmax.xlane.f32.xlu1 %v3394_v15  ;;  %v1592_v44 = vmul.f32 1.442695, %v1567_v26  ;;  %v1536_v54 = vpop.xlane.xlu1 %1535 }
 0x307   :  { %v6171_v60 = vpop.f32.mrb[40].mxu0  ;;  %v8160_v0 = vmul.f32 0.17677669, %v2993_v58  ;;  %v1566_v42 = vsub.f32 %v8012_v49, %v1536_v54  ;;  %v8184_v26 = vpop.eup %6738 }
 0x308   :  { %v3084_v39 = vpop.f32.mrb[41].mxu0  ;;  %v3403_v56 = vsel %vm1509_vm2, %v8148_v57, -inf  ;;  %v8153_v5 = vmul.f32 0.17677669, %v6171_v60  ;;  %6742 = vpow2.f32 %v1592_v44  ;;  %8969 = vst [vmem:[#allocation31_spill] sm:$0xff] %v8184_v26 }
 0x309   :  { %v8169_v58 = vmul.f32 0.17677669, %v3084_v39  ;;  %v3400_v7 = vsel %vm1509_vm2, %v8160_v0, -inf  ;;  %6744 = vpow2.f32 %v1582_v50 }
 0x30a   :  { %3404 = vmax.xlane.f32.xlu0 %v3403_v56  ;;  %1610 = vadd.xlane.f32.xlu1 %v1609_v13  ;;  %v3409_v28 = vsel %vm1509_vm2, %v8153_v5, -inf  ;;  %v1533_v56 = vpop.xlane.xlu0 %1532 }
 0x30b   :  { %v3406_v31 = vsel %vm1509_vm2, %v8169_v58, -inf  ;;  %v1565_v41 = vsub.f32 %v8022_v16, %v1533_v56 }
 0x30d   :  { %v6178_v32 = vpop.f32.mrb[48].mxu1  ;;  %v1588_v50 = vmul.f32 1.442695, %v1565_v41 }
 0x30e   :  { %v3175_v37 = vpop.f32.mrb[49].mxu1  ;;  %3410 = vmax.xlane.f32.xlu0 %v3409_v28  ;;  %1607 = vadd.xlane.f32.xlu1 %v1606_v62  ;;  %v8171_v60 = vmul.f32 0.17677669, %v6178_v32  ;;  %v1590_v62 = vmul.f32 1.442695, %v1566_v42 }
 0x30f   :  { %v6185_v15 = vpop.f32.mrb[42].mxu0  ;;  %v8187_v44 = vmul.f32 0.17677669, %v3175_v37 }
 0x310   :  { %v3266_v6 = vpop.f32.mrb[43].mxu0  ;;  %v8178_v13 = vmul.f32 0.17677669, %v6185_v15  ;;  %v3415_v39 = vsel %vm1509_vm2, %v8171_v60, -inf  ;;  %v1551_v15 = vpop.xlane.xlu0 %1550  ;;  %6746 = vpow2.f32 %v1590_v62 }
 0x311   :  { %v1571_v42 = vsub.f32 %v8026_v46, %v1551_v15  ;;  %v8196_v16 = vmul.f32 0.17677669, %v3266_v6  ;;  %6748 = vpow2.f32 %v1588_v50 }
 0x312   :  { %1616 = vadd.xlane.f32.xlu0 %v1615_v61  ;;  %3401 = vmax.xlane.f32.xlu1 %v3400_v7  ;;  %v3421_v54 = vsel %vm1509_vm2, %v8178_v13, -inf  ;;  %v1612_v61 = vsel %vm1509_vm2, %v8184_v26, 0.0  ;;  %v8193_v7 = vpop.eup %6740 }
 0x313   :  { %8970 = vst [vmem:[#allocation32_spill] sm:$0xff] %v8193_v7  ;;  %v1621_v37 = vsel %vm1509_vm2, %v8193_v7, 0.0  ;;  %v8202_v21 = vpop.eup %6742  ;;  %v1600_v46 = vmul.f32 1.442695, %v1571_v42  ;;  %v3418_v11 = vsel %vm1509_vm2, %v8196_v16, -inf }
 0x314   :  { %8971 = vst [vmem:[#allocation33_spill] sm:$0xff] %v8202_v21  ;;  %v8215_v59 = vpop.eup %6744 }
 0x315   :  { %v6192_v45 = vpop.f32.mrb[50].mxu1  ;;  %8972 = vst [vmem:[#allocation34_spill] sm:$0xff] %v8215_v59  ;;  %6750 = vpow2.f32 %v1600_v46 }
 0x316   :  { %v3357_v32 = vpop.f32.mrb[51].mxu1  ;;  %3416 = vmax.xlane.f32.xlu0 %v3415_v39  ;;  %3407 = vmax.xlane.f32.xlu1 %v3406_v31  ;;  %v1530_v39 = vpop.xlane.xlu1 %1529  ;;  %v3412_v31 = vsel %vm1509_vm2, %v8187_v44, -inf  ;;  %v8209_v15 = vmul.f32 0.17677669, %v6192_v45 }
 0x317   :  { %v6199_v28 = vpop.f32.mrb[44].mxu0  ;;  %v1564_v62 = vsub.f32 %v8024_v19, %v1530_v39  ;;  %v1545_v39 = vpop.xlane.xlu0 %1544  ;;  %v8231_v46 = vmul.f32 0.17677669, %v3357_v32 }
 0x318   :  { %v3656_v49 = vpop.f32.mrb[45].mxu0  ;;  %v8218_v50 = vmul.f32 0.17677669, %v6199_v28  ;;  %v3427_v45 = vsel %vm1509_vm2, %v8209_v15, -inf }
 0x31a   :  { %3422 = vmax.xlane.f32.xlu0 %v3421_v54  ;;  %1613 = vadd.xlane.f32.xlu1 %v1612_v61  ;;  %v1548_v41 = vpop.xlane.xlu1 %1547  ;;  %v1633_v61 = vsel %vm1509_vm2, %v8202_v21, 0.0  ;;  %v8224_v3 = vpop.eup %6746 }
 0x31b   :  { %v1570_v19 = vsub.f32 %v8030_v23, %v1548_v41  ;;  %8973 = vst [vmem:[#allocation35_spill] sm:$0xff] %v8224_v3  ;;  %v1569_v23 = vsub.f32 %v8038_v24, %v1545_v39  ;;  %v4321_v41 = vsel %vm1509_vm2, %v8218_v50, -inf  ;;  %v8237_v7 = vpop.eup %6748  ;;  %v3424_v39 = vsel %vm1509_vm2, %v8231_v46, -inf }
 0x31c   :  { %8974 = vst [vmem:[#allocation36_spill] sm:$0xff] %v8237_v7  ;;  %v1627_v32 = vsel %vm1509_vm2, %v8237_v7, 0.0 }
 0x31d   :  { %v6206_v56 = vpop.f32.mrb[52].mxu1 }
 0x31e   :  { %v8204_v17 = vpop.f32.mrb[53].mxu1  ;;  %1622 = vadd.xlane.f32.xlu0 %v1621_v37  ;;  %3413 = vmax.xlane.f32.xlu1 %v3412_v31  ;;  %v1586_v37 = vmul.f32 1.442695, %v1564_v62  ;;  %v1618_v31 = vsel %vm1509_vm2, %v8215_v59, 0.0  ;;  %v1598_v62 = vmul.f32 1.442695, %v1570_v19 }
 0x31f   :  { %v6213_v54 = vpop.f32.mrb[46].mxu0  ;;  %v8239_v19 = vmul.f32 0.17677669, %v3656_v49 }
 0x320   :  { %v8207_v6 = vpop.f32.mrb[47].mxu0  ;;  %6752 = vpow2.f32 %v1586_v37  ;;  %v1542_v37 = vpop.xlane.xlu1 %1541 }
 0x321   :  { %6754 = vpow2.f32 %v1598_v62  ;;  %v1568_v62 = vsub.f32 %v8040_v48, %v1542_v37 }
 0x322   :  { %1634 = vadd.xlane.f32.xlu0 %v1633_v61  ;;  %3419 = vmax.xlane.f32.xlu1 %v3418_v11  ;;  %v1630_v61 = vsel %vm1509_vm2, %v8224_v3, 0.0  ;;  %v4318_v3 = vsel %vm1509_vm2, %v8239_v19, -inf }
 0x325   :  { %v6220_v42 = vpop.f32.mrb[54].mxu1 }
 0x326   :  { %v8226_v51 = vpop.f32.mrb[55].mxu1  ;;  %3428 = vmax.xlane.f32.xlu0 %v3427_v45  ;;  %1619 = vadd.xlane.f32.xlu1 %v1618_v31  ;;  %v1596_v45 = vmul.f32 1.442695, %v1569_v23  ;;  %v8245_v31 = vpop.eup %6750 }
 0x327   :  { %v6227_v11 = vpop.f32.mrb[48].mxu0  ;;  %8975 = vst [vmem:[#allocation37_spill] sm:$0xff] %v8245_v31  ;;  %v1557_v23 = vpop.xlane.xlu0 %1556 }
 0x328   :  { %v8229_v28 = vpop.f32.mrb[49].mxu0  ;;  %6756 = vpow2.f32 %v1596_v45  ;;  %v1573_v45 = vsub.f32 %v8046_v33, %v1557_v23 }
 0x32a   :  { %4322 = vmax.xlane.f32.xlu0 %v4321_v41  ;;  %1631 = vadd.xlane.f32.xlu1 %v1630_v61  ;;  %v8250_v41 = vmul.f32 0.17677669, %v6206_v56  ;;  %v1645_v61 = vsel %vm1509_vm2, %v8245_v31, 0.0  ;;  %v8256_v21 = vpop.eup %6752 }
 0x32b   :  { %8976 = vst [vmem:[#allocation38_spill] sm:$0xff] %v8256_v21  ;;  %v1624_v37 = vsel %vm1509_vm2, %v8256_v21, 0.0  ;;  %v8265_v31 = vpop.eup %6754  ;;  %v8286_v21 = vmul.f32 0.17677669, %v6227_v11 }
 0x32c   :  { %v4327_v56 = vsel %vm1509_vm2, %v8250_v41, -inf  ;;  %8977 = vst [vmem:[#allocation39_spill] sm:$0xff] %v8265_v31 }
 0x32d   :  { %v6234_v24 = vpop.f32.mrb[56].mxu1 }
 0x32e   :  { %v8247_v63 = vpop.f32.mrb[57].mxu1  ;;  %1628 = vadd.xlane.f32.xlu0 %v1627_v32  ;;  %3425 = vmax.xlane.f32.xlu1 %v3424_v39  ;;  %v1594_v32 = vmul.f32 1.442695, %v1568_v62  ;;  %v8259_v39 = vmul.f32 0.17677669, %v6213_v54  ;;  %v1642_v54 = vsel %vm1509_vm2, %v8265_v31, 0.0 }
 0x32f   :  { %v8268_v62 = vmul.f32 0.17677669, %v8204_v17 }
 0x330   :  { %6758 = vpow2.f32 %v1594_v32  ;;  %v4333_v33 = vsel %vm1509_vm2, %v8259_v39, -inf  ;;  %v8278_v32 = vmul.f32 0.17677669, %v8207_v6 }
 0x331   :  { %v6241_v49 = vpop.f32.mrb[50].mxu0 }
 0x332   :  { %v4202_v7 = vpop.f32.mrb[51].mxu0  ;;  %1646 = vadd.xlane.f32.xlu0 %v1645_v61  ;;  %4319 = vmax.xlane.f32.xlu1 %v4318_v3  ;;  %v1604_v61 = vmul.f32 1.442695, %v1573_v45  ;;  %v1554_v3 = vpop.xlane.xlu1 %1553  ;;  %v8280_v45 = vmul.f32 0.17677669, %v6220_v42 }
 0x333   :  { %v8274_v23 = vpop.eup %6756  ;;  %v8295_v42 = vmul.f32 0.17677669, %v8226_v51 }
 0x334   :  { %8978 = vst [vmem:[#allocation40_spill] sm:$0xff] %v8274_v23  ;;  %6760 = vpow2.f32 %v1604_v61  ;;  %v1639_v17 = vsel %vm1509_vm2, %v8274_v23, 0.0  ;;  %v4339_v61 = vsel %vm1509_vm2, %v8280_v45, -inf }
 0x335   :  { %v6248_v48 = vpop.f32.mrb[58].mxu1  ;;  %v4336_v51 = vsel %vm1509_vm2, %v8295_v42, -inf }
 0x336   :  { %v4293_v59 = vpop.f32.mrb[59].mxu1  ;;  %4328 = vmax.xlane.f32.xlu0 %v4327_v56  ;;  %1625 = vadd.xlane.f32.xlu1 %v1624_v37  ;;  %v1572_v56 = vsub.f32 %v8048_v36, %v1554_v3  ;;  %v4324_v37 = vsel %vm1509_vm2, %v8268_v62, -inf  ;;  %v4330_v36 = vsel %vm1509_vm2, %v8278_v32, -inf  ;;  %v4345_v3 = vsel %vm1509_vm2, %v8286_v21, -inf }
 0x338   :  { %v1602_v31 = vmul.f32 1.442695, %v1572_v56  ;;  %v8306_v56 = vmul.f32 0.17677669, %v6234_v24  ;;  %v8321_v24 = vmul.f32 0.17677669, %v8247_v63 }
 0x339   :  { %v8335_v63 = vmul.f32 0.17677669, %v4293_v59 }
 0x33a   :  { %4334 = vmax.xlane.f32.xlu0 %v4333_v33  ;;  %1643 = vadd.xlane.f32.xlu1 %v1642_v54  ;;  %v8292_v6 = vpop.eup %6758  ;;  %6762 = vpow2.f32 %v1602_v31  ;;  %v8304_v54 = vmul.f32 0.17677669, %v8229_v28 }
 0x33b   :  { %8979 = vst [vmem:[#allocation41_spill] sm:$0xff] %v8292_v6  ;;  %v1636_v11 = vsel %vm1509_vm2, %v8292_v6, 0.0 }
 0x33e   :  { %1640 = vadd.xlane.f32.xlu0 %v1639_v17  ;;  %4325 = vmax.xlane.f32.xlu1 %v4324_v37  ;;  %v8301_v33 = vpop.eup %6760  ;;  %v8312_v17 = vmul.f32 0.17677669, %v6241_v49  ;;  %v4351_v37 = vsel %vm1509_vm2, %v8306_v56, -inf }
 0x33f   :  { %8980 = vst [vmem:[#allocation42_spill] sm:$0xff] %v8301_v33  ;;  %v1651_v31 = vsel %vm1509_vm2, %v8301_v33, 0.0 }
 0x342   :  { %4340 = vmax.xlane.f32.xlu0 %v4339_v61  ;;  %4331 = vmax.xlane.f32.xlu1 %v4330_v36  ;;  %v4342_v61 = vsel %vm1509_vm2, %v8304_v54, -inf  ;;  %v8323_v36 = vmul.f32 0.17677669, %v6248_v48 }
 0x344   :  { %v8318_v28 = vpop.eup %6762 }
 0x345   :  { %8981 = vst [vmem:[#allocation43_spill] sm:$0xff] %v8318_v28  ;;  %v1648_v49 = vsel %vm1509_vm2, %v8318_v28, 0.0 }
 0x346   :  { %4346 = vmax.xlane.f32.xlu0 %v4345_v3  ;;  %1637 = vadd.xlane.f32.xlu1 %v1636_v11  ;;  %v4357_v3 = vsel %vm1509_vm2, %v8312_v17, -inf  ;;  %v8329_v11 = vmul.f32 0.17677669, %v4202_v7 }
 0x348   :  { %v4354_v48 = vsel %vm1509_vm2, %v8329_v11, -inf }
 0x34a   :  { %1652 = vadd.xlane.f32.xlu0 %v1651_v31  ;;  %4337 = vmax.xlane.f32.xlu1 %v4336_v51  ;;  %v4363_v31 = vsel %vm1509_vm2, %v8323_v36, -inf  ;;  %v4348_v51 = vsel %vm1509_vm2, %v8321_v24, -inf }
 0x34e   :  { %4352 = vmax.xlane.f32.xlu0 %v4351_v37  ;;  %4343 = vmax.xlane.f32.xlu1 %v4342_v61  ;;  %v4360_v37 = vsel %vm1509_vm2, %v8335_v63, -inf }
 0x352   :  { %4358 = vmax.xlane.f32.xlu0 %v4357_v3  ;;  %1649 = vadd.xlane.f32.xlu1 %v1648_v49 }
 0x356   :  { %4364 = vmax.xlane.f32.xlu0 %v4363_v31  ;;  %4349 = vmax.xlane.f32.xlu1 %v4348_v51 }
 0x35a   :  { %4355 = vmax.xlane.f32.xlu1 %v4354_v48 }
 0x35e   :  { %4361 = vmax.xlane.f32.xlu1 %v4360_v37 }
 0x362   :  { %v2451_v7 = vpop.xlane.xlu0 %2450 }
 0x363   :  { %v2495_v61 = vsub.f32 %v8054_v30, %v2451_v7  ;;  %v2448_v3 = vpop.xlane.xlu1 %2447 }
 0x364   :  { %v2494_v49 = vsub.f32 %v8056_v38, %v2448_v3 }
 0x365   :  { %v2512_v28 = vmul.f32 1.442695, %v2495_v61 }
 0x366   :  { %v2510_v33 = vmul.f32 1.442695, %v2494_v49 }
 0x367   :  { %6764 = vpow2.f32 %v2512_v28 }
 0x368   :  { %6766 = vpow2.f32 %v2510_v33 }
 0x36b   :  { %v2457_v59 = vpop.xlane.xlu1 %2456 }
 0x36c   :  { %v2497_v31 = vsub.f32 %v8062_v25, %v2457_v59  ;;  %v2454_v51 = vpop.xlane.xlu0 %2453 }
 0x36d   :  { %v2496_v48 = vsub.f32 %v8064_v40, %v2454_v51 }
 0x36e   :  { %v2516_v6 = vmul.f32 1.442695, %v2497_v31 }
 0x36f   :  { %v2514_v23 = vmul.f32 1.442695, %v2496_v48  ;;  %v2463_v26 = vpop.xlane.xlu1 %2462 }
 0x370   :  { %6768 = vpow2.f32 %v2516_v6  ;;  %v2499_v37 = vsub.f32 %v8066_v52, %v2463_v26  ;;  %v2460_v30 = vpop.xlane.xlu0 %2459 }
 0x371   :  { %6770 = vpow2.f32 %v2514_v23  ;;  %v2498_v38 = vsub.f32 %v8070_v27, %v2460_v30  ;;  %v8347_v7 = vpop.eup %6764 }
 0x372   :  { %v2520_v28 = vmul.f32 1.442695, %v2499_v37  ;;  %v2545_v25 = vsel %vm1509_vm2, %v8347_v7, 0.0  ;;  %v8351_v3 = vpop.eup %6766 }
 0x373   :  { %v2518_v33 = vmul.f32 1.442695, %v2498_v38  ;;  %v2469_v61 = vpop.xlane.xlu1 %2468  ;;  %2546 = vadd.xlane.f32.xlu0 %v2545_v25  ;;  %v2542_v23 = vsel %vm1509_vm2, %v8351_v3, 0.0 }
 0x374   :  { %6772 = vpow2.f32 %v2520_v28  ;;  %v2501_v40 = vsub.f32 %v8078_v1, %v2469_v61  ;;  %v2466_v6 = vpop.xlane.xlu0 %2465 }
 0x375   :  { %6774 = vpow2.f32 %v2518_v33  ;;  %v2500_v52 = vsub.f32 %v8080_v4, %v2466_v6 }
 0x376   :  { %v2524_v26 = vmul.f32 1.442695, %v2501_v40 }
 0x377   :  { %v2522_v27 = vmul.f32 1.442695, %v2500_v52  ;;  %2543 = vadd.xlane.f32.xlu0 %v2542_v23 }
 0x378   :  { %6776 = vpow2.f32 %v2524_v26  ;;  %v2475_v49 = vpop.xlane.xlu1 %2474 }
 0x379   :  { %6778 = vpow2.f32 %v2522_v27  ;;  %v2503_v59 = vsub.f32 %v8086_v12, %v2475_v49  ;;  %v2472_v31 = vpop.xlane.xlu0 %2471 }
 0x37a   :  { %v8358_v51 = vpop.eup %6768  ;;  %v2502_v1 = vsub.f32 %v8088_v14, %v2472_v31 }
 0x37b   :  { %v8361_v48 = vpop.eup %6770  ;;  %v2528_v37 = vmul.f32 1.442695, %v2503_v59  ;;  %v2551_v4 = vsel %vm1509_vm2, %v8358_v51, 0.0 }
 0x37c   :  { %v2526_v30 = vmul.f32 1.442695, %v2502_v1  ;;  %2552 = vadd.xlane.f32.xlu1 %v2551_v4  ;;  %v2548_v38 = vsel %vm1509_vm2, %v8361_v48, 0.0 }
 0x37d   :  { %6780 = vpow2.f32 %v2528_v37  ;;  %2549 = vadd.xlane.f32.xlu0 %v2548_v38 }
 0x37e   :  { %v8367_v28 = vpop.eup %6772  ;;  %6782 = vpow2.f32 %v2526_v30  ;;  %v2481_v12 = vpop.xlane.xlu1 %2480 }
 0x37f   :  { %v8369_v33 = vpop.eup %6774  ;;  %v2505_v14 = vsub.f32 %v8094_v20, %v2481_v12  ;;  %v2478_v61 = vpop.xlane.xlu0 %2477  ;;  %v2557_v25 = vsel %vm1509_vm2, %v8367_v28, 0.0 }
 0x380   :  { %v2504_v40 = vsub.f32 %v8096_v29, %v2478_v61  ;;  %2558 = vadd.xlane.f32.xlu1 %v2557_v25  ;;  %v2554_v6 = vsel %vm1509_vm2, %v8369_v33, 0.0 }
 0x381   :  { %v2532_v52 = vmul.f32 1.442695, %v2505_v14  ;;  %2555 = vadd.xlane.f32.xlu0 %v2554_v6 }
 0x382   :  { %v8377_v26 = vpop.eup %6776  ;;  %v2530_v27 = vmul.f32 1.442695, %v2504_v40  ;;  %v2487_v23 = vpop.xlane.xlu1 %2486 }
 0x383   :  { %v8379_v49 = vpop.eup %6778  ;;  %6784 = vpow2.f32 %v2532_v52  ;;  %v2507_v20 = vsub.f32 %v8098_v22, %v2487_v23  ;;  %v2484_v59 = vpop.xlane.xlu0 %2483  ;;  %v2563_v31 = vsel %vm1509_vm2, %v8377_v26, 0.0 }
 0x384   :  { %6786 = vpow2.f32 %v2530_v27  ;;  %v2506_v29 = vsub.f32 %v8102_v35, %v2484_v59  ;;  %2564 = vadd.xlane.f32.xlu1 %v2563_v31  ;;  %v2560_v1 = vsel %vm1509_vm2, %v8379_v49, 0.0 }
 0x385   :  { %v2536_v37 = vmul.f32 1.442695, %v2507_v20  ;;  %2561 = vadd.xlane.f32.xlu0 %v2560_v1 }
 0x386   :  { %v2534_v4 = vmul.f32 1.442695, %v2506_v29  ;;  %v2493_v30 = vpop.xlane.xlu1 %2492 }
 0x387   :  { %v8387_v38 = vpop.eup %6780  ;;  %6788 = vpow2.f32 %v2536_v37  ;;  %v2509_v22 = vsub.f32 %v8111_v43, %v2493_v30  ;;  %v2490_v12 = vpop.xlane.xlu0 %2489 }
 0x388   :  { %v8390_v14 = vpop.eup %6782  ;;  %6790 = vpow2.f32 %v2534_v4  ;;  %v2508_v61 = vsub.f32 %v8113_v8, %v2490_v12  ;;  %v2569_v35 = vsel %vm1509_vm2, %v8387_v38, 0.0 }
 0x389   :  { %v2540_v25 = vmul.f32 1.442695, %v2509_v22  ;;  %2570 = vadd.xlane.f32.xlu1 %v2569_v35  ;;  %v2566_v40 = vsel %vm1509_vm2, %v8390_v14, 0.0 }
 0x38a   :  { %v2538_v6 = vmul.f32 1.442695, %v2508_v61  ;;  %v3384_v52 = vpop.xlane.xlu1 %3383  ;;  %2567 = vadd.xlane.f32.xlu0 %v2566_v40 }
 0x38b   :  { %6792 = vpow2.f32 %v2540_v25  ;;  %v3430_v43 = vsub.f32 %v8120_v53, %v3384_v52  ;;  %v3387_v27 = vpop.xlane.xlu0 %3386 }
 0x38c   :  { %6794 = vpow2.f32 %v2538_v6  ;;  %v3431_v23 = vsub.f32 %v8118_v34, %v3387_v27 }
 0x38d   :  { %v8399_v20 = vpop.eup %6784  ;;  %v3446_v8 = vmul.f32 1.442695, %v3430_v43 }
 0x38e   :  { %v8401_v59 = vpop.eup %6786  ;;  %v3448_v31 = vmul.f32 1.442695, %v3431_v23  ;;  %v2575_v29 = vsel %vm1509_vm2, %v8399_v20, 0.0 }
 0x38f   :  { %6796 = vpow2.f32 %v3446_v8  ;;  %v3393_v1 = vpop.xlane.xlu0 %3392  ;;  %2576 = vadd.xlane.f32.xlu1 %v2575_v29  ;;  %v3390_v37 = vpop.xlane.xlu1 %3389  ;;  %v2572_v53 = vsel %vm1509_vm2, %v8401_v59, 0.0 }
 0x390   :  { %6798 = vpow2.f32 %v3448_v31  ;;  %v3433_v4 = vsub.f32 %v8129_v18, %v3393_v1  ;;  %v3432_v34 = vsub.f32 %v8131_v10, %v3390_v37  ;;  %2573 = vadd.xlane.f32.xlu0 %v2572_v53 }
 0x391   :  { %v8409_v30 = vpop.eup %6788 }
 0x392   :  { %v8411_v22 = vpop.eup %6790  ;;  %v3452_v12 = vmul.f32 1.442695, %v3433_v4  ;;  %v3450_v61 = vmul.f32 1.442695, %v3432_v34  ;;  %v2581_v35 = vsel %vm1509_vm2, %v8409_v30, 0.0 }
 0x393   :  { %v3399_v25 = vpop.xlane.xlu0 %3398  ;;  %2582 = vadd.xlane.f32.xlu1 %v2581_v35  ;;  %v3396_v40 = vpop.xlane.xlu1 %3395  ;;  %v2578_v6 = vsel %vm1509_vm2, %v8411_v22, 0.0 }
 0x394   :  { %6800 = vpow2.f32 %v3452_v12  ;;  %v3435_v18 = vsub.f32 %v8135_v47, %v3399_v25  ;;  %v3434_v10 = vsub.f32 %v8137_v9, %v3396_v40  ;;  %2579 = vadd.xlane.f32.xlu0 %v2578_v6 }
 0x395   :  { %v8419_v52 = vpop.eup %6792  ;;  %6802 = vpow2.f32 %v3450_v61 }
 0x396   :  { %v8421_v43 = vpop.eup %6794  ;;  %v3456_v27 = vmul.f32 1.442695, %v3435_v18  ;;  %v3454_v23 = vmul.f32 1.442695, %v3434_v10  ;;  %v2587_v8 = vsel %vm1509_vm2, %v8419_v52, 0.0 }
 0x397   :  { %v3405_v31 = vpop.xlane.xlu0 %3404  ;;  %2588 = vadd.xlane.f32.xlu1 %v2587_v8  ;;  %v8425_v29 = vpop.xlane.xlu1 %1610  ;;  %v2584_v47 = vsel %vm1509_vm2, %v8421_v43, 0.0 }
 0x398   :  { %6804 = vpow2.f32 %v3456_v27  ;;  %v3437_v9 = vsub.f32 %v8148_v57, %v3405_v31  ;;  %2585 = vadd.xlane.f32.xlu0 %v2584_v47 }
 0x399   :  { %v8430_v1 = vpop.eup %6796  ;;  %6806 = vpow2.f32 %v3454_v23 }
 0x39a   :  { %v8432_v37 = vpop.eup %6798  ;;  %v3460_v53 = vmul.f32 1.442695, %v3437_v9  ;;  %v3478_v4 = vsel %vm1509_vm2, %v8430_v1, 0.0 }
 0x39b   :  { %v3411_v34 = vpop.xlane.xlu0 %3410  ;;  %3479 = vadd.xlane.f32.xlu1 %v3478_v4  ;;  %v8436_v12 = vpop.xlane.xlu1 %1607  ;;  %v3481_v61 = vsel %vm1509_vm2, %v8432_v37, 0.0 }
 0x39c   :  { %6808 = vpow2.f32 %v3460_v53  ;;  %v3439_v57 = vsub.f32 %v8153_v5, %v3411_v34  ;;  %3482 = vadd.xlane.f32.xlu0 %v3481_v61 }
 0x39e   :  { %v8441_v35 = vpop.eup %6800  ;;  %v3464_v25 = vmul.f32 1.442695, %v3439_v57 }
 0x39f   :  { %v8443_v40 = vpop.eup %6802  ;;  %v8445_v6 = vpop.xlane.xlu0 %1616  ;;  %v3487_v10 = vsel %vm1509_vm2, %v8441_v35, 0.0 }
 0x3a0   :  { %v3402_v18 = vpop.xlane.xlu1 %3401  ;;  %6810 = vpow2.f32 %v3464_v25  ;;  %3488 = vadd.xlane.f32.xlu0 %v3487_v10  ;;  %v3484_v23 = vsel %vm1509_vm2, %v8443_v40, 0.0 }
 0x3a1   :  { %v3436_v27 = vsub.f32 %v8160_v0, %v3402_v18  ;;  %3485 = vadd.xlane.f32.xlu1 %v3484_v23 }
 0x3a2   :  { %v8452_v5 = vpop.eup %6804 }
 0x3a3   :  { %v3458_v8 = vmul.f32 1.442695, %v3436_v27  ;;  %v8454_v31 = vpop.eup %6806  ;;  %v3417_v47 = vpop.xlane.xlu0 %3416  ;;  %v3493_v53 = vsel %vm1509_vm2, %v8452_v5, 0.0 }
 0x3a4   :  { %8982 = vst [vmem:[#allocation44_spill] sm:$0xff] %v8454_v31  ;;  %v3408_v9 = vpop.xlane.xlu1 %3407  ;;  %v3441_v4 = vsub.f32 %v8171_v60, %v3417_v47  ;;  %3494 = vadd.xlane.f32.xlu0 %v3493_v53  ;;  %v3490_v34 = vsel %vm1509_vm2, %v8454_v31, 0.0 }
 0x3a5   :  { %6812 = vpow2.f32 %v3458_v8  ;;  %v3438_v0 = vsub.f32 %v8169_v58, %v3408_v9  ;;  %3491 = vadd.xlane.f32.xlu1 %v3490_v34 }
 0x3a6   :  { %v8462_v61 = vpop.eup %6808  ;;  %v3468_v57 = vmul.f32 1.442695, %v3441_v4 }
 0x3a7   :  { %v3462_v25 = vmul.f32 1.442695, %v3438_v0  ;;  %v3423_v18 = vpop.xlane.xlu0 %3422  ;;  %v3499_v27 = vsel %vm1509_vm2, %v8462_v61, 0.0 }
 0x3a8   :  { %v8464_v10 = vpop.xlane.xlu1 %1613  ;;  %6814 = vpow2.f32 %v3468_v57  ;;  %v3443_v60 = vsub.f32 %v8178_v13, %v3423_v18  ;;  %3500 = vadd.xlane.f32.xlu0 %v3499_v27 }
 0x3a9   :  { %6816 = vpow2.f32 %v3462_v25 }
 0x3aa   :  { %v8469_v58 = vpop.eup %6810  ;;  %v3472_v23 = vmul.f32 1.442695, %v3443_v60 }
 0x3ab   :  { %8983 = vst [vmem:[#allocation45_spill] sm:$0xff] %v8469_v58  ;;  %v8471_v8 = vpop.xlane.xlu0 %1622  ;;  %v3505_v9 = vsel %vm1509_vm2, %v8469_v58, 0.0 }
 0x3ac   :  { %v3414_v47 = vpop.xlane.xlu1 %3413  ;;  %6818 = vpow2.f32 %v3472_v23  ;;  %3506 = vadd.xlane.f32.xlu0 %v3505_v9 }
 0x3ad   :  { %v3440_v53 = vsub.f32 %v8187_v44, %v3414_v47 }
 0x3af   :  { %v8476_v4 = vpop.eup %6812  ;;  %v3466_v0 = vmul.f32 1.442695, %v3440_v53  ;;  %v8478_v34 = vpop.xlane.xlu0 %1634 }
 0x3b0   :  { %8984 = vst [vmem:[#allocation46_spill] sm:$0xff] %v8476_v4  ;;  %v3420_v13 = vpop.xlane.xlu1 %3419  ;;  %v3496_v57 = vsel %vm1509_vm2, %v8476_v4, 0.0 }
 0x3b1   :  { %6820 = vpow2.f32 %v3466_v0  ;;  %v3442_v25 = vsub.f32 %v8196_v16, %v3420_v13  ;;  %3497 = vadd.xlane.f32.xlu1 %v3496_v57 }
 0x3b2   :  { %v8483_v18 = vpop.eup %6814 }
 0x3b3   :  { %8985 = vst [vmem:[#allocation47_spill] sm:$0xff] %v8483_v18  ;;  %v3470_v27 = vmul.f32 1.442695, %v3442_v25  ;;  %v8485_v60 = vpop.eup %6816  ;;  %v3429_v44 = vpop.xlane.xlu0 %3428  ;;  %v3511_v47 = vsel %vm1509_vm2, %v8483_v18, 0.0 }
 0x3b4   :  { %8986 = vst [vmem:[#allocation48_spill] sm:$0xff] %v8485_v60  ;;  %v8487_v23 = vpop.xlane.xlu1 %1619  ;;  %v3445_v9 = vsub.f32 %v8209_v15, %v3429_v44  ;;  %3512 = vadd.xlane.f32.xlu0 %v3511_v47  ;;  %v3502_v53 = vsel %vm1509_vm2, %v8485_v60, 0.0 }
 0x3b5   :  { %6822 = vpow2.f32 %v3470_v27  ;;  %3503 = vadd.xlane.f32.xlu1 %v3502_v53 }
 0x3b6   :  { %v8494_v16 = vpop.eup %6818  ;;  %v3476_v0 = vmul.f32 1.442695, %v3445_v9 }
 0x3b7   :  { %8987 = vst [vmem:[#allocation49_spill] sm:$0xff] %v8494_v16  ;;  %v4323_v13 = vpop.xlane.xlu0 %4322  ;;  %v3517_v25 = vsel %vm1509_vm2, %v8494_v16, 0.0 }
 0x3b8   :  { %v8496_v57 = vpop.xlane.xlu1 %1631  ;;  %6824 = vpow2.f32 %v3476_v0  ;;  %v4367_v18 = vsub.f32 %v8218_v50, %v4323_v13  ;;  %3518 = vadd.xlane.f32.xlu0 %v3517_v25 }
 0x3ba   :  { %v4384_v15 = vmul.f32 1.442695, %v4367_v18 }
 0x3bb   :  { %v8501_v27 = vpop.eup %6820  ;;  %v8503_v44 = vpop.xlane.xlu0 %1628 }
 0x3bc   :  { %8988 = vst [vmem:[#allocation50_spill] sm:$0xff] %v8501_v27  ;;  %v3426_v47 = vpop.xlane.xlu1 %3425  ;;  %v3508_v53 = vsel %vm1509_vm2, %v8501_v27, 0.0  ;;  %6826 = vpow2.f32 %v4384_v15 }
 0x3bd   :  { %v3444_v9 = vsub.f32 %v8231_v46, %v3426_v47  ;;  %3509 = vadd.xlane.f32.xlu1 %v3508_v53 }
 0x3bf   :  { %v8508_v60 = vpop.eup %6822  ;;  %v3474_v16 = vmul.f32 1.442695, %v3444_v9  ;;  %v8510_v0 = vpop.xlane.xlu0 %1646 }
 0x3c0   :  { %8989 = vst [vmem:[#allocation51_spill] sm:$0xff] %v8508_v60  ;;  %v4320_v50 = vpop.xlane.xlu1 %4319  ;;  %v3514_v13 = vsel %vm1509_vm2, %v8508_v60, 0.0 }
 0x3c1   :  { %6828 = vpow2.f32 %v3474_v16  ;;  %v4366_v18 = vsub.f32 %v8239_v19, %v4320_v50  ;;  %3515 = vadd.xlane.f32.xlu1 %v3514_v13 }
 0x3c2   :  { %v8515_v25 = vpop.eup %6824 }
 0x3c3   :  { %8990 = vst [vmem:[#allocation52_spill] sm:$0xff] %v8515_v25  ;;  %v4382_v27 = vmul.f32 1.442695, %v4366_v18  ;;  %v4329_v15 = vpop.xlane.xlu0 %4328  ;;  %v3523_v46 = vsel %vm1509_vm2, %v8515_v25, 0.0 }
 0x3c4   :  { %v8517_v4 = vpop.xlane.xlu1 %1625  ;;  %v4369_v47 = vsub.f32 %v8250_v41, %v4329_v15  ;;  %3524 = vadd.xlane.f32.xlu0 %v3523_v46 }
 0x3c5   :  { %6830 = vpow2.f32 %v4382_v27 }
 0x3c6   :  { %v8522_v53 = vpop.eup %6826  ;;  %v4388_v9 = vmul.f32 1.442695, %v4369_v47 }
 0x3c7   :  { %v4335_v16 = vpop.xlane.xlu0 %4334  ;;  %v4417_v19 = vsel %vm1509_vm2, %v8522_v53, 0.0 }
 0x3c8   :  { %v8524_v60 = vpop.xlane.xlu1 %1643  ;;  %6832 = vpow2.f32 %v4388_v9  ;;  %v4371_v50 = vsub.f32 %v8259_v39, %v4335_v16  ;;  %4418 = vadd.xlane.f32.xlu0 %v4417_v19 }
 0x3ca   :  { %v4392_v18 = vmul.f32 1.442695, %v4371_v50 }
 0x3cb   :  { %v8529_v13 = vpop.eup %6828  ;;  %v8531_v27 = vpop.xlane.xlu0 %1640 }
 0x3cc   :  { %8991 = vst [vmem:[#allocation53_spill] sm:$0xff] %v8529_v13  ;;  %v4326_v41 = vpop.xlane.xlu1 %4325  ;;  %v3520_v15 = vsel %vm1509_vm2, %v8529_v13, 0.0  ;;  %6834 = vpow2.f32 %v4392_v18 }
 0x3cd   :  { %v4368_v46 = vsub.f32 %v8268_v62, %v4326_v41  ;;  %3521 = vadd.xlane.f32.xlu1 %v3520_v15 }
 0x3cf   :  { %v8536_v47 = vpop.eup %6830  ;;  %v4386_v25 = vmul.f32 1.442695, %v4368_v46  ;;  %v4341_v9 = vpop.xlane.xlu0 %4340 }
 0x3d0   :  { %v4332_v58 = vpop.xlane.xlu1 %4331  ;;  %v4414_v39 = vsel %vm1509_vm2, %v8536_v47, 0.0  ;;  %v4373_v16 = vsub.f32 %v8280_v45, %v4341_v9 }
 0x3d1   :  { %6836 = vpow2.f32 %v4386_v25  ;;  %v4370_v19 = vsub.f32 %v8278_v32, %v4332_v58  ;;  %4415 = vadd.xlane.f32.xlu1 %v4414_v39 }
 0x3d2   :  { %v8542_v50 = vpop.eup %6832  ;;  %v4396_v18 = vmul.f32 1.442695, %v4373_v16 }
 0x3d3   :  { %v4390_v13 = vmul.f32 1.442695, %v4370_v19  ;;  %v4347_v62 = vpop.xlane.xlu0 %4346  ;;  %v4423_v15 = vsel %vm1509_vm2, %v8542_v50, 0.0 }
 0x3d4   :  { %v8544_v41 = vpop.xlane.xlu1 %1637  ;;  %6838 = vpow2.f32 %v4396_v18  ;;  %v4375_v46 = vsub.f32 %v8286_v21, %v4347_v62  ;;  %4424 = vadd.xlane.f32.xlu0 %v4423_v15 }
 0x3d5   :  { %6840 = vpow2.f32 %v4390_v13 }
 0x3d6   :  { %v8549_v25 = vpop.eup %6834  ;;  %v4400_v45 = vmul.f32 1.442695, %v4375_v46 }
 0x3d7   :  { %v8551_v32 = vpop.xlane.xlu0 %1652  ;;  %v4429_v9 = vsel %vm1509_vm2, %v8549_v25, 0.0 }
 0x3d8   :  { %v4338_v58 = vpop.xlane.xlu1 %4337  ;;  %6842 = vpow2.f32 %v4400_v45  ;;  %4430 = vadd.xlane.f32.xlu0 %v4429_v9 }
 0x3d9   :  { %v4372_v39 = vsub.f32 %v8295_v42, %v4338_v58 }
 0x3db   :  { %v8556_v16 = vpop.eup %6836  ;;  %v4394_v19 = vmul.f32 1.442695, %v4372_v39  ;;  %v4353_v18 = vpop.xlane.xlu0 %4352 }
 0x3dc   :  { %v4344_v21 = vpop.xlane.xlu1 %4343  ;;  %v4420_v13 = vsel %vm1509_vm2, %v8556_v16, 0.0  ;;  %v4377_v62 = vsub.f32 %v8306_v56, %v4353_v18 }
 0x3dd   :  { %6844 = vpow2.f32 %v4394_v19  ;;  %v4374_v15 = vsub.f32 %v8304_v54, %v4344_v21  ;;  %4421 = vadd.xlane.f32.xlu1 %v4420_v13 }
 0x3de   :  { %v8562_v46 = vpop.eup %6838  ;;  %v4404_v45 = vmul.f32 1.442695, %v4377_v62 }
 0x3df   :  { %v4398_v31 = vmul.f32 1.442695, %v4374_v15  ;;  %v8564_v42 = vpop.eup %6840  ;;  %v4359_v58 = vpop.xlane.xlu0 %4358  ;;  %v4435_v39 = vsel %vm1509_vm2, %v8562_v46, 0.0 }
 0x3e0   :  { %v8566_v9 = vpop.xlane.xlu1 %1649  ;;  %6846 = vpow2.f32 %v4404_v45  ;;  %v4379_v19 = vsub.f32 %v8312_v17, %v4359_v58  ;;  %4436 = vadd.xlane.f32.xlu0 %v4435_v39  ;;  %v4426_v54 = vsel %vm1509_vm2, %v8564_v42, 0.0 }
 0x3e1   :  { %6848 = vpow2.f32 %v4398_v31  ;;  %4427 = vadd.xlane.f32.xlu1 %v4426_v54 }
 0x3e2   :  { %v8573_v56 = vpop.eup %6842  ;;  %v4408_v18 = vmul.f32 1.442695, %v4379_v19 }
 0x3e3   :  { %8992 = vst [vmem:[#allocation54_spill] sm:$0xff] %v8573_v56  ;;  %v4365_v21 = vpop.xlane.xlu0 %4364  ;;  %v4441_v62 = vsel %vm1509_vm2, %v8573_v56, 0.0 }
 0x3e4   :  { %v4350_v13 = vpop.xlane.xlu1 %4349  ;;  %6850 = vpow2.f32 %v4408_v18  ;;  %v4381_v15 = vsub.f32 %v8323_v36, %v4365_v21  ;;  %4442 = vadd.xlane.f32.xlu0 %v4441_v62 }
 0x3e5   :  { %v4376_v45 = vsub.f32 %v8321_v24, %v4350_v13 }
 0x3e6   :  { %v4412_v58 = vmul.f32 1.442695, %v4381_v15 }
 0x3e7   :  { %v8579_v17 = vpop.eup %6844  ;;  %v4402_v39 = vmul.f32 1.442695, %v4376_v45 }
 0x3e8   :  { %v4356_v31 = vpop.xlane.xlu1 %4355  ;;  %v4432_v54 = vsel %vm1509_vm2, %v8579_v17, 0.0  ;;  %6852 = vpow2.f32 %v4412_v58 }
 0x3e9   :  { %v4378_v19 = vsub.f32 %v8329_v11, %v4356_v31  ;;  %4433 = vadd.xlane.f32.xlu1 %v4432_v54  ;;  %6854 = vpow2.f32 %v4402_v39 }
 0x3ea   :  { %v8584_v56 = vpop.eup %6846 }
 0x3eb   :  { %v4406_v18 = vmul.f32 1.442695, %v4378_v19  ;;  %v8586_v36 = vpop.eup %6848  ;;  %v4447_v21 = vsel %vm1509_vm2, %v8584_v56, 0.0 }
 0x3ec   :  { %v4362_v24 = vpop.xlane.xlu1 %4361  ;;  %4448 = vadd.xlane.f32.xlu0 %v4447_v21  ;;  %v4438_v62 = vsel %vm1509_vm2, %v8586_v36, 0.0 }
 0x3ed   :  { %6856 = vpow2.f32 %v4406_v18  ;;  %v4380_v13 = vsub.f32 %v8335_v63, %v4362_v24  ;;  %4439 = vadd.xlane.f32.xlu1 %v4438_v62 }
 0x3ee   :  { %v8593_v11 = vpop.eup %6850 }
 0x3ef   :  { %v4410_v15 = vmul.f32 1.442695, %v4380_v13  ;;  %v4453_v45 = vsel %vm1509_vm2, %v8593_v11, 0.0 }
 0x3f0   :  { %4454 = vadd.xlane.f32.xlu0 %v4453_v45 }
 0x3f1   :  { %6858 = vpow2.f32 %v4410_v15 }
 0x3f2   :  { %v8597_v58 = vpop.eup %6852  ;;  %6860 = vrcp.f32 %v8425_v29 }
 0x3f3   :  { %v8599_v39 = vpop.eup %6854  ;;  %v4459_v63 = vsel %vm1509_vm2, %v8597_v58, 0.0 }
 0x3f4   :  { %4460 = vadd.xlane.f32.xlu0 %v4459_v63  ;;  %v4444_v31 = vsel %vm1509_vm2, %v8599_v39, 0.0 }
 0x3f5   :  { %4445 = vadd.xlane.f32.xlu1 %v4444_v31 }
 0x3f7   :  { %v8605_v54 = vpop.eup %6856 }
 0x3f8   :  { %v4450_v19 = vsel %vm1509_vm2, %v8605_v54, 0.0 }
 0x3f9   :  { %4451 = vadd.xlane.f32.xlu1 %v4450_v19 }
 0x3fb   :  { %v8609_v18 = vpop.eup %6858 }
 0x3fc   :  { %v4456_v24 = vsel %vm1509_vm2, %v8609_v18, 0.0  ;;  %v6861_v15 = vpop.eup %6860 }
 0x3fd   :  { %4457 = vadd.xlane.f32.xlu1 %v4456_v24  ;;  %v1671_v31 = vmul.f32 %v6861_v15, %v8146_v55 }
 0x400   :  { %v2547_v21 = vpop.xlane.xlu0 %2546 }
 0x401   :  { %6862 = vrcp.f32 %v2547_v21 }
 0x402   :  { %6864 = vrcp.f32 %v8436_v12 }
 0x404   :  { %v2544_v13 = vpop.xlane.xlu0 %2543 }
 0x405   :  { %6866 = vrcp.f32 %v2544_v13 }
 0x406   :  { %6868 = vrcp.f32 %v8464_v10 }
 0x409   :  { %v8616_v62 = vpop.xlane.xlu1 %2552 }
 0x40a   :  { %v2550_v45 = vpop.xlane.xlu0 %2549 }
 0x40b   :  { %6870 = vrcp.f32 %v2550_v45  ;;  %v6863_v63 = vpop.eup %6862 }
 0x40c   :  { %6872 = vrcp.f32 %v8487_v23  ;;  %v2607_v29 = vmul.f32 %v6863_v63, %v8347_v7  ;;  %v6865_v24 = vpop.eup %6864 }
 0x40d   :  { %v8621_v19 = vpop.xlane.xlu1 %2558  ;;  %v1670_v13 = vmul.f32 %v6865_v24, %v8157_v2 }
 0x40e   :  { %v2556_v12 = vpop.xlane.xlu0 %2555  ;;  %v8623_v21 = vadd.f32 %v2607_v29, %v1671_v31  ;;  %v8993_v31 = vld [vmem:[#allocation31_spill] sm:$0xff] }
 0x40f   :  { %6874 = vrcp.f32 %v2556_v12  ;;  %v6867_v10 = vpop.eup %6866 }
 0x410   :  { %6876 = vrcp.f32 %v8503_v44  ;;  %v2606_v55 = vmul.f32 %v6867_v10, %v8351_v3  ;;  %v6869_v7 = vpop.eup %6868 }
 0x411   :  { %6878 = vrcp.f32 %v8517_v4  ;;  %v2565_v15 = vpop.xlane.xlu1 %2564  ;;  %v1672_v29 = vmul.f32 %v6869_v7, %v8993_v31 }
 0x412   :  { %6880 = vrcp.f32 %v2565_v15  ;;  %v2562_v23 = vpop.xlane.xlu0 %2561  ;;  %v8629_v45 = vadd.f32 %v2606_v55, %v1670_v13  ;;  %v8994_v13 = vld [vmem:[#allocation34_spill] sm:$0xff] }
 0x413   :  { %6882 = vrcp.f32 %v2562_v23 }
 0x414   :  { %6884 = vrcp.f32 %v8478_v34 }
 0x415   :  { %v6871_v63 = vpop.eup %6870  ;;  %6886 = vrcp.f32 %v8496_v57 }
 0x416   :  { %v2608_v2 = vmul.f32 %v6871_v63, %v8361_v48  ;;  %v2571_v44 = vpop.xlane.xlu1 %2570  ;;  %v6873_v4 = vpop.eup %6872  ;;  %v8995_v63 = vld [vmem:[#allocation36_spill] sm:$0xff] }
 0x417   :  { %6888 = vrcp.f32 %v2571_v44  ;;  %v2568_v3 = vpop.xlane.xlu0 %2567  ;;  %v1674_v55 = vmul.f32 %v6873_v4, %v8994_v13  ;;  %v8996_v44 = vld [vmem:[#allocation38_spill] sm:$0xff] }
 0x418   :  { %6890 = vrcp.f32 %v2568_v3  ;;  %v8635_v24 = vadd.f32 %v2608_v2, %v1672_v29 }
 0x419   :  { %v6875_v12 = vpop.eup %6874  ;;  %6892 = vrcp.f32 %v8531_v27 }
 0x41a   :  { %v6877_v10 = vpop.eup %6876  ;;  %v2610_v15 = vmul.f32 %v6875_v12, %v8369_v33  ;;  %6894 = vrcp.f32 %v8544_v41 }
 0x41b   :  { %v6879_v34 = vpop.eup %6878  ;;  %v1677_v31 = vmul.f32 %v6877_v10, %v8995_v63 }
 0x41c   :  { %v6881_v23 = vpop.eup %6880  ;;  %v2577_v48 = vpop.xlane.xlu1 %2576  ;;  %v8641_v57 = vadd.f32 %v2610_v15, %v1674_v55  ;;  %v1676_v4 = vmul.f32 %v6879_v34, %v8996_v44  ;;  %v8997_v15 = vld [vmem:[#allocation33_spill] sm:$0xff] }
 0x41d   :  { %v6883_v7 = vpop.eup %6882  ;;  %v2613_v29 = vmul.f32 %v6881_v23, %v8377_v26  ;;  %6896 = vrcp.f32 %v2577_v48  ;;  %v2574_v2 = vpop.xlane.xlu0 %2573  ;;  %v8998_v23 = vld [vmem:[#allocation35_spill] sm:$0xff] }
 0x41e   :  { %v2612_v33 = vmul.f32 %v6883_v7, %v8379_v49  ;;  %6898 = vrcp.f32 %v2574_v2  ;;  %v6885_v3 = vpop.eup %6884 }
 0x41f   :  { %6900 = vrcp.f32 %v8510_v0  ;;  %v8648_v27 = vadd.f32 %v2613_v29, %v1677_v31  ;;  %v6887_v41 = vpop.eup %6886  ;;  %v1679_v34 = vmul.f32 %v6885_v3, %v8997_v15 }
 0x420   :  { %6902 = vrcp.f32 %v8524_v60  ;;  %v2583_v12 = vpop.xlane.xlu1 %2582  ;;  %v8651_v13 = vadd.f32 %v2612_v33, %v1676_v4  ;;  %v1678_v48 = vmul.f32 %v6887_v41, %v8998_v23  ;;  %v8999_v4 = vld [vmem:[#allocation40_spill] sm:$0xff] }
 0x421   :  { %v6889_v10 = vpop.eup %6888  ;;  %6904 = vrcp.f32 %v2583_v12  ;;  %v2580_v26 = vpop.xlane.xlu0 %2579 }
 0x422   :  { %v6891_v55 = vpop.eup %6890  ;;  %v2615_v49 = vmul.f32 %v6889_v10, %v8387_v38  ;;  %6906 = vrcp.f32 %v2580_v26 }
 0x423   :  { %6908 = vrcp.f32 %v8551_v32  ;;  %v2614_v0 = vmul.f32 %v6891_v55, %v8390_v14  ;;  %v6893_v63 = vpop.eup %6892  ;;  %v9000_v14 = vld [vmem:[#allocation41_spill] sm:$0xff] }
 0x424   :  { %6910 = vrcp.f32 %v8566_v9  ;;  %v8659_v60 = vadd.f32 %v2615_v49, %v1679_v34  ;;  %v2589_v7 = vpop.xlane.xlu1 %2588  ;;  %v6895_v2 = vpop.eup %6894  ;;  %v1681_v33 = vmul.f32 %v6893_v63, %v8999_v4  ;;  %v9001_v49 = vld [vmem:[#allocation37_spill] sm:$0xff]  ;;  %v9003_v4 = vld [vmem:[#allocation42_spill] sm:$0xff] }
 0x425   :  { %6912 = vrcp.f32 %v2589_v7  ;;  %v2586_v31 = vpop.xlane.xlu0 %2585  ;;  %v8661_v29 = vadd.f32 %v2614_v0, %v1678_v48  ;;  %v1680_v41 = vmul.f32 %v6895_v2, %v9000_v14  ;;  %v9002_v7 = vld [vmem:[#allocation39_spill] sm:$0xff] }
 0x426   :  { %6914 = vrcp.f32 %v2586_v31  ;;  %v9004_v14 = vld [vmem:[#allocation43_spill] sm:$0xff] }
 0x427   :  { %v6897_v38 = vpop.eup %6896 }
 0x428   :  { %v6899_v44 = vpop.eup %6898  ;;  %v2617_v32 = vmul.f32 %v6897_v38, %v8399_v20 }
 0x429   :  { %v6901_v3 = vpop.eup %6900  ;;  %v2616_v9 = vmul.f32 %v6899_v44, %v8401_v59  ;;  %v3483_v55 = vpop.xlane.xlu0 %3482 }
 0x42a   :  { %v6903_v12 = vpop.eup %6902  ;;  %v8667_v10 = vadd.f32 %v2617_v32, %v1681_v33  ;;  %v1683_v23 = vmul.f32 %v6901_v3, %v9001_v49  ;;  %6916 = vrcp.f32 %v3483_v55 }
 0x42b   :  { %v6905_v26 = vpop.eup %6904  ;;  %v8669_v15 = vadd.f32 %v2616_v9, %v1680_v41  ;;  %v1682_v20 = vmul.f32 %v6903_v12, %v9002_v7 }
 0x42c   :  { %v6907_v34 = vpop.eup %6906  ;;  %v2619_v48 = vmul.f32 %v6905_v26, %v8409_v30 }
 0x42d   :  { %v6909_v0 = vpop.eup %6908  ;;  %v2618_v63 = vmul.f32 %v6907_v34, %v8411_v22  ;;  %v3489_v41 = vpop.xlane.xlu0 %3488 }
 0x42e   :  { %v6911_v31 = vpop.eup %6910  ;;  %v8675_v2 = vadd.f32 %v2619_v48, %v1683_v23  ;;  %v1685_v33 = vmul.f32 %v6909_v0, %v9003_v4  ;;  %v3480_v22 = vpop.xlane.xlu1 %3479 }
 0x42f   :  { %v6913_v59 = vpop.eup %6912  ;;  %v8677_v38 = vadd.f32 %v2618_v63, %v1682_v20  ;;  %v1684_v3 = vmul.f32 %v6911_v31, %v9004_v14 }
 0x430   :  { %v6915_v44 = vpop.eup %6914  ;;  %v2621_v32 = vmul.f32 %v6913_v59, %v8419_v52 }
 0x431   :  { %v2620_v30 = vmul.f32 %v6915_v44, %v8421_v43  ;;  %v3495_v26 = vpop.xlane.xlu0 %3494 }
 0x432   :  { %v8683_v9 = vadd.f32 %v2621_v32, %v1685_v33  ;;  %v3486_v34 = vpop.xlane.xlu1 %3485 }
 0x433   :  { %v8685_v12 = vadd.f32 %v2620_v30, %v1684_v3 }
 0x434   :  { %v6917_v4 = vpop.eup %6916 }
 0x435   :  { %v3501_v49 = vpop.xlane.xlu0 %3500  ;;  %v3543_v33 = vmul.f32 %v6917_v4, %v8432_v37 }
 0x436   :  { %v3492_v23 = vpop.xlane.xlu1 %3491 }
 0x437   :  { %v3559_v14 = vadd.f32 %v3543_v33, %v8623_v21 }
 0x439   :  { %v3507_v48 = vpop.xlane.xlu0 %3506 }
 0x43e   :  { %v8687_v7 = vpop.xlane.xlu1 %3497 }
 0x441   :  { %v8689_v0 = vpop.xlane.xlu0 %3512 }
 0x442   :  { %v8691_v52 = vpop.xlane.xlu1 %3503 }
 0x445   :  { %v8693_v20 = vpop.xlane.xlu0 %3518 }
 0x44a   :  { %v8695_v43 = vpop.xlane.xlu1 %3509 }
 0x44e   :  { %v8699_v31 = vpop.xlane.xlu1 %3515 }
 0x451   :  { %v8697_v63 = vpop.xlane.xlu0 %3524 }
 0x455   :  { %v4419_v59 = vpop.xlane.xlu0 %4418 }
 0x456   :  { %6918 = vrcp.f32 %v4419_v59 }
 0x457   :  { %6920 = vrcp.f32 %v3480_v22 }
 0x458   :  { %6922 = vrcp.f32 %v8616_v62 }
 0x459   :  { %6924 = vrcp.f32 %v8445_v6 }
 0x45a   :  { %v8701_v44 = vpop.xlane.xlu1 %3521  ;;  %6926 = vrcp.f32 %v3489_v41 }
 0x45b   :  { %6928 = vrcp.f32 %v8621_v19 }
 0x45e   :  { %v4416_v55 = vpop.xlane.xlu1 %4415 }
 0x45f   :  { %6930 = vrcp.f32 %v4416_v55 }
 0x460   :  { %6932 = vrcp.f32 %v8471_v8  ;;  %v6919_v32 = vpop.eup %6918 }
 0x461   :  { %6934 = vrcp.f32 %v3495_v26  ;;  %v4479_v3 = vmul.f32 %v6919_v32, %v8522_v53  ;;  %v4425_v30 = vpop.xlane.xlu0 %4424  ;;  %v6921_v22 = vpop.eup %6920  ;;  %v9005_v53 = vld [vmem:[#allocation30_spill] sm:$0xff] }
 0x462   :  { %6936 = vrcp.f32 %v4425_v30  ;;  %v6923_v62 = vpop.eup %6922  ;;  %v3542_v19 = vmul.f32 %v6921_v22, %v8430_v1 }
 0x463   :  { %6938 = vrcp.f32 %v3486_v34  ;;  %v4495_v6 = vadd.f32 %v4479_v3, %v3559_v14  ;;  %v6925_v41 = vpop.eup %6924  ;;  %v2609_v26 = vmul.f32 %v6923_v62, %v8358_v51  ;;  %v9006_v62 = vld [vmem:[#allocation32_spill] sm:$0xff] }
 0x464   :  { %v6927_v4 = vpop.eup %6926  ;;  %v1673_v33 = vmul.f32 %v6925_v41, %v9005_v53  ;;  %v3558_v1 = vadd.f32 %v3542_v19, %v8629_v45 }
 0x465   :  { %v4431_v37 = vpop.xlane.xlu0 %4430  ;;  %v4511_v59 = vmul.f32 0.25, %v4495_v6  ;;  %v6929_v8 = vpop.eup %6928  ;;  %v3545_v34 = vmul.f32 %v6927_v4, %v8441_v35 }
 0x466   :  { %6940 = vrcp.f32 %v4431_v37  ;;  %v2625_v30 = vadd.f32 %v2609_v26, %v1673_v33  ;;  %v2611_v51 = vmul.f32 %v6929_v8, %v8367_v28  ;;  %v9007_v26 = vld [vmem:[#allocation24_spill] sm:$0xff] }
 0x467   :  { %5411 = vst.msk [vmem:[#allocation17 + $0x8] sm:$0xff] %vm1509_vm2, %v4511_v59  ;;  %6942 = vrcp.f32 %v3501_v49 }
 0x468   :  { %6944 = vrcp.f32 %v3492_v23  ;;  %v3561_v37 = vadd.f32 %v3545_v34, %v2625_v30  ;;  %v9009_v30 = vld [vmem:[#allocation44_spill] sm:$0xff] }
 0x469   :  { %v6931_v21 = vpop.eup %6930 }
 0x46a   :  { %v6933_v55 = vpop.eup %6932  ;;  %v4422_v32 = vpop.xlane.xlu1 %4421  ;;  %v4478_v14 = vmul.f32 %v6931_v21, %v8536_v47 }
 0x46b   :  { %v6935_v3 = vpop.eup %6934  ;;  %6946 = vrcp.f32 %v4422_v32  ;;  %v1675_v41 = vmul.f32 %v6933_v55, %v9006_v62  ;;  %v9008_v55 = vld [vmem:[#allocation26_spill] sm:$0xff] }
 0x46c   :  { %6948 = vrcp.f32 %v3507_v48  ;;  %v4494_v22 = vadd.f32 %v4478_v14, %v3558_v1  ;;  %v6937_v6 = vpop.eup %6936  ;;  %v3547_v35 = vmul.f32 %v6935_v3, %v8452_v5 }
 0x46d   :  { %v6939_v49 = vpop.eup %6938  ;;  %v4481_v23 = vmul.f32 %v6937_v6, %v8542_v50  ;;  %v4437_v4 = vpop.xlane.xlu0 %4436  ;;  %v2627_v19 = vadd.f32 %v2611_v51, %v1675_v41  ;;  %v9010_v6 = vld [vmem:[#allocation45_spill] sm:$0xff] }
 0x46e   :  { %v4510_v45 = vmul.f32 0.25, %v4494_v22  ;;  %6950 = vrcp.f32 %v4437_v4  ;;  %v4428_v47 = vpop.xlane.xlu1 %4427  ;;  %v3544_v8 = vmul.f32 %v6939_v49, %v8443_v40 }
 0x46f   :  { %6952 = vrcp.f32 %v4428_v47  ;;  %v4497_v28 = vadd.f32 %v4481_v23, %v3561_v37  ;;  %v3563_v5 = vadd.f32 %v3547_v35, %v2627_v19  ;;  %v9011_v47 = vld [vmem:[#allocation46_spill] sm:$0xff] }
 0x470   :  { %6253 = vmatprep.mubr.msk.f32.mxu0 %vm1509_vm2, %v4510_v45  ;;  %5410 = vst.msk [vmem:[#allocation17] sm:$0xff] %vm1509_vm2, %v4510_v45  ;;  %v6941_v48 = vpop.eup %6940  ;;  %6954 = vrcp.f32 %v8687_v7 }
 0x471   :  { %6254 = vmatmul.mubr.msk.f32.vlgmr.msra.gmra.mrb[52].mxu0 %vm1509_vm2, %v4511_v59  ;;  %v4483_v50 = vmul.f32 %v6941_v48, %v8549_v25  ;;  %v4443_v21 = vpop.xlane.xlu0 %4442  ;;  %v4513_v53 = vmul.f32 0.25, %v4497_v28  ;;  %v6943_v33 = vpop.eup %6942  ;;  %v3560_v59 = vadd.f32 %v3544_v8, %v8635_v24  ;;  %v9013_v28 = vld [vmem:[#allocation25_spill] sm:$0xff] }
 0x472   :  { %6564 = vmatpush3.bf16.msra.mxu0 %v9007_v26  ;;  %6956 = vrcp.f32 %v4443_v21  ;;  %v6945_v34 = vpop.eup %6944  ;;  %v3549_v25 = vmul.f32 %v6943_v33, %v8462_v61  ;;  %v9015_v21 = vld [vmem:[#allocation47_spill] sm:$0xff] }
 0x473   :  { %6570 = vmatprep.subr.bf16.mxu0 %v9008_v55  ;;  %6958 = vrcp.f32 %v8689_v0  ;;  %5413 = vst.msk [vmem:[#allocation17 + $0x18] sm:$0xff] %vm1509_vm2, %v4513_v53  ;;  %v4499_v40 = vadd.f32 %v4483_v50, %v3563_v5  ;;  %v3546_v51 = vmul.f32 %v6945_v34, %v9009_v30  ;;  %v9014_v5 = vld [vmem:[#allocation27_spill] sm:$0xff]  ;;  %v9018_v30 = vld [vmem:[#allocation49_spill] sm:$0xff] }
 0x474   :  { %6960 = vrcp.f32 %v8691_v52  ;;  %v3565_v61 = vadd.f32 %v3549_v25, %v8648_v27 }
 0x475   :  { %v6947_v7 = vpop.eup %6946  ;;  %v4515_v3 = vmul.f32 0.25, %v4499_v40  ;;  %v3562_v35 = vadd.f32 %v3546_v51, %v8641_v57 }
 0x476   :  { %v6949_v32 = vpop.eup %6948  ;;  %v4434_v1 = vpop.xlane.xlu1 %4433  ;;  %v4480_v14 = vmul.f32 %v6947_v7, %v8556_v16 }
 0x477   :  { %6962 = vrcp.f32 %v4434_v1  ;;  %5415 = vst.msk [vmem:[#allocation17 + $0x28] sm:$0xff] %vm1509_vm2, %v4515_v3  ;;  %v3551_v62 = vmul.f32 %v6949_v32, %v9010_v6  ;;  %v9017_v1 = vld [vmem:[#allocation28_spill] sm:$0xff] }
 0x478   :  { %v4496_v22 = vadd.f32 %v4480_v14, %v3560_v59  ;;  %v6951_v0 = vpop.eup %6950  ;;  %6964 = vrcp.f32 %v8693_v20  ;;  %v9016_v59 = vld [vmem:[#allocation48_spill] sm:$0xff] }
 0x479   :  { %v6953_v24 = vpop.eup %6952  ;;  %v4485_v52 = vmul.f32 %v6951_v0, %v8562_v46  ;;  %v4449_v41 = vpop.xlane.xlu0 %4448  ;;  %v3567_v27 = vadd.f32 %v3551_v62, %v8659_v60 }
 0x47a   :  { %v4512_v49 = vmul.f32 0.25, %v4496_v22  ;;  %v6955_v16 = vpop.eup %6954  ;;  %6966 = vrcp.f32 %v4449_v41  ;;  %v4440_v37 = vpop.xlane.xlu1 %4439  ;;  %v4482_v23 = vmul.f32 %v6953_v24, %v8564_v42  ;;  %v9012_v42 = vld [vmem:[#allocation54_spill] sm:$0xff] }
 0x47b   :  { %6968 = vrcp.f32 %v4440_v37  ;;  %v4501_v20 = vadd.f32 %v4485_v52, %v3565_v61  ;;  %v3548_v19 = vmul.f32 %v6955_v16, %v9011_v47  ;;  %v9019_v52 = vld [vmem:[#allocation52_spill] sm:$0xff]  ;;  %v9020_v37 = vld [vmem:[#allocation50_spill] sm:$0xff] }
 0x47c   :  { %6260 = vmatprep.mubr.msk.f32.mxu1 %vm1509_vm2, %v4512_v49  ;;  %5412 = vst.msk [vmem:[#allocation17 + $0x10] sm:$0xff] %vm1509_vm2, %v4512_v49  ;;  %v6957_v4 = vpop.eup %6956  ;;  %6970 = vrcp.f32 %v8697_v63  ;;  %v4498_v46 = vadd.f32 %v4482_v23, %v3562_v35  ;;  %v9021_v23 = vld [vmem:[#allocation29_spill] sm:$0xff] }
 0x47d   :  { %6261 = vmatmul.mubr.msk.f32.vlgmr.msra.gmra.mrb[60].mxu1 %vm1509_vm2, %v4513_v53  ;;  %v6959_v45 = vpop.eup %6958  ;;  %6972 = vrcp.f32 %v8695_v43  ;;  %v4487_v57 = vmul.f32 %v6957_v4, %v9012_v42  ;;  %v4455_v48 = vpop.xlane.xlu0 %4454  ;;  %v4517_v8 = vmul.f32 0.25, %v4501_v20  ;;  %v3564_v33 = vadd.f32 %v3548_v19, %v8651_v13 }
 0x47e   :  { %6568 = vmatpush3.bf16.msra.mxu1 %v9013_v28  ;;  %6974 = vrcp.f32 %v4455_v48  ;;  %v4514_v60 = vmul.f32 0.25, %v4498_v46  ;;  %v6961_v50 = vpop.eup %6960  ;;  %v3553_v53 = vmul.f32 %v6959_v45, %v9015_v21 }
 0x47f   :  { %6574 = vmatprep.subr.bf16.mxu1 %v9014_v5  ;;  %5417 = vst.msk [vmem:[#allocation17 + $0x38] sm:$0xff] %vm1509_vm2, %v4517_v8  ;;  %v4503_v63 = vadd.f32 %v4487_v57, %v3567_v27  ;;  %6976 = vrcp.f32 %v8699_v31  ;;  %v3550_v32 = vmul.f32 %v6961_v50, %v9016_v59  ;;  %v9022_v57 = vld [vmem:[#allocation51_spill] sm:$0xff] }
 0x480   :  { %6267 = vmatprep.mubr.msk.f32.mxu0 %vm1509_vm2, %v4514_v60  ;;  %5414 = vst.msk [vmem:[#allocation17 + $0x20] sm:$0xff] %vm1509_vm2, %v4514_v60 }
 0x481   :  { %v6963_v26 = vpop.eup %6962  ;;  %6268 = vmatmul.mubr.msk.f32.vlgmr.msra.gmra.mrb[54].mxu0 %vm1509_vm2, %v4515_v3  ;;  %v4461_v43 = vpop.xlane.xlu0 %4460  ;;  %v4519_v40 = vmul.f32 0.25, %v4503_v63  ;;  %v3569_v3 = vadd.f32 %v3553_v53, %v8667_v10  ;;  %v3566_v6 = vadd.f32 %v3550_v32, %v8661_v29  ;;  %v5175_v29 = vld [vmem:[%s8924_s9 + $0x8] sm:$0xff] }
 0x482   :  { %v4484_v34 = vmul.f32 %v6963_v26, %v8579_v17  ;;  %v6965_v7 = vpop.eup %6964  ;;  %6572 = vmatpush3.bf16.msra.mxu0 %v9008_v55  ;;  %6978 = vrcp.f32 %v4461_v43  ;;  %v4446_v25 = vpop.xlane.xlu1 %4445 }
 0x483   :  { %6578 = vmatprep.subr.bf16.mxu0 %v9017_v1  ;;  %6980 = vrcp.f32 %v4446_v25  ;;  %5419 = vst.msk [vmem:[#allocation17 + $0x48] sm:$0xff] %vm1509_vm2, %v4519_v40  ;;  %v3555_v17 = vmul.f32 %v6965_v7, %v9018_v30 }
 0x484   :  { %v4500_v14 = vadd.f32 %v4484_v34, %v3564_v33  ;;  %v6967_v31 = vpop.eup %6966  ;;  %6982 = vrcp.f32 %v8701_v44  ;;  %v5177_v33 = vld [vmem:[%s8924_s9 + $0x18] sm:$0xff] }
 0x485   :  { %v6969_v13 = vpop.eup %6968  ;;  %v4489_v51 = vmul.f32 %v6967_v31, %v8584_v56  ;;  %v5174_v56 = vld [vmem:[%s8924_s9] sm:$0xff] }
 0x486   :  { %v4516_v22 = vmul.f32 0.25, %v4500_v14  ;;  %v6971_v55 = vpop.eup %6970  ;;  %v4452_v0 = vpop.xlane.xlu1 %4451  ;;  %v4486_v62 = vmul.f32 %v6969_v13, %v8586_v36  ;;  %v3571_v36 = vadd.f32 %v3555_v17, %v8675_v2  ;;  %v6585_v45 = vpack.c.bf16 %v5175_v29, %v5174_v56 }
 0x487   :  { %v6973_v24 = vpop.eup %6972  ;;  %6984 = vrcp.f32 %v4452_v0  ;;  %v4505_v10 = vadd.f32 %v4489_v51, %v3569_v3  ;;  %v3557_v41 = vmul.f32 %v6971_v55, %v9019_v52 }
 0x488   :  { %6274 = vmatprep.mubr.msk.f32.mxu1 %vm1509_vm2, %v4516_v22  ;;  %5416 = vst.msk [vmem:[#allocation17 + $0x30] sm:$0xff] %vm1509_vm2, %v4516_v22  ;;  %v6975_v61 = vpop.eup %6974  ;;  %v4502_v44 = vadd.f32 %v4486_v62, %v3566_v6  ;;  %v3552_v35 = vmul.f32 %v6973_v24, %v9020_v37 }
 0x489   :  { %6275 = vmatmul.mubr.msk.f32.vlgmr.msra.gmra.mrb[62].mxu1 %vm1509_vm2, %v4517_v8  ;;  %v4491_v49 = vmul.f32 %v6975_v61, %v8593_v11  ;;  %v4521_v16 = vmul.f32 0.25, %v4505_v10  ;;  %v6977_v27 = vpop.eup %6976  ;;  %v3573_v47 = vadd.f32 %v3557_v41, %v8683_v9 }
 0x48a   :  { %6576 = vmatpush3.bf16.msra.mxu1 %v9014_v5  ;;  %v4458_v20 = vpop.xlane.xlu1 %4457  ;;  %v4518_v4 = vmul.f32 0.25, %v4502_v44  ;;  %v3554_v28 = vmul.f32 %v6977_v27, %v9022_v57  ;;  %v3568_v48 = vadd.f32 %v3552_v35, %v8669_v15  ;;  %v5176_v15 = vld [vmem:[%s8924_s9 + $0x10] sm:$0xff]  ;;  %s7232_s9 = smov [#allocation15]  }
 0x48b   :  { %6582 = vmatprep.subr.bf16.mxu1 %v9021_v23  ;;  %6986 = vrcp.f32 %v4458_v20  ;;  %5421 = vst.msk [vmem:[#allocation17 + $0x58] sm:$0xff] %vm1509_vm2, %v4521_v16  ;;  %v4507_v46 = vadd.f32 %v4491_v49, %v3571_v36  ;;  %v6589_v7 = vpack.c.bf16 %v5177_v33, %v5176_v15  ;;  %s5443_s26 = sshll.u32 %s7232_s9, 4  ;;  %s5444_s26 = int_to_ptr.vmem [resolvable:$true] %s5443_s26 }
 0x48c   :  { %v6979_v2 = vpop.eup %6978  ;;  %6281 = vmatprep.mubr.msk.f32.mxu0 %vm1509_vm2, %v4518_v4  ;;  %5418 = vst.msk [vmem:[#allocation17 + $0x40] sm:$0xff] %vm1509_vm2, %v4518_v4  ;;  %v3570_v53 = vadd.f32 %v3554_v28, %v8677_v38  ;;  %s7142_s17 = scalar_lea.vmem %s5444_s26, 2048  ;;  %p7147_p1 = scmp.lt.s32.totalorder %s5444_s26, %s5444_s26 }
 0x48d   :  { %v6981_v11 = vpop.eup %6980  ;;  %v4493_v19 = vmul.f32 %v6979_v2, %v8597_v58  ;;  %6282 = vmatmul.mubr.msk.f32.vlgmr.msra.gmra.mrb[56].mxu0 %vm1509_vm2, %v4519_v40  ;;  %v4523_v42 = vmul.f32 0.25, %v4507_v46  ;;  %v9023_v58 = vld [vmem:[#allocation53_spill] sm:$0xff]  ;;  %p7143_p0 = scmp.ne.s32.totalorder %s5444_s26, %s7142_s17  ;;  %p7148_p2 = scmp.lt.s32.totalorder %s7142_s17, %s7142_s17 }
 0x48e   :  { %6580 = vmatpush3.bf16.msra.mxu0 %v9017_v1  ;;  %v4488_v8 = vmul.f32 %v6981_v11, %v8599_v39  ;;  %v6983_v5 = vpop.eup %6982 }
 0x48f   :  { %5423 = vst.msk [vmem:[#allocation17 + $0x68] sm:$0xff] %vm1509_vm2, %v4523_v42  ;;  %v4509_v60 = vadd.f32 %v4493_v19, %v3573_v47  ;;  %6586 = vmatprep.subr.bf16.mxu0 %v6585_v45  ;;  %v3556_v26 = vmul.f32 %v6983_v5, %v9023_v58  ;;  %p7149_p3 = por %p7148_p2, %p7147_p1 }
 0x490   :  { %v4504_v50 = vadd.f32 %v4488_v8, %v3568_v48 }
 0x491   :  { %v6985_v9 = vpop.eup %6984  ;;  %v4525_v63 = vmul.f32 0.25, %v4509_v60  ;;  %v3572_v38 = vadd.f32 %v3556_v26, %v8685_v12  ;;  %p7150_p4 = pnand %p7149_p3, %p7143_p0 }
 0x492   :  { %v4520_v21 = vmul.f32 0.25, %v4504_v50  ;;  %v4490_v43 = vmul.f32 %v6985_v9, %v8605_v54 }
 0x493   :  { %5425 = vst.msk [vmem:[#allocation17 + $0x78] sm:$0xff] %vm1509_vm2, %v4525_v63 }
 0x494   :  { %6288 = vmatprep.mubr.msk.f32.mxu1 %vm1509_vm2, %v4520_v21  ;;  %5420 = vst.msk [vmem:[#allocation17 + $0x50] sm:$0xff] %vm1509_vm2, %v4520_v21  ;;  %v4506_v39 = vadd.f32 %v4490_v43, %v3570_v53 }
 0x495   :  { %v6987_v34 = vpop.eup %6986  ;;  %6289 = vmatmul.mubr.msk.f32.vlgmr.msra.gmra.mrb[64].mxu1 %vm1509_vm2, %v4521_v16 }
 0x496   :  { %6584 = vmatpush3.bf16.msra.mxu1 %v9021_v23  ;;  %v4522_v54 = vmul.f32 0.25, %v4506_v39  ;;  %v4492_v40 = vmul.f32 %v6987_v34, %v8609_v18 }
 0x498   :  { %6295 = vmatprep.mubr.msk.f32.mxu0 %vm1509_vm2, %v4522_v54  ;;  %5422 = vst.msk [vmem:[#allocation17 + $0x60] sm:$0xff] %vm1509_vm2, %v4522_v54  ;;  %v4508_v59 = vadd.f32 %v4492_v40, %v3572_v38 }
 0x499   :  { %6296 = vmatmul.mubr.msk.f32.vlgmr.msra.gmra.mrb[58].mxu0 %vm1509_vm2, %v4523_v42 }
 0x49a   :  { %v4524_v32 = vmul.f32 0.25, %v4508_v59  ;;  %6588 = vmatpush3.bf16.msra.mxu0 %v6585_v45 }
 0x49b   :  { %6590 = vmatprep.subr.bf16.mxu0 %v6589_v7 }
 0x49c   :  { %6302 = vmatprep.mubr.msk.f32.mxu1 %vm1509_vm2, %v4524_v32  ;;  %5424 = vst.msk [vmem:[#allocation17 + $0x70] sm:$0xff] %vm1509_vm2, %v4524_v32 }
 0x49d   :  { %6303 = vmatmul.mubr.msk.f32.vlgmr.msra.gmra.mrb[66].mxu1 %vm1509_vm2, %v4525_v63 }
 0x49e   :  { %6592 = vmatpush3.bf16.msra.mxu0 %v6589_v7 }
 0x544   :  { %v6255_v12 = vpop.f32.mrb[52].mxu0 }
 0x545   :  { %5395 = vst.msk [vmem:[#allocation15 + $0x8] sm:$0xff] %vm195_vm0, %v6255_v12  ;;  %v4598_v18 = vpop.f32.mrb[53].mxu0 }
 0x546   :  { %5394 = vst.msk [vmem:[#allocation15] sm:$0xff] %vm195_vm0, %v4598_v18  ;;  %6313 = vmatprep.mubr.msk.f32.mxu0 %vm195_vm0, %v4598_v18 }
 0x547   :  { %6314 = vmatmul.mubr.msk.f32.vlgmr.msra.gmra.mrb[60].mxu0 %vm195_vm0, %v6255_v12 }
 0x550   :  { %v6262_v25 = vpop.f32.mrb[60].mxu1 }
 0x551   :  { %5397 = vst.msk [vmem:[#allocation15 + $0x18] sm:$0xff] %vm195_vm0, %v6262_v25  ;;  %v4679_v1 = vpop.f32.mrb[61].mxu1 }
 0x552   :  { %5396 = vst.msk [vmem:[#allocation15 + $0x10] sm:$0xff] %vm195_vm0, %v4679_v1  ;;  %6316 = vmatprep.mubr.msk.f32.mxu0 %vm195_vm0, %v4679_v1 }
 0x553   :  { %6317 = vmatmul.mubr.msk.f32.gmra.mrb[62].mxu0 %vm195_vm0, %v6262_v25 }
 0x554   :  { %v6269_v14 = vpop.f32.mrb[54].mxu0 }
 0x555   :  { %5399 = vst.msk [vmem:[#allocation15 + $0x28] sm:$0xff] %vm195_vm0, %v6269_v14  ;;  %v4760_v31 = vpop.f32.mrb[55].mxu0 }
 0x556   :  { %5398 = vst.msk [vmem:[#allocation15 + $0x20] sm:$0xff] %vm195_vm0, %v4760_v31  ;;  %6319 = vmatprep.mubr.msk.f32.mxu0 %vm195_vm0, %v4760_v31 }
 0x557   :  { %6320 = vmatmul.mubr.msk.f32.gmra.mrb[64].mxu0 %vm195_vm0, %v6269_v14 }
 0x55c   :  { %v6276_v3 = vpop.f32.mrb[62].mxu1 }
 0x55d   :  { %5401 = vst.msk [vmem:[#allocation15 + $0x38] sm:$0xff] %vm195_vm0, %v6276_v3  ;;  %v4841_v13 = vpop.f32.mrb[63].mxu1 }
 0x55e   :  { %5400 = vst.msk [vmem:[#allocation15 + $0x30] sm:$0xff] %vm195_vm0, %v4841_v13  ;;  %6322 = vmatprep.mubr.msk.f32.mxu0 %vm195_vm0, %v4841_v13 }
 0x55f   :  { %6323 = vmatmul.mubr.msk.f32.gmra.mrb[66].mxu0 %vm195_vm0, %v6276_v3 }
 0x560   :  { %v6283_v30 = vpop.f32.mrb[56].mxu0 }
 0x561   :  { %5403 = vst.msk [vmem:[#allocation15 + $0x48] sm:$0xff] %vm195_vm0, %v6283_v30  ;;  %v4922_v17 = vpop.f32.mrb[57].mxu0 }
 0x562   :  { %5402 = vst.msk [vmem:[#allocation15 + $0x40] sm:$0xff] %vm195_vm0, %v4922_v17  ;;  %6325 = vmatprep.mubr.msk.f32.mxu0 %vm195_vm0, %v4922_v17 }
 0x563   :  { %6326 = vmatmul.mubr.msk.f32.gmra.mrb[68].mxu0 %vm195_vm0, %v6283_v30 }
 0x568   :  { %v6290_v51 = vpop.f32.mrb[64].mxu1 }
 0x569   :  { %5405 = vst.msk [vmem:[#allocation15 + $0x58] sm:$0xff] %vm195_vm0, %v6290_v51  ;;  %v5003_v22 = vpop.f32.mrb[65].mxu1 }
 0x56a   :  { %5404 = vst.msk [vmem:[#allocation15 + $0x50] sm:$0xff] %vm195_vm0, %v5003_v22  ;;  %6328 = vmatprep.mubr.msk.f32.mxu0 %vm195_vm0, %v5003_v22 }
 0x56b   :  { %6329 = vmatmul.mubr.msk.f32.gmra.mrb[70].mxu0 %vm195_vm0, %v6290_v51 }
 0x56c   :  { %v6297_v55 = vpop.f32.mrb[58].mxu0 }
 0x56d   :  { %5407 = vst.msk [vmem:[#allocation15 + $0x68] sm:$0xff] %vm195_vm0, %v6297_v55  ;;  %v5084_v0 = vpop.f32.mrb[59].mxu0 }
 0x56e   :  { %5406 = vst.msk [vmem:[#allocation15 + $0x60] sm:$0xff] %vm195_vm0, %v5084_v0  ;;  %6331 = vmatprep.mubr.msk.f32.mxu0 %vm195_vm0, %v5084_v0 }
 0x56f   :  { %6332 = vmatmul.mubr.msk.f32.gmra.mrb[72].mxu0 %vm195_vm0, %v6297_v55 }
 0x570   :  { %v6304_v6 = vpop.f32.mrb[66].mxu1 }
 0x571   :  { %5409 = vst.msk [vmem:[#allocation15 + $0x78] sm:$0xff] %vm195_vm0, %v6304_v6  ;;  %v5165_v62 = vpop.f32.mrb[67].mxu1 }
 0x572   :  { %5408 = vst.msk [vmem:[#allocation15 + $0x70] sm:$0xff] %vm195_vm0, %v5165_v62  ;;  %6334 = vmatprep.mubr.msk.f32.mxu0 %vm195_vm0, %v5165_v62 }
 0x573   :  { %6335 = vmatmul.mubr.msk.f32.gmra.mrb[74].mxu0 %vm195_vm0, %v6304_v6 }
 0x574   :  { %7153 = shalt.err (!%p7150_p4)
}
 0x575   :  { %s7154_s19 = scalar_lea.hbm %s8927_s12, 2048 }
 0x576   :  { %p7155_p5 = scmp.ne.s32.totalorder %s8927_s12, %s7154_s19  ;;  %p7158_p6 = scmp.lt.u32.totalorder %s7154_s19, %s8927_s12 }
 0x578   :  { %p7160_p7 = pnand %p7158_p6, %p7155_p5 }
 0x57a   :  { %7163 = shalt.err (!%p7160_p7)
}
 0x57b   :  { %5449 = dma.vmem_to_hbm [thread:$0]  %s5444_s26, 2048, %s8927_s12, [#allocation16], %s7222_s20, %s7222_s20, %s7223_s21  }
 0x57c   :  { %s7233_s7 = smov [#allocation17]  }
 0x57d   :  { %s5455_s4 = sshll.u32 %s7233_s7, 4  ;;  %s5456_s4 = int_to_ptr.vmem [resolvable:$true] %s5455_s4 }
 0x57e   :  { %s7164_s18 = scalar_lea.vmem %s5456_s4, 2048  ;;  %p7169_p9 = scmp.lt.s32.totalorder %s5456_s4, %s5456_s4 }
 0x57f   :  { %p7165_p8 = scmp.ne.s32.totalorder %s5456_s4, %s7164_s18  ;;  %p7170_p10 = scmp.lt.s32.totalorder %s7164_s18, %s7164_s18 }
 0x581   :  { %p7171_p11 = por %p7170_p10, %p7169_p9 }
 0x583   :  { %p7172_p12 = pnand %p7171_p11, %p7165_p8 }
 0x585   :  { %7175 = shalt.err (!%p7172_p12)
}
 0x586   :  { %s7176_s30 = scalar_lea.hbm %s8928_s13, 2048 }
 0x587   :  { %p7177_p13 = scmp.ne.s32.totalorder %s8928_s13, %s7176_s30  ;;  %p7180_p0 = scmp.lt.u32.totalorder %s7176_s30, %s8928_s13 }
 0x589   :  { %p7182_p1 = pnand %p7180_p0, %p7177_p13 }
 0x58b   :  { %7185 = shalt.err (!%p7182_p1)
}
 0x58c   :  { %5461 = dma.vmem_to_hbm [thread:$0]  %s5456_s4, 2048, %s8928_s13, [#allocation16], %s7222_s20, %s7222_s20, %s7223_s21  }
 0x58d   :  { %v5672_v24 = vld [vmem:[%s8925_s10] ss:$0 sm:$0xff]  ;;  %s7234_s10 = smov [#allocation14]  }
 0x58e   :  { %s5431_s13 = sshll.u32 %s7234_s10, 4  ;;  %s5432_s13 = int_to_ptr.vmem [resolvable:$true] %s5431_s13 }
 0x58f   :  { %s7186_s9 = scalar_lea.vmem %s5432_s13, 2048  ;;  %p7191_p3 = scmp.lt.s32.totalorder %s5432_s13, %s5432_s13 }
 0x590   :  { %p7187_p2 = scmp.ne.s32.totalorder %s5432_s13, %s7186_s9  ;;  %p7192_p4 = scmp.lt.s32.totalorder %s7186_s9, %s7186_s9 }
 0x592   :  { %p7193_p5 = por %p7192_p4, %p7191_p3 }
 0x594   :  { %p7194_p6 = pnand %p7193_p5, %p7187_p2 }
 0x61a   :  { %v6315_v10 = vpop.f32.mrb[60].mxu0 }
 0x61b   :  { %v5305_v61 = vadd.f32 %v6315_v10, %v5672_v24  ;;  %v5299_v44 = vpop.f32.mrb[61].mxu0 }
 0x61c   :  { %v5300_v56 = vadd.f32 %v5672_v24, %v5299_v44 }
 0x61d   :  { %5379 = vst.msk [vmem:[#allocation14 + $0x8] sm:$0xff] %vm195_vm0, %v5305_v61 }
 0x61e   :  { %5378 = vst.msk [vmem:[#allocation14] sm:$0xff] %vm195_vm0, %v5300_v56 }
 0x626   :  { %v6318_v29 = vpop.f32.mrb[62].mxu0 }
 0x627   :  { %v5315_v36 = vadd.f32 %v6318_v29, %v5672_v24  ;;  %v5309_v52 = vpop.f32.mrb[63].mxu0 }
 0x628   :  { %v5310_v41 = vadd.f32 %v5672_v24, %v5309_v52 }
 0x629   :  { %5381 = vst.msk [vmem:[#allocation14 + $0x18] sm:$0xff] %vm195_vm0, %v5315_v36 }
 0x62a   :  { %5380 = vst.msk [vmem:[#allocation14 + $0x10] sm:$0xff] %vm195_vm0, %v5310_v41  ;;  %v6321_v49 = vpop.f32.mrb[64].mxu0 }
 0x62b   :  { %v5325_v16 = vadd.f32 %v6321_v49, %v5672_v24  ;;  %v5319_v37 = vpop.f32.mrb[65].mxu0 }
 0x62c   :  { %v5320_v35 = vadd.f32 %v5672_v24, %v5319_v37 }
 0x62d   :  { %5383 = vst.msk [vmem:[#allocation14 + $0x28] sm:$0xff] %vm195_vm0, %v5325_v16 }
 0x62e   :  { %5382 = vst.msk [vmem:[#allocation14 + $0x20] sm:$0xff] %vm195_vm0, %v5320_v35 }
 0x632   :  { %v6324_v23 = vpop.f32.mrb[66].mxu0 }
 0x633   :  { %v5335_v20 = vadd.f32 %v6324_v23, %v5672_v24  ;;  %v5329_v4 = vpop.f32.mrb[67].mxu0 }
 0x634   :  { %v5330_v27 = vadd.f32 %v5672_v24, %v5329_v4 }
 0x635   :  { %5385 = vst.msk [vmem:[#allocation14 + $0x38] sm:$0xff] %vm195_vm0, %v5335_v20 }
 0x636   :  { %5384 = vst.msk [vmem:[#allocation14 + $0x30] sm:$0xff] %vm195_vm0, %v5330_v27  ;;  %v6327_v46 = vpop.f32.mrb[68].mxu0 }
 0x637   :  { %v5345_v45 = vadd.f32 %v6327_v46, %v5672_v24  ;;  %v5339_v2 = vpop.f32.mrb[69].mxu0 }
 0x638   :  { %v5340_v11 = vadd.f32 %v5672_v24, %v5339_v2 }
 0x639   :  { %5387 = vst.msk [vmem:[#allocation14 + $0x48] sm:$0xff] %vm195_vm0, %v5345_v45 }
 0x63a   :  { %5386 = vst.msk [vmem:[#allocation14 + $0x40] sm:$0xff] %vm195_vm0, %v5340_v11 }
 0x63e   :  { %v6330_v47 = vpop.f32.mrb[70].mxu0 }
 0x63f   :  { %v5355_v19 = vadd.f32 %v6330_v47, %v5672_v24  ;;  %v5349_v42 = vpop.f32.mrb[71].mxu0 }
 0x640   :  { %v5350_v57 = vadd.f32 %v5672_v24, %v5349_v42 }
 0x641   :  { %5389 = vst.msk [vmem:[#allocation14 + $0x58] sm:$0xff] %vm195_vm0, %v5355_v19 }
 0x642   :  { %5388 = vst.msk [vmem:[#allocation14 + $0x50] sm:$0xff] %vm195_vm0, %v5350_v57  ;;  %v6333_v28 = vpop.f32.mrb[72].mxu0 }
 0x643   :  { %v5365_v48 = vadd.f32 %v6333_v28, %v5672_v24  ;;  %v5359_v8 = vpop.f32.mrb[73].mxu0 }
 0x644   :  { %v5360_v5 = vadd.f32 %v5672_v24, %v5359_v8 }
 0x645   :  { %5391 = vst.msk [vmem:[#allocation14 + $0x68] sm:$0xff] %vm195_vm0, %v5365_v48 }
 0x646   :  { %5390 = vst.msk [vmem:[#allocation14 + $0x60] sm:$0xff] %vm195_vm0, %v5360_v5  ;;  %v6336_v60 = vpop.f32.mrb[74].mxu0 }
 0x647   :  { %v5375_v50 = vadd.f32 %v6336_v60, %v5672_v24  ;;  %v5369_v9 = vpop.f32.mrb[75].mxu0 }
 0x648   :  { %v5370_v63 = vadd.f32 %v5672_v24, %v5369_v9 }
 0x649   :  { %5393 = vst.msk [vmem:[#allocation14 + $0x78] sm:$0xff] %vm195_vm0, %v5375_v50 }
 0x64a   :  { %5392 = vst.msk [vmem:[#allocation14 + $0x70] sm:$0xff] %vm195_vm0, %v5370_v63 }
 0x64b   :  { %7197 = shalt.err (!%p7194_p6)
}
 0x64c   :  { %s7198_s0 = scalar_lea.hbm %s8926_s11, 2048 }
 0x64d   :  { %p7199_p7 = scmp.ne.s32.totalorder %s8926_s11, %s7198_s0  ;;  %p7202_p8 = scmp.lt.u32.totalorder %s7198_s0, %s8926_s11 }
 0x64f   :  { %p7204_p9 = pnand %p7202_p8, %p7199_p7 }
 0x651   :  { %7207 = shalt.err (!%p7204_p9)
}
 0x652   :  { %5437 = dma.vmem_to_hbm [thread:$0]  %s5432_s13, 2048, %s8926_s11, [#allocation4], %s7222_s20, %s7222_s20, %s7223_s21  }
 0x653   :  { %7216 = dma.done.wait [#allocation4], 2048  }
 0x654   :  { %7217 = vsyncadd [#allocation4], 4294965248 }
 0x655   :  { %7218 = dma.done.wait [#allocation16], 4096  }
 0x656   :  { %7219 = vsyncadd [#allocation16], 4294963200 }
 0x657   :  { %5471 = vsyncpa [#allocation3], 1 }
 0x658   :  { %5472 = vsyncpa [#allocation6], 1 }
 0x659   :  { %5473 = vsyncpa [#allocation9], 1 }
 0x65a   :  { %5474 = vsyncpa [#allocation12], 1 }
 0x65b   :  { %5475 = vsyncpa [#allocation4], 1 }
 0x65c   :  { %5476 = vsyncpa [#allocation16], 1 }

</bundles_post_ra>
